<compile_context>
chip_gen: v7x
topology: tpu7x:2x2x1
jax: 0.10.0
libtpu: 0.0.40
codegen_flags: <defaults>
</compile_context>

<pallas_src>
import functools

import jax
import jax.numpy as jnp
from jax import lax
from jax.experimental import pallas as pl
from jax.experimental.pallas import tpu as pltpu

_NEG_INF = -1e30  # finite "minus infinity" used to mask padded aspect lanes


def _round_up(x, m):
    return (x + m - 1) // m * m


def _pad_axis(arr, axis, new_size, fill=0.0):
    pad = new_size - arr.shape[axis]
    if pad <= 0:
        return arr
    widths = [(0, 0)] * arr.ndim
    widths[axis] = (0, pad)
    return jnp.pad(arr, widths, constant_values=fill)


def abae_kernel(x_ref, m_ref, w_ref, b_ref, t_ref, rs_ref, ys_ref, zs_ref, *, inv_n):
    x = x_ref[...]          # (TB, N, Dp) f32 word embeddings for this batch tile
    Mw = m_ref[...]         # (Dp, Dp)   resident across grid steps
    Ww = w_ref[...]         # (Kp, Dp)   resident
    bw = b_ref[...]         # (1, Kp)    resident; padded K lanes hold -inf
    Tw = t_ref[...]         # (Kp, Dp)   resident

    # ---- ys: mean of word embeddings over the sequence -------------------
    ys = jnp.sum(x, axis=1) * inv_n                                       # (TB, Dp)

    # ---- attention: d_i = e_i^T M ys ; a = softmax_i(d_i) ----------------
    # My[b] = M @ ys[b]  == ys @ M^T, transpose folded into dot_general dims (MXU).
    My = lax.dot_general(ys, Mw, (((1,), (1,)), ((), ())),
                         preferred_element_type=jnp.float32)              # (TB, Dp)
    # scores via VPU multiply + lane reduce (avoid degenerate per-batch MXU matmuls).
    scores = jnp.sum(x * My[:, None, :], axis=-1)                         # (TB, N)
    scores = scores - jnp.max(scores, axis=-1, keepdims=True)
    es = jnp.exp(scores)
    a = es / jnp.sum(es, axis=-1, keepdims=True)                          # (TB, N)

    # ---- zs: attention-weighted sum of word embeddings (VPU + sublane reduce)
    zs = jnp.sum(a[:, :, None] * x, axis=1)                               # (TB, Dp)

    # ---- rs: aspect softmax + reconstruction -----------------------------
    logits = lax.dot_general(zs, Ww, (((1,), (1,)), ((), ())),
                             preferred_element_type=jnp.float32) + bw     # (TB, Kp)
    logits = logits - jnp.max(logits, axis=-1, keepdims=True)
    ep = jnp.exp(logits)
    p = ep / jnp.sum(ep, axis=-1, keepdims=True)                          # (TB, Kp)
    rs = jnp.dot(p, Tw, preferred_element_type=jnp.float32)               # (TB, Dp)

    rs_ref[...] = rs.astype(rs_ref.dtype)
    ys_ref[...] = ys.astype(ys_ref.dtype)
    zs_ref[...] = zs.astype(zs_ref.dtype)


def abae_forward(tokens, E, M, W, b, T, *, block_b=None):
    """tokens: (B, N) int32 word ids. Returns (rs, ys, zs) each (B, D) f32."""
    tokens = tokens.astype(jnp.int32)
    B, N = tokens.shape
    V, D = E.shape
    K = W.shape[0]

    Dp = _round_up(D, 128)
    Kp = _round_up(K, 128)

    # Pad weights / embeddings to lane-friendly widths (200 -> 256 for the real model).
    # Padded aspect (K) lanes of the bias get -inf so the aspect softmax ignores them;
    # padded D lanes are zeros everywhere so they contribute nothing.
    E_p = _pad_axis(E.astype(jnp.float32), 1, Dp)
    M_p = _pad_axis(_pad_axis(M.astype(jnp.float32), 0, Dp), 1, Dp)
    W_p = _pad_axis(_pad_axis(W.astype(jnp.float32), 0, Kp), 1, Dp)
    T_p = _pad_axis(_pad_axis(T.astype(jnp.float32), 0, Kp), 1, Dp)
    b_row = _pad_axis(b.reshape(1, K).astype(jnp.float32), 1, Kp, fill=_NEG_INF)

    # Batch tile: big enough to fill MXU rows, small enough to fit VMEM
    # (v7x has only 64 MiB physical / 32 MiB scoped default).
    if block_b is None:
        TB = 128 if B >= 128 else _round_up(B, 8)
        while TB > 8 and 2 * TB * N * Dp * 4 > 24 * (1 << 20):
            TB = max(8, TB // 2)
    else:
        TB = block_b
    Bp = _round_up(B, TB)
    tokens_p = _pad_axis(tokens, 0, Bp)        # padded batch rows use token id 0 (sliced off)

    # Embedding gather (plain-JAX glue).
    x = E_p[tokens_p]                          # (Bp, N, Dp) f32

    grid = (Bp // TB,)

    # VMEM budget: double-buffered x tile + resident (but double-buffered) weights
    # + double-buffered outputs + headroom for the (TB, N, Dp) in-kernel temporaries.
    vmem_est = 4 * (2 * TB * N * Dp
                    + 2 * (Dp * Dp + 2 * Kp * Dp + Kp)
                    + 2 * 3 * TB * Dp
                    + 2 * TB * N * Dp)
    vmem_limit = int(min(max(2 * vmem_est, 16 * (1 << 20)), 100 * (1 << 20)))

    out_shape = (
        jax.ShapeDtypeStruct((Bp, Dp), jnp.float32),  # rs
        jax.ShapeDtypeStruct((Bp, Dp), jnp.float32),  # ys
        jax.ShapeDtypeStruct((Bp, Dp), jnp.float32),  # zs
    )
    in_specs = [
        pl.BlockSpec((TB, N, Dp), lambda i: (i, 0, 0)),   # x: tiled over batch
        pl.BlockSpec((Dp, Dp), lambda i: (0, 0)),         # M: resident
        pl.BlockSpec((Kp, Dp), lambda i: (0, 0)),         # W: resident
        pl.BlockSpec((1, Kp), lambda i: (0, 0)),          # b: resident
        pl.BlockSpec((Kp, Dp), lambda i: (0, 0)),         # T: resident
    ]
    out_specs = (
        pl.BlockSpec((TB, Dp), lambda i: (i, 0)),
        pl.BlockSpec((TB, Dp), lambda i: (i, 0)),
        pl.BlockSpec((TB, Dp), lambda i: (i, 0)),
    )

    kernel = functools.partial(abae_kernel, inv_n=float(1.0 / N))

    rs, ys, zs = pl.pallas_call(
        kernel,
        out_shape=out_shape,
        grid=grid,
        in_specs=in_specs,
        out_specs=out_specs,
        compiler_params=pltpu.CompilerParams(
            dimension_semantics=("parallel",),
            vmem_limit_bytes=vmem_limit,
        ),
    )(x, M_p, W_p, b_row, T_p)

    # Strip batch / feature padding.
    return rs[:B, :D], ys[:B, :D], zs[:B, :D]


def abae_reference(tokens, E, M, W, b, T):
    x = E[tokens].astype(jnp.float32)
    ys = jnp.mean(x, axis=1)
    My = ys @ M.T
    scores = jnp.einsum('bnd,bd->bn', x, My)
    a = jax.nn.softmax(scores, axis=-1)
    zs = jnp.einsum('bn,bnd->bd', a, x)
    logits = zs @ W.T + b.reshape(1, -1)
    p = jax.nn.softmax(logits, axis=-1)
    rs = p @ T
    return rs, ys, zs


if __name__ == "__main__":
    # Small shapes consistent with the module: D = K = 200 (exercises the pad-to-256
    # + masked-aspect-softmax path), small vocab / batch / sequence.
    B, N, D, K, V = 48, 10, 200, 200, 64

    key = jax.random.PRNGKey(0)
    k1, k2, k3, k4, k5, k6 = jax.random.split(key, 6)

    # Deterministic synthetic parameters (replace pickle-loaded E / T / unique_words).
    E = jax.random.normal(k1, (V, D), dtype=jnp.float32)          # word embedding matrix
    M = 0.1 * jax.random.normal(k2, (D, D), dtype=jnp.float32)    # attention bilinear matrix
    W = 0.1 * jax.random.normal(k3, (K, D), dtype=jnp.float32)    # aspect projection
    b = 0.1 * jax.random.normal(k4, (K, 1), dtype=jnp.float32)    # aspect projection bias
    T = jax.random.normal(k5, (K, D), dtype=jnp.float32)          # aspect embedding matrix
    tokens = jax.random.randint(k6, (B, N), 0, V, dtype=jnp.int32)

    rs, ys, zs = abae_forward(tokens, E, M, W, b, T, block_b=16)  # grid = (3,) batch tiles
    jax.block_until_ready((rs, ys, zs))

    with jax.default_matmul_precision("highest"):
        rs_ref, ys_ref, zs_ref = abae_reference(tokens, E, M, W, b, T)

    assert jnp.allclose(ys, ys_ref, atol=2e-3, rtol=2e-3), float(jnp.max(jnp.abs(ys - ys_ref)))
    assert jnp.allclose(zs, zs_ref, atol=2e-3, rtol=2e-3), float(jnp.max(jnp.abs(zs - zs_ref)))
    assert jnp.allclose(rs, rs_ref, atol=2e-3, rtol=2e-3), float(jnp.max(jnp.abs(rs - rs_ref)))

    print("KERNEL_OK")
</pallas_src>

<mosaic_0001>
module attributes {stable_mosaic.version = 11 : i64} {
  func.func @abae_kernel(%arg0: i32, %arg1: memref<16x10x256xf32, #tpu.memory_space<vmem>>, %arg2: memref<256x256xf32, #tpu.memory_space<vmem>>, %arg3: memref<256x256xf32, #tpu.memory_space<vmem>>, %arg4: memref<1x256xf32, #tpu.memory_space<vmem>>, %arg5: memref<256x256xf32, #tpu.memory_space<vmem>>, %arg6: memref<16x256xf32, #tpu.memory_space<vmem>>, %arg7: memref<16x256xf32, #tpu.memory_space<vmem>>, %arg8: memref<16x256xf32, #tpu.memory_space<vmem>>) attributes {dimension_semantics = [#tpu.dimension_semantics<parallel>], iteration_bounds = array<i64: 3>, scalar_prefetch = 0 : i64, scratch_operands = 0 : i64, tpu.core_type = #tpu.core_type<tc>, window_params = [{transform_indices = @transform_0, window_bounds = array<i64: 16, 10, 256>}, {pipeline_mode = #tpu.pipeline_mode<synchronous>, transform_indices = @transform_1, window_bounds = array<i64: 256, 256>}, {pipeline_mode = #tpu.pipeline_mode<synchronous>, transform_indices = @transform_2, window_bounds = array<i64: 256, 256>}, {pipeline_mode = #tpu.pipeline_mode<synchronous>, transform_indices = @transform_3, window_bounds = array<i64: 1, 256>}, {pipeline_mode = #tpu.pipeline_mode<synchronous>, transform_indices = @transform_4, window_bounds = array<i64: 256, 256>}, {transform_indices = @transform_5, window_bounds = array<i64: 16, 256>}, {transform_indices = @transform_6, window_bounds = array<i64: 16, 256>}, {transform_indices = @transform_7, window_bounds = array<i64: 16, 256>}]} {
    %c0 = arith.constant 0 : index
    %c0_0 = arith.constant 0 : index
    %c0_1 = arith.constant 0 : index
    %0 = vector.load %arg1[%c0, %c0_0, %c0_1] : memref<16x10x256xf32, #tpu.memory_space<vmem>>, vector<16x10x256xf32>
    %c0_2 = arith.constant 0 : index
    %c0_3 = arith.constant 0 : index
    %1 = vector.load %arg2[%c0_2, %c0_3] : memref<256x256xf32, #tpu.memory_space<vmem>>, vector<256x256xf32>
    %c0_4 = arith.constant 0 : index
    %c0_5 = arith.constant 0 : index
    %2 = vector.load %arg3[%c0_4, %c0_5] : memref<256x256xf32, #tpu.memory_space<vmem>>, vector<256x256xf32>
    %c0_6 = arith.constant 0 : index
    %c0_7 = arith.constant 0 : index
    %3 = vector.load %arg4[%c0_6, %c0_7] : memref<1x256xf32, #tpu.memory_space<vmem>>, vector<1x256xf32>
    %c0_8 = arith.constant 0 : index
    %c0_9 = arith.constant 0 : index
    %4 = vector.load %arg5[%c0_8, %c0_9] : memref<256x256xf32, #tpu.memory_space<vmem>>, vector<256x256xf32>
    %cst = arith.constant dense<0.000000e+00> : vector<16x256xf32>
    %5 = vector.multi_reduction <add>, %0, %cst [1] : vector<16x10x256xf32> to vector<16x256xf32>
    %cst_10 = arith.constant 1.000000e-01 : f32
    %6 = vector.broadcast %cst_10 : f32 to vector<16x256xf32>
    %7 = arith.mulf %5, %6 : vector<16x256xf32>
    %cst_11 = arith.constant dense<0.000000e+00> : vector<16x256xf32>
    %8 = tpu.matmul %7, %1, %cst_11 {dimension_numbers = #tpu.dot_dimension_numbers<[1], [1], [0], [0], [0, 0, 1, 0], [], []>} : vector<16x256xf32>, vector<256x256xf32>, vector<16x256xf32> -> vector<16x256xf32>
    %9 = vector.shape_cast %8 : vector<16x256xf32> to vector<16x1x256xf32>
    %10 = vector.broadcast %9 : vector<16x1x256xf32> to vector<16x10x256xf32>
    %11 = arith.mulf %0, %10 : vector<16x10x256xf32>
    %cst_12 = arith.constant dense<0.000000e+00> : vector<16x10xf32>
    %12 = vector.multi_reduction <add>, %11, %cst_12 [2] : vector<16x10x256xf32> to vector<16x10xf32>
    %cst_13 = arith.constant dense<0xFF800000> : vector<16xf32>
    %13 = vector.multi_reduction <maximumf>, %12, %cst_13 [1] : vector<16x10xf32> to vector<16xf32>
    %14 = vector.shape_cast %13 : vector<16xf32> to vector<16x1xf32>
    %15 = vector.broadcast %14 : vector<16x1xf32> to vector<16x10xf32>
    %16 = arith.subf %12, %15 : vector<16x10xf32>
    %17 = math.exp %16 : vector<16x10xf32>
    %cst_14 = arith.constant dense<0.000000e+00> : vector<16xf32>
    %18 = vector.multi_reduction <add>, %17, %cst_14 [1] : vector<16x10xf32> to vector<16xf32>
    %19 = vector.shape_cast %18 : vector<16xf32> to vector<16x1xf32>
    %20 = vector.broadcast %19 : vector<16x1xf32> to vector<16x10xf32>
    %21 = arith.divf %17, %20 : vector<16x10xf32>
    %22 = vector.shape_cast %21 : vector<16x10xf32> to vector<16x10x1xf32>
    %23 = vector.broadcast %22 : vector<16x10x1xf32> to vector<16x10x256xf32>
    %24 = arith.mulf %23, %0 : vector<16x10x256xf32>
    %cst_15 = arith.constant dense<0.000000e+00> : vector<16x256xf32>
    %25 = vector.multi_reduction <add>, %24, %cst_15 [1] : vector<16x10x256xf32> to vector<16x256xf32>
    %cst_16 = arith.constant dense<0.000000e+00> : vector<16x256xf32>
    %26 = tpu.matmul %25, %2, %cst_16 {dimension_numbers = #tpu.dot_dimension_numbers<[1], [1], [0], [0], [0, 0, 1, 0], [], []>} : vector<16x256xf32>, vector<256x256xf32>, vector<16x256xf32> -> vector<16x256xf32>
    %27 = vector.broadcast %3 : vector<1x256xf32> to vector<16x256xf32>
    %28 = arith.addf %26, %27 : vector<16x256xf32>
    %cst_17 = arith.constant dense<0xFF800000> : vector<16xf32>
    %29 = vector.multi_reduction <maximumf>, %28, %cst_17 [1] : vector<16x256xf32> to vector<16xf32>
    %30 = vector.shape_cast %29 : vector<16xf32> to vector<16x1xf32>
    %31 = vector.broadcast %30 : vector<16x1xf32> to vector<16x256xf32>
    %32 = arith.subf %28, %31 : vector<16x256xf32>
    %33 = math.exp %32 : vector<16x256xf32>
    %cst_18 = arith.constant dense<0.000000e+00> : vector<16xf32>
    %34 = vector.multi_reduction <add>, %33, %cst_18 [1] : vector<16x256xf32> to vector<16xf32>
    %35 = vector.shape_cast %34 : vector<16xf32> to vector<16x1xf32>
    %36 = vector.broadcast %35 : vector<16x1xf32> to vector<16x256xf32>
    %37 = arith.divf %33, %36 : vector<16x256xf32>
    %cst_19 = arith.constant dense<0.000000e+00> : vector<16x256xf32>
    %38 = tpu.matmul %37, %4, %cst_19 {dimension_numbers = #tpu.dot_dimension_numbers<[1], [0], [0], [1], [0, 0, 1, 1], [], []>} : vector<16x256xf32>, vector<256x256xf32>, vector<16x256xf32> -> vector<16x256xf32>
    %c0_20 = arith.constant 0 : index
    %c0_21 = arith.constant 0 : index
    %39 = vector.load %arg6[%c0_20, %c0_21] : memref<16x256xf32, #tpu.memory_space<vmem>>, vector<16x256xf32>
    tpu.vector_store %arg6[%c0_20, %c0_21], %38 {strides = array<i32>} : memref<16x256xf32, #tpu.memory_space<vmem>>, vector<16x256xf32>,
    %c0_22 = arith.constant 0 : index
    %c0_23 = arith.constant 0 : index
    %40 = vector.load %arg7[%c0_22, %c0_23] : memref<16x256xf32, #tpu.memory_space<vmem>>, vector<16x256xf32>
    tpu.vector_store %arg7[%c0_22, %c0_23], %7 {strides = array<i32>} : memref<16x256xf32, #tpu.memory_space<vmem>>, vector<16x256xf32>,
    %c0_24 = arith.constant 0 : index
    %c0_25 = arith.constant 0 : index
    %41 = vector.load %arg8[%c0_24, %c0_25] : memref<16x256xf32, #tpu.memory_space<vmem>>, vector<16x256xf32>
    tpu.vector_store %arg8[%c0_24, %c0_25], %25 {strides = array<i32>} : memref<16x256xf32, #tpu.memory_space<vmem>>, vector<16x256xf32>,
    return
  }
  func.func @transform_0(%arg0: i32) -> (i32, i32, i32) {
    %c0_i32 = arith.constant 0 : i32
    %c0_i32_0 = arith.constant 0 : i32
    %c0_i32_1 = arith.constant 0 : i32
    return %arg0, %c0_i32, %c0_i32_0 : i32, i32, i32
  }
  func.func @transform_1(%arg0: i32) -> (i32, i32) {
    %c0_i32 = arith.constant 0 : i32
    %c0_i32_0 = arith.constant 0 : i32
    %c0_i32_1 = arith.constant 0 : i32
    return %c0_i32, %c0_i32_0 : i32, i32
  }
  func.func @transform_2(%arg0: i32) -> (i32, i32) {
    %c0_i32 = arith.constant 0 : i32
    %c0_i32_0 = arith.constant 0 : i32
    %c0_i32_1 = arith.constant 0 : i32
    return %c0_i32, %c0_i32_0 : i32, i32
  }
  func.func @transform_3(%arg0: i32) -> (i32, i32) {
    %c0_i32 = arith.constant 0 : i32
    %c0_i32_0 = arith.constant 0 : i32
    %c0_i32_1 = arith.constant 0 : i32
    return %c0_i32, %c0_i32_0 : i32, i32
  }
  func.func @transform_4(%arg0: i32) -> (i32, i32) {
    %c0_i32 = arith.constant 0 : i32
    %c0_i32_0 = arith.constant 0 : i32
    %c0_i32_1 = arith.constant 0 : i32
    return %c0_i32, %c0_i32_0 : i32, i32
  }
  func.func @transform_5(%arg0: i32) -> (i32, i32) {
    %c0_i32 = arith.constant 0 : i32
    %c0_i32_0 = arith.constant 0 : i32
    return %arg0, %c0_i32 : i32, i32
  }
  func.func @transform_6(%arg0: i32) -> (i32, i32) {
    %c0_i32 = arith.constant 0 : i32
    %c0_i32_0 = arith.constant 0 : i32
    return %arg0, %c0_i32 : i32, i32
  }
  func.func @transform_7(%arg0: i32) -> (i32, i32) {
    %c0_i32 = arith.constant 0 : i32
    %c0_i32_0 = arith.constant 0 : i32
    return %arg0, %c0_i32 : i32, i32
  }
}

</mosaic_0001>

<bundles_post_ra>
// kernel: tpu_custom_call.1
= control target key start
LH: loop header
LB: loop body
LE: loop exit
PB: predicated region body
PF: predicated region fallthrough
CT: control target
= control target key end

     0   :  { %13 = vsyncpa [#allocation3], 0  ;;  %s5998_s0 = inlined_call_operand.vmem [shape: f32[48,10,256], index: 0, kind: input, shape index: {}]   ;;  %s5999_s1 = inlined_call_operand.vmem [shape: f32[256,256], index: 1, kind: input, shape index: {}]   ;;  %s6000_s2 = inlined_call_operand.vmem [shape: f32[256,256], index: 2, kind: input, shape index: {}]   ;;  %s6001_s3 = inlined_call_operand.vmem [shape: f32[1,256], index: 3, kind: input, shape index: {}]   ;;  %s6002_s4 = inlined_call_operand.vmem [shape: f32[256,256], index: 4, kind: input, shape index: {}]   ;;  %s6003_s5 = inlined_call_operand.hbm [shape: f32[48,256], index: 5, kind: output, shape index: {0}]   ;;  %s6004_s6 = inlined_call_operand.hbm [shape: f32[48,256], index: 6, kind: output, shape index: {1}]   ;;  %s6005_s7 = inlined_call_operand.hbm [shape: f32[48,256], index: 7, kind: output, shape index: {2}]  }
   0x1   :  { %15 = vsyncpa [#allocation3 + $0x1], 0 }
   0x2   :  { %16 = vsyncpa [#allocation5], 0 }
   0x3   :  { %18 = vsyncpa [#allocation5 + $0x1], 0  ;;  %s3849_s24 = smov 0   ;;  %s3851_s25 = smov 0  }
   0x4   :  { %s3853_s26 = smov 0   ;;  %s3855_s27 = smov 0  }
   0x5 LB: > { %s3870_s28 = sadd.s32 4294967295, %s3800_s27   ;;  %s6043_s29 = sadd.s32 4294967294, %s3800_s27   ;;  %s3800_s27 = sphi %s3855_s27, %s6143_s27   ;;  %s3796_s26 = sphi %s3853_s26, %s6142_s26   ;;  %s3792_s25 = sphi %s3851_s25, %s6141_s25   ;;  %s3788_s24 = sphi %s3849_s24, %s6140_s24  }
   0x6   : > { %s3874_s30 = sadd.s32 1, %s3800_s27   ;;  %s141_s8 = sadd.s32 1, %s3796_s26 }
   0x7   : > { %s138_s9 = ssub.s32 %s3800_s27, %s3874_s30  ;;  %p151_p0 = scmp.ne.s32.totalorder %s3796_s26, %s3792_s25 }
   0x8   : > { %p139_p1 = scmp.eq.s32.totalorder %s138_s9, 0  ;;  %p152_p2 = scmp.eq.s32.totalorder %s3870_s28, 2 }
   0x9   : > { %p157_p3 = scmp.ne.s32.totalorder %s3792_s25, %s3788_s24  ;;  %p158_p4 = scmp.eq.s32.totalorder %s6043_s29, 2 }
   0xa   : > { %s3887_s10 = scalar_select %p139_p1, %s3796_s26, %s141_s8  }
   0xb   : > { %p3889_p5 = por %p152_p2, %p151_p0  ;;  %p3893_p6 = por %p158_p4, %p157_p3 }
   0xc   : > { %p3194_p7 = scmp.ge.s32.totalorder %s3800_s27, 1  ;;  %p250_p8 = scmp.lt.s32.totalorder %s3800_s27, 4 }
   0xe   : > { %p251_p9 = pnand %p3194_p7, %p250_p8 }
  0x10   : > { %254 = sbr.rel (%p251_p9) target bundleno = 2033 (0x7f1), region = 40 }
  0x17   : > { %v368_v0 = vld [vmem:[%s5999_s1 + $0x8] sm:$0xff]  ;;  %v370_v1 = vld [vmem:[%s5999_s1 + $0x18] sm:$0xff]  ;;  %v367_v2 = vld [vmem:[%s5999_s1] sm:$0xff]  ;;  %s3198_s9 = sshll.u32 %s3870_s28, 4  ;;  %vm560_vm0 = vcmask 1041408   ;;  %vm881_vm1 = vcmask 1041409  }
  0x18   : > { %v3222_v3 = vpack.c.bf16 %v370_v1, %v368_v0  ;;  %v369_v4 = vld [vmem:[%s5999_s1 + $0x10] sm:$0xff]  ;;  %v372_v5 = vld [vmem:[%s5999_s1 + $0x28] sm:$0xff]  ;;  %v374_v6 = vld [vmem:[%s5999_s1 + $0x38] sm:$0xff]  ;;  %p294_p10 = scmp.lt.s32.totalorder %s3198_s9, 47  ;;  %vm883_vm2 = vcmask 1042434   ;;  %vm885_vm3 = vcmask 1043459  }
  0x19   : > { %v3224_v7 = vpack.c.bf16 %v369_v4, %v367_v2  ;;  %v3226_v8 = vpack.c.bf16 %v374_v6, %v372_v5  ;;  %v371_v9 = vld [vmem:[%s5999_s1 + $0x20] sm:$0xff]  ;;  %v373_v10 = vld [vmem:[%s5999_s1 + $0x30] sm:$0xff]  ;;  %v376_v11 = vld [vmem:[%s5999_s1 + $0x48] sm:$0xff]  ;;  %vm887_vm4 = vcmask 1044484   ;;  %vm889_vm5 = vcmask 1045509   ;;  %s6044_s21 = sand.u32 1, %s3792_s25  }
  0x1a   : > { %3223 = vmatprep.subr.bf16.mxu0 %v3222_v3  ;;  %v378_v12 = vld [vmem:[%s5999_s1 + $0x58] sm:$0xff]  ;;  %v3228_v13 = vpack.c.bf16 %v373_v10, %v371_v9  ;;  %s6145_s9 = smov (!%p294_p10, %s3198_s9), 47  ;;  %v375_v15 = vld [vmem:[%s5999_s1 + $0x40] sm:$0xff]  ;;  %v377_v16 = vld [vmem:[%s5999_s1 + $0x50] sm:$0xff]  ;;  %vm891_vm6 = vcmask 1046534   ;;  %vm893_vm7 = vcmask 1047559  }
  0x1b   : > { %3225 = vmatpush1.bf16.xpose.msra.mxu0 %v3224_v7  ;;  %v3230_v14 = vpack.c.bf16 %v378_v12, %v376_v11  ;;  %v380_v17 = vld [vmem:[%s5999_s1 + $0x68] sm:$0xff]  ;;  %v382_v18 = vld [vmem:[%s5999_s1 + $0x78] sm:$0xff]  ;;  %v3947_v19 = vld [vmem:[%s5999_s1 + $0x60] sm:$0xff]  ;;  %s3215_s17 = sshll.u32 %s6145_s9, 5  ;;  %v3232_v31 = vpack.c.bf16 %v377_v16, %v375_v15  ;;  %s4267_s22 = sshll.u32 %s6044_s21, 5  ;;  %vm1496_vm8 = vcmask 130112  }
  0x1c   : > { %3227 = vmatprep.subr.bf16.mxu0 %v3226_v8  ;;  %v3952_v20 = vld [vmem:[%s5999_s1 + $0x70] sm:$0xff]  ;;  %v3957_v21 = vld [vmem:[%s5999_s1 + $0x88] sm:$0xff]  ;;  %v3962_v22 = vld [vmem:[%s5999_s1 + $0x98] sm:$0xff]  ;;  %v3234_v40 = vpack.c.bf16 %v382_v18, %v380_v17  ;;  %s4088_s15 = scalar_lea.vmem %s5998_s0, %s3215_s17  ;;  %s4310_s17 = scalar_lea.vmem [#allocation4], %s4267_s22  ;;  %vm1649_vm9 = vcmask 80896  }
  0x1d   : > { %v3967_v23 = vld [vmem:[%s5999_s1 + $0x80] sm:$0xff]  ;;  %v3972_v24 = vld [vmem:[%s5999_s1 + $0x90] sm:$0xff]  ;;  %v3977_v25 = vld [vmem:[%s5999_s1 + $0xa8] sm:$0xff]  ;;  %v3236_v49 = vpack.c.bf16 %v3952_v20, %v3947_v19  ;;  %s5598_s29 = scalar_lea.vmem [#allocation6], %s4267_s22  ;;  %s3051_s19 = sshll.u32 %s4310_s17, 4  ;;  %s5869_s19 = int_to_ptr.vmem [resolvable:$true] %s3051_s19 }
  0x1e   : > { %v3982_v26 = vld [vmem:[%s5999_s1 + $0xb8] sm:$0xff]  ;;  %v3987_v27 = vld [vmem:[%s5999_s1 + $0xa0] sm:$0xff]  ;;  %v3992_v28 = vld [vmem:[%s5999_s1 + $0xb0] sm:$0xff]  ;;  %s3068_s20 = sshll.u32 %s5598_s29, 4  ;;  %s5875_s23 = sshll.u32 %s3870_s28, 9  ;;  %s5871_s20 = int_to_ptr.vmem [resolvable:$true] %s3068_s20 }
  0x1f   : > { %v3997_v29 = vld [vmem:[%s5999_s1 + $0xc8] sm:$0xff]  ;;  %v4002_v30 = vld [vmem:[%s5999_s1 + $0xd8] sm:$0xff]  ;;  %v4008_v32 = vld [vmem:[%s5999_s1 + $0xc0] sm:$0xff]  ;;  %s5881_s9 = scalar_lea.hbm %s6004_s6, %s5875_s23 }
  0x20   : > { %v4013_v33 = vld [vmem:[%s5999_s1 + $0xd0] sm:$0xff]  ;;  %v4018_v34 = vld [vmem:[%s5999_s1 + $0xe8] sm:$0xff]  ;;  %v4023_v35 = vld [vmem:[%s5999_s1 + $0xf8] sm:$0xff] }
  0x21   : > { %v4028_v36 = vld [vmem:[%s5999_s1 + $0xe0] sm:$0xff]  ;;  %v4033_v37 = vld [vmem:[%s5999_s1 + $0xf0] sm:$0xff]  ;;  %v4038_v38 = vld [vmem:[%s5999_s1 + $0x108] sm:$0xff] }
  0x22   : > { %v4043_v39 = vld [vmem:[%s5999_s1 + $0x118] sm:$0xff]  ;;  %v4048_v41 = vld [vmem:[%s5999_s1 + $0x100] sm:$0xff]  ;;  %v4053_v42 = vld [vmem:[%s5999_s1 + $0x110] sm:$0xff] }
  0x23   : > { %3229 = vmatpush1.bf16.xpose.msra.mxu0 %v3228_v13  ;;  %v4058_v43 = vld [vmem:[%s5999_s1 + $0x128] sm:$0xff]  ;;  %v4063_v44 = vld [vmem:[%s5999_s1 + $0x138] sm:$0xff]  ;;  %v4068_v45 = vld [vmem:[%s5999_s1 + $0x120] sm:$0xff] }
  0x24   : > { %3231 = vmatprep.subr.bf16.mxu0 %v3230_v14  ;;  %v4073_v46 = vld [vmem:[%s5999_s1 + $0x130] sm:$0xff]  ;;  %v4078_v47 = vld [vmem:[%s5999_s1 + $0x148] sm:$0xff]  ;;  %v4083_v48 = vld [vmem:[%s5999_s1 + $0x158] sm:$0xff] }
  0x25   : > { %v4097_v51 = vld [vmem:[%s5999_s1 + $0x140] sm:$0xff]  ;;  %v4102_v52 = vld [vmem:[%s5999_s1 + $0x150] sm:$0xff]  ;;  %v4107_v53 = vld [vmem:[%s5999_s1 + $0x168] sm:$0xff] }
  0x26   : > { %v4120_v58 = vld [vmem:[%s5999_s1 + $0x178] sm:$0xff]  ;;  %v4125_v59 = vld [vmem:[%s5999_s1 + $0x160] sm:$0xff]  ;;  %v4130_v60 = vld [vmem:[%s5999_s1 + $0x170] sm:$0xff] }
  0x27   : > { %v4143_v1 = vld [vmem:[%s5999_s1 + $0x188] sm:$0xff]  ;;  %v4148_v2 = vld [vmem:[%s5999_s1 + $0x198] sm:$0xff] }
  0x28   : > { %v4151_v3 = vld [vmem:[%s4088_s15 + $0x8] sm:$0xff]  ;;  %v4154_v4 = vld [vmem:[%s4088_s15 + $0x18] sm:$0x3] }
  0x29   : > { %6047 = vst [vmem:[#allocation9_spill] sm:$0xff] %v4154_v4  ;;  %v4163_v8 = vld [vmem:[%s4088_s15 + $0x28] sm:$0xff]  ;;  %v4166_v9 = vld [vmem:[%s4088_s15 + $0x38] sm:$0x3]  ;;  %v569_v11 = vsel %vm560_vm0, %v4154_v4, 0.0 }
  0x2a   : > { %6048 = vst [vmem:[#allocation10_spill] sm:$0xff] %v4163_v8  ;;  %6049 = vst [vmem:[#allocation11_spill] sm:$0xff] %v4166_v9  ;;  %v4169_v10 = vld [vmem:[%s4088_s15 + $0x48] sm:$0xff]  ;;  %v4178_v14 = vld [vmem:[%s4088_s15 + $0x58] sm:$0x3]  ;;  %v570_v17 = vadd.f32 %v569_v11, %v4151_v3  ;;  %v585_v18 = vsel %vm560_vm0, %v4166_v9, 0.0 }
  0x2b   : > { %3233 = vmatpush1.bf16.xpose.msra.mxu0 %v3232_v31  ;;  %6050 = vst [vmem:[#allocation12_spill] sm:$0xff] %v4169_v10  ;;  %6051 = vst [vmem:[#allocation13_spill] sm:$0xff] %v4178_v14  ;;  %v316_v15 = vld [vmem:[%s4088_s15 + $0x68] sm:$0xff]  ;;  %v318_v16 = vld [vmem:[%s4088_s15 + $0x78] sm:$0x3]  ;;  %v601_v13 = vsel %vm560_vm0, %v4178_v14, 0.0  ;;  %v6055_v14 = vpack.c.bf16 %v3962_v22, %v3957_v21 }
  0x2c   : > { %3235 = vmatprep.subr.bf16.mxu0 %v3234_v40  ;;  %v4188_v20 = vld [vmem:[%s4088_s15 + $0x88] sm:$0xff]  ;;  %v4191_v31 = vld [vmem:[%s4088_s15 + $0x98] sm:$0x3]  ;;  %v586_v40 = vadd.f32 %v585_v18, %v4163_v8  ;;  %v617_v11 = vsel %vm560_vm0, %v318_v16, 0.0  ;;  %v571_v5 = vrot.slane %v570_v17, 4  ;;  %v602_v0 = vadd.f32 %v601_v13, %v4169_v10 }
  0x2d   : > { %v4200_v7 = vld [vmem:[%s4088_s15 + $0xa8] sm:$0xff]  ;;  %v4203_v6 = vld [vmem:[%s4088_s15 + $0xb8] sm:$0x3]  ;;  %v618_v63 = vadd.f32 %v617_v11, %v316_v15  ;;  %v633_v16 = vsel %vm560_vm0, %v4191_v31, 0.0 }
  0x2e   : > { %6052 = vst [vmem:[#allocation14_spill] sm:$0xff] %v4200_v7  ;;  %6053 = vst [vmem:[#allocation15_spill] sm:$0xff] %v4203_v6  ;;  %v330_v19 = vld [vmem:[%s4088_s15 + $0xd8] sm:$0x3]  ;;  %v587_v61 = vrot.slane %v586_v40, 4  ;;  %v649_v12 = vsel %vm560_vm0, %v4203_v6, 0.0  ;;  %v572_v55 = vadd.f32 %v571_v5, %v570_v17  ;;  %v634_v13 = vadd.f32 %v633_v16, %v4188_v20 }
  0x2f   : > { %v334_v62 = vld [vmem:[%s4088_s15 + $0xf8] sm:$0x3]  ;;  %v4215_v57 = vld [vmem:[%s4088_s15 + $0xc8] sm:$0xff]  ;;  %v603_v54 = vrot.slane %v602_v0, 4  ;;  %v619_v50 = vrot.slane %v618_v63, 4  ;;  %v650_v11 = vadd.f32 %v649_v12, %v4200_v7  ;;  %v665_v18 = vsel %vm560_vm0, %v330_v19, 0.0 }
  0x30   : > { %6054 = vst [vmem:[#allocation16_spill] sm:$0xff] %v4215_v57  ;;  %v332_v56 = vld [vmem:[%s4088_s15 + $0xe8] sm:$0xff]  ;;  %v588_v15 = vadd.f32 %v587_v61, %v586_v40  ;;  %v681_v10 = vsel %vm560_vm0, %v334_v62, 0.0  ;;  %v573_v6 = vrot.slane %v572_v55, 2  ;;  %v635_v5 = vrot.slane %v634_v13, 4 }
  0x31   : > { %v604_v9 = vadd.f32 %v603_v54, %v602_v0  ;;  %v620_v8 = vadd.f32 %v619_v50, %v618_v63  ;;  %v651_v4 = vrot.slane %v650_v11, 4  ;;  %v682_v61 = vadd.f32 %v681_v10, %v332_v56 }
  0x32   : > { %v589_v17 = vrot.slane %v588_v15, 2  ;;  %v574_v12 = vadd.f32 %v573_v6, %v572_v55  ;;  %v636_v16 = vadd.f32 %v635_v5, %v634_v13  ;;  %v4230_v5 = vld [vmem:[%s4088_s15 + $0x10] sm:$0x3] }
  0x33   : > { %3237 = vmatpush1.bf16.xpose.msra.mxu0 %v3236_v49  ;;  %v666_v49 = vadd.f32 %v665_v18, %v4215_v57  ;;  %v605_v40 = vrot.slane %v604_v9, 2  ;;  %v621_v19 = vrot.slane %v620_v8, 2  ;;  %v652_v7 = vadd.f32 %v651_v4, %v650_v11 }
  0x34   : > { %3239 = vmatprep.subr.bf16.mxu0 %v6055_v14  ;;  %v590_v62 = vadd.f32 %v589_v17, %v588_v15  ;;  %v683_v22 = vrot.slane %v682_v61, 4  ;;  %v575_v54 = vrot.slane %v574_v12, 1  ;;  %v637_v0 = vrot.slane %v636_v16, 2 }
  0x35   : > { %v667_v21 = vrot.slane %v666_v49, 4  ;;  %v606_v50 = vadd.f32 %v605_v40, %v604_v9  ;;  %v622_v63 = vadd.f32 %v621_v19, %v620_v8  ;;  %v653_v18 = vrot.slane %v652_v7, 2 }
  0x36   : > { %v591_v14 = vrot.slane %v590_v62, 1  ;;  %v684_v10 = vadd.f32 %v683_v22, %v682_v61  ;;  %v576_v55 = vadd.f32 %v575_v54, %v574_v12  ;;  %v638_v13 = vadd.f32 %v637_v0, %v636_v16  ;;  %v4236_v16 = vld [vmem:[%s4088_s15] sm:$0xff] }
  0x37   : > { %v668_v56 = vadd.f32 %v667_v21, %v666_v49  ;;  %v607_v6 = vrot.slane %v606_v50, 1  ;;  %v623_v57 = vrot.slane %v622_v63, 1  ;;  %v6056_v4 = vpack.c.bf16 %v3972_v24, %v3967_v23  ;;  %v4246_v0 = vld [vmem:[%s4088_s15 + $0x20] sm:$0xff] }
  0x38   : > { %v592_v15 = vadd.f32 %v591_v14, %v590_v62  ;;  %v654_v8 = vadd.f32 %v653_v18, %v652_v7  ;;  %v685_v11 = vrot.slane %v684_v10, 2  ;;  %v6057_v17 = vpack.c.bf16 %v3982_v26, %v3977_v25  ;;  %v4239_v62 = vld [vmem:[%s4088_s15 + $0x30] sm:$0x3] }
  0x39   : > { %v669_v9 = vrot.slane %v668_v56, 2  ;;  %v608_v49 = vadd.f32 %v607_v6, %v606_v50  ;;  %v624_v61 = vadd.f32 %v623_v57, %v622_v63  ;;  %v639_v12 = vrot.slane %v638_v13, 1  ;;  %v4249_v14 = vld [vmem:[%s4088_s15 + $0x50] sm:$0x3] }
  0x3a   : > { %v818_v40 = vmul.f32 0.1, %v576_v55  ;;  %v655_v23 = vrot.slane %v654_v8, 1  ;;  %v686_v19 = vadd.f32 %v685_v11, %v684_v10  ;;  %v820_v7 = vmul.f32 0.1, %v592_v15  ;;  %v4253_v10 = vld [vmem:[%s4088_s15 + $0x40] sm:$0xff] }
  0x3b   : > { %3241 = vmatpush1.bf16.xpose.msra.mxu0 %v6056_v4  ;;  %v670_v24 = vadd.f32 %v669_v9, %v668_v56  ;;  %v640_v21 = vadd.f32 %v639_v12, %v638_v13  ;;  %v822_v22 = vmul.f32 0.1, %v608_v49  ;;  %v824_v25 = vmul.f32 0.1, %v624_v61  ;;  %v4260_v9 = vld [vmem:[%s4088_s15 + $0x70] sm:$0x3] }
  0x3c   : > { %3243 = vmatprep.subr.bf16.mxu0 %v6057_v17  ;;  %v561_v26 = vsel %vm560_vm0, %v4230_v5, 0.0  ;;  %v656_v57 = vadd.f32 %v655_v23, %v654_v8  ;;  %v687_v50 = vrot.slane %v686_v19, 1  ;;  %v895_v63 = vsel %vm881_vm1, %v820_v7, %v818_v40  ;;  %6058 = vst [vmem:[#allocation17_spill] sm:$0xff] %v4260_v9  ;;  %v4263_v11 = vld [vmem:[%s4088_s15 + $0x90] sm:$0x3]  ;;  %v4271_v49 = vld [vmem:[%s4088_s15 + $0x60] sm:$0xff] }
  0x3d   : > { %v671_v54 = vrot.slane %v670_v24, 1  ;;  %v826_v18 = vmul.f32 0.1, %v640_v21  ;;  %v896_v56 = vsel %vm883_vm2, %v822_v22, %v895_v63  ;;  %v562_v55 = vadd.f32 %v561_v26, %v4236_v16  ;;  %6059 = vst [vmem:[#allocation18_spill] sm:$0xff] %v4271_v49  ;;  %v4274_v61 = vld [vmem:[%s4088_s15 + $0x80] sm:$0xff] }
  0x3e   : > { %v577_v6 = vsel %vm560_vm0, %v4239_v62, 0.0  ;;  %v688_v4 = vadd.f32 %v687_v50, %v686_v19  ;;  %v828_v15 = vmul.f32 0.1, %v656_v57  ;;  %v897_v8 = vsel %vm885_vm3, %v824_v25, %v896_v56  ;;  %v4284_v22 = vld [vmem:[%s4088_s15 + $0xb0] sm:$0x3]  ;;  %v4291_v57 = vld [vmem:[%s4088_s15 + $0xa0] sm:$0xff] }
  0x3f   : > { %v672_v13 = vadd.f32 %v671_v54, %v670_v24  ;;  %v898_v17 = vsel %vm887_vm4, %v826_v18, %v897_v8  ;;  %v563_v12 = vrot.slane %v562_v55, 4  ;;  %v578_v40 = vadd.f32 %v577_v6, %v4246_v0  ;;  %v4299_v18 = vld [vmem:[%s4088_s15 + $0xd0] sm:$0x3]  ;;  %v4314_v8 = vld [vmem:[%s4088_s15 + $0xc0] sm:$0xff] }
  0x40   : > { %v593_v23 = vsel %vm560_vm0, %v4249_v14, 0.0  ;;  %v6060_v24 = vpack.c.bf16 %v3992_v28, %v3987_v27  ;;  %v832_v7 = vmul.f32 0.1, %v688_v4  ;;  %v899_v21 = vsel %vm889_vm5, %v828_v15, %v898_v17  ;;  %6062 = vst [vmem:[#allocation19_spill] sm:$0xff] %v4299_v18  ;;  %v4302_v56 = vld [vmem:[%s4088_s15 + $0xf0] sm:$0x3] }
  0x41   : > { %v830_v19 = vmul.f32 0.1, %v672_v13  ;;  %v594_v25 = vadd.f32 %v593_v23, %v4253_v10  ;;  %v6061_v26 = vpack.c.bf16 %v4002_v30, %v3997_v29  ;;  %v564_v54 = vadd.f32 %v563_v12, %v562_v55  ;;  %6063 = vst [vmem:[#allocation20_spill] sm:$0xff] %v4302_v56  ;;  %v4317_v17 = vld [vmem:[%s4088_s15 + $0xe0] sm:$0xff] }
  0x42   : > { %v579_v50 = vrot.slane %v578_v40, 4  ;;  %v609_v27 = vsel %vm560_vm0, %v4260_v9, 0.0  ;;  %v625_v28 = vsel %vm560_vm0, %v4263_v11, 0.0  ;;  %v641_v15 = vsel %vm560_vm0, %v4284_v22, 0.0  ;;  %6064 = vst [vmem:[#allocation21_spill] sm:$0xff] %v4317_v17 }
  0x43   : > { %3245 = vmatpush1.bf16.xpose.msra.mxu0 %v6060_v24  ;;  %v900_v63 = vsel %vm891_vm6, %v830_v19, %v899_v21  ;;  %v595_v29 = vrot.slane %v594_v25, 4  ;;  %v610_v30 = vadd.f32 %v609_v27, %v4271_v49  ;;  %v626_v55 = vadd.f32 %v625_v28, %v4274_v61 }
  0x44   : > { %3247 = vmatprep.subr.bf16.mxu0 %v6061_v26  ;;  %v901_v6 = vsel %vm893_vm7, %v832_v7, %v900_v63  ;;  %v565_v13 = vrot.slane %v564_v54, 2  ;;  %v580_v4 = vadd.f32 %v579_v50, %v578_v40  ;;  %v642_v19 = vadd.f32 %v641_v15, %v4291_v57 }
  0x45   : > { %984 = vmatprep.mubr.f32.mxu0 %v901_v6  ;;  %3002 = vst [vmem:[%s4310_s17 + $0x8] sm:$0xff] %v901_v6  ;;  %v596_v12 = vadd.f32 %v595_v29, %v594_v25  ;;  %v611_v23 = vrot.slane %v610_v30, 4  ;;  %v627_v24 = vrot.slane %v626_v55, 4  ;;  %v657_v40 = vsel %vm560_vm0, %v4299_v18, 0.0 }
  0x46   : > { %v566_v7 = vadd.f32 %v565_v13, %v564_v54  ;;  %v581_v21 = vrot.slane %v580_v4, 2  ;;  %v673_v26 = vsel %vm560_vm0, %v4302_v56, 0.0  ;;  %v643_v63 = vrot.slane %v642_v19, 4  ;;  %v4333_v56 = vld [vmem:[%s4088_s15 + $0x118] sm:$0x3] }
  0x47   : > { %v597_v50 = vrot.slane %v596_v12, 2  ;;  %v612_v27 = vadd.f32 %v611_v23, %v610_v30  ;;  %v628_v28 = vadd.f32 %v627_v24, %v626_v55  ;;  %v658_v25 = vadd.f32 %v657_v40, %v4314_v8 }
  0x48   : > { %v567_v6 = vrot.slane %v566_v7, 1  ;;  %v582_v49 = vadd.f32 %v581_v21, %v580_v4  ;;  %v674_v29 = vadd.f32 %v673_v26, %v4317_v17  ;;  %v6065_v54 = vpack.c.bf16 %v4013_v33, %v4008_v32 }
  0x49   : > { %v598_v13 = vadd.f32 %v597_v50, %v596_v12  ;;  %v613_v15 = vrot.slane %v612_v27, 2  ;;  %v629_v9 = vrot.slane %v628_v28, 2  ;;  %v644_v18 = vadd.f32 %v643_v63, %v642_v19 }
  0x4a   : > { %v6066_v30 = vpack.c.bf16 %v4023_v35, %v4018_v34  ;;  %v568_v55 = vadd.f32 %v567_v6, %v566_v7  ;;  %v583_v23 = vrot.slane %v582_v49, 1  ;;  %v659_v4 = vrot.slane %v658_v25, 4  ;;  %v4336_v7 = vld [vmem:[%s4088_s15 + $0x108] sm:$0xff] }
  0x4b   : > { %3249 = vmatpush1.bf16.xpose.msra.mxu0 %v6065_v54  ;;  %v675_v24 = vrot.slane %v674_v29, 4  ;;  %v599_v21 = vrot.slane %v598_v13, 1  ;;  %v614_v40 = vadd.f32 %v613_v15, %v612_v27  ;;  %v630_v26 = vadd.f32 %v629_v9, %v628_v28  ;;  %v4341_v15 = vld [vmem:[%s4088_s15 + $0x138] sm:$0x3] }
  0x4c   : > { %3251 = vmatprep.subr.bf16.mxu0 %v6066_v30  ;;  %v645_v17 = vrot.slane %v644_v18, 2  ;;  %v584_v32 = vadd.f32 %v583_v23, %v582_v49  ;;  %v660_v33 = vadd.f32 %v659_v4, %v658_v25  ;;  %v817_v19 = vmul.f32 0.1, %v568_v55  ;;  %v4348_v55 = vld [vmem:[%s4088_s15 + $0x158] sm:$0x3] }
  0x4d   : > { %v676_v12 = vadd.f32 %v675_v24, %v674_v29  ;;  %v600_v50 = vadd.f32 %v599_v21, %v598_v13  ;;  %v615_v63 = vrot.slane %v614_v40, 1  ;;  %v631_v34 = vrot.slane %v630_v26, 1  ;;  %6067 = vst [vmem:[#allocation22_spill] sm:$0xff] %v4348_v55 }
  0x4e   : > { %v646_v35 = vadd.f32 %v645_v17, %v644_v18  ;;  %v661_v6 = vrot.slane %v660_v33, 2  ;;  %v819_v27 = vmul.f32 0.1, %v584_v32  ;;  %v697_v9 = vsel %vm560_vm0, %v4333_v56, 0.0  ;;  %v4345_v17 = vld [vmem:[%s4088_s15 + $0x128] sm:$0xff] }
  0x4f   : > { %v677_v54 = vrot.slane %v676_v12, 2  ;;  %v616_v28 = vadd.f32 %v615_v63, %v614_v40  ;;  %v632_v49 = vadd.f32 %v631_v34, %v630_v26  ;;  %v821_v29 = vmul.f32 0.1, %v600_v50  ;;  %v4356_v32 = vld [vmem:[%s4088_s15 + $0x148] sm:$0xff]  ;;  %v4362_v50 = vld [vmem:[%s4088_s15 + $0x178] sm:$0x3] }
  0x50   : > { %v647_v25 = vrot.slane %v646_v35, 1  ;;  %v662_v13 = vadd.f32 %v661_v6, %v660_v33  ;;  %v882_v18 = vsel %vm881_vm1, %v819_v27, %v817_v19  ;;  %v698_v23 = vadd.f32 %v697_v9, %v4336_v7  ;;  %6069 = vst [vmem:[#allocation23_spill] sm:$0xff] %v4356_v32  ;;  %6071 = vst [vmem:[#allocation24_spill] sm:$0xff] %v4362_v50  ;;  %v4375_v9 = vld [vmem:[%s4088_s15 + $0x198] sm:$0x3] }
  0x51   : > { %v678_v30 = vadd.f32 %v677_v54, %v676_v12  ;;  %v6068_v4 = vpack.c.bf16 %v4033_v37, %v4028_v36  ;;  %v823_v21 = vmul.f32 0.1, %v616_v28  ;;  %v825_v40 = vmul.f32 0.1, %v632_v49  ;;  %v4378_v28 = vld [vmem:[%s4088_s15 + $0x1b8] sm:$0x3] }
  0x52   : > { %v648_v24 = vadd.f32 %v647_v25, %v646_v35  ;;  %v884_v26 = vsel %vm883_vm2, %v821_v29, %v882_v18  ;;  %v6070_v33 = vpack.c.bf16 %v4043_v39, %v4038_v38  ;;  %v663_v12 = vrot.slane %v662_v13, 1  ;;  %v4368_v35 = vld [vmem:[%s4088_s15 + $0x168] sm:$0xff]  ;;  %6073 = vst [vmem:[#allocation26_spill] sm:$0xff] %v4378_v28 }
  0x53   : > { %3253 = vmatpush1.bf16.xpose.msra.mxu0 %v6068_v4  ;;  %v679_v19 = vrot.slane %v678_v30, 1  ;;  %v699_v36 = vrot.slane %v698_v23, 4  ;;  %v713_v37 = vsel %vm560_vm0, %v4341_v15, 0.0  ;;  %v886_v34 = vsel %vm885_vm3, %v823_v21, %v884_v26  ;;  %6072 = vst [vmem:[#allocation25_spill] sm:$0xff] %v4368_v35  ;;  %v4382_v29 = vld [vmem:[%s4088_s15 + $0x188] sm:$0xff] }
  0x54   : > { %3255 = vmatprep.subr.bf16.mxu0 %v6070_v33  ;;  %v827_v63 = vmul.f32 0.1, %v648_v24  ;;  %v714_v6 = vadd.f32 %v713_v37, %v4345_v17  ;;  %v729_v38 = vsel %vm560_vm0, %v4348_v55, 0.0  ;;  %v664_v39 = vadd.f32 %v663_v12, %v662_v13  ;;  %v4388_v21 = vld [vmem:[%s4088_s15 + $0x1a8] sm:$0xff] }
  0x55   : > { %v680_v54 = vadd.f32 %v679_v19, %v678_v30  ;;  %v888_v27 = vsel %vm887_vm4, %v825_v40, %v886_v34  ;;  %v700_v49 = vadd.f32 %v699_v36, %v698_v23  ;;  %v730_v4 = vadd.f32 %v729_v38, %v4356_v32  ;;  %6074 = vst [vmem:[#allocation27_spill] sm:$0xff] %v4388_v21  ;;  %v4392_v23 = vld [vmem:[%s4088_s15 + $0x1d8] sm:$0x3] }
  0x56   : > { %v890_v25 = vsel %vm889_vm5, %v827_v63, %v888_v27  ;;  %v715_v18 = vrot.slane %v714_v6, 4  ;;  %v745_v13 = vsel %vm560_vm0, %v4362_v50, 0.0  ;;  %v829_v24 = vmul.f32 0.1, %v664_v39  ;;  %6075 = vst [vmem:[#allocation28_spill] sm:$0xff] %v4392_v23  ;;  %v4400_v63 = vld [vmem:[%s4088_s15 + $0x1c8] sm:$0xff] }
  0x57   : > { %v831_v30 = vmul.f32 0.1, %v680_v54  ;;  %v701_v40 = vrot.slane %v700_v49, 2  ;;  %v746_v26 = vadd.f32 %v745_v13, %v4368_v35  ;;  %v731_v12 = vrot.slane %v730_v4, 4  ;;  %6076 = vst [vmem:[#allocation29_spill] sm:$0xff] %v4400_v63 }
  0x58   : > { %v716_v33 = vadd.f32 %v715_v18, %v714_v6  ;;  %v761_v19 = vsel %vm560_vm0, %v4375_v9, 0.0  ;;  %v777_v36 = vsel %vm560_vm0, %v4378_v28, 0.0  ;;  %v892_v37 = vsel %vm891_vm6, %v829_v24, %v890_v25  ;;  %v4410_v27 = vld [vmem:[%s4088_s15 + $0x1f8] sm:$0x3]  ;;  %v4427_v50 = vld [vmem:[%s4088_s15 + $0x110] sm:$0x3] }
  0x59   : > { %v702_v34 = vadd.f32 %v701_v40, %v700_v49  ;;  %v747_v38 = vrot.slane %v746_v26, 4  ;;  %v762_v39 = vadd.f32 %v761_v19, %v4382_v29  ;;  %v6077_v6 = vpack.c.bf16 %v4053_v42, %v4048_v41  ;;  %6078 = vst [vmem:[#allocation30_spill] sm:$0xff] %v4410_v27 }
  0x5a   : > { %v4407_v54 = vsel %vm893_vm7, %v831_v30, %v892_v37  ;;  %v717_v18 = vrot.slane %v716_v33, 2  ;;  %v732_v13 = vadd.f32 %v731_v12, %v730_v4  ;;  %v778_v25 = vadd.f32 %v777_v36, %v4388_v21  ;;  %v4421_v30 = vld [vmem:[%s4088_s15 + $0x1e8] sm:$0xff] }
  0x5b   : > { %3257 = vmatpush1.bf16.xpose.msra.mxu0 %v6077_v6  ;;  %v6079_v24 = vpack.c.bf16 %v4063_v44, %v4058_v43  ;;  %3001 = vst [vmem:[%s4310_s17] sm:$0xff] %v4407_v54  ;;  %v703_v49 = vrot.slane %v702_v34, 1  ;;  %v748_v40 = vadd.f32 %v747_v38, %v746_v26  ;;  %v763_v41 = vrot.slane %v762_v39, 4  ;;  %6080 = vst [vmem:[#allocation31_spill] sm:$0xff] %v4421_v30 }
  0x5c   : > { %v793_v42 = vsel %vm560_vm0, %v4392_v23, 0.0  ;;  %v718_v19 = vadd.f32 %v717_v18, %v716_v33  ;;  %v733_v37 = vrot.slane %v732_v13, 2  ;;  %v779_v4 = vrot.slane %v778_v25, 4 }
  0x5d   : > { %3259 = vmatprep.subr.bf16.mxu0 %v6079_v24  ;;  %v794_v12 = vadd.f32 %v793_v42, %v4400_v63  ;;  %v704_v36 = vadd.f32 %v703_v49, %v702_v34  ;;  %v749_v6 = vrot.slane %v748_v40, 2  ;;  %v764_v43 = vadd.f32 %v763_v41, %v762_v39  ;;  %v4431_v39 = vld [vmem:[%s4088_s15 + $0x100] sm:$0xff] }
  0x5e   : > { %v809_v44 = vsel %vm560_vm0, %v4410_v27, 0.0  ;;  %v719_v26 = vrot.slane %v718_v19, 1  ;;  %v734_v38 = vadd.f32 %v733_v37, %v732_v13  ;;  %v780_v24 = vadd.f32 %v779_v4, %v778_v25 }
  0x5f   : > { %v795_v35 = vrot.slane %v794_v12, 4  ;;  %v750_v23 = vadd.f32 %v749_v6, %v748_v40  ;;  %v765_v21 = vrot.slane %v764_v43, 2  ;;  %v810_v33 = vadd.f32 %v809_v44, %v4421_v30  ;;  %v4442_v6 = vld [vmem:[%s4088_s15 + $0x130] sm:$0x3] }
  0x60   : > { %v834_v18 = vmul.f32 0.1, %v704_v36  ;;  %v720_v28 = vadd.f32 %v719_v26, %v718_v19  ;;  %v735_v42 = vrot.slane %v734_v38, 1  ;;  %v781_v34 = vrot.slane %v780_v24, 2 }
  0x61   : > { %v796_v49 = vadd.f32 %v795_v35, %v794_v12  ;;  %v751_v41 = vrot.slane %v750_v23, 1  ;;  %v766_v27 = vadd.f32 %v765_v21, %v764_v43  ;;  %v811_v63 = vrot.slane %v810_v33, 4 }
  0x62   : > { %v689_v13 = vsel %vm560_vm0, %v4427_v50, 0.0  ;;  %v6081_v25 = vpack.c.bf16 %v4073_v46, %v4068_v45  ;;  %v736_v40 = vadd.f32 %v735_v42, %v734_v38  ;;  %v782_v37 = vadd.f32 %v781_v34, %v780_v24  ;;  %v4447_v38 = vld [vmem:[%s4088_s15 + $0x120] sm:$0xff] }
  0x63   : > { %v797_v19 = vrot.slane %v796_v49, 2  ;;  %v836_v4 = vmul.f32 0.1, %v720_v28  ;;  %v6082_v35 = vpack.c.bf16 %v4083_v48, %v4078_v47  ;;  %v752_v12 = vadd.f32 %v751_v41, %v750_v23  ;;  %v4450_v48 = vld [vmem:[%s4088_s15 + $0x150] sm:$0x3]  ;;  %v4454_v34 = vld [vmem:[%s4088_s15 + $0x140] sm:$0xff] }
  0x64   : > { %3261 = vmatpush1.bf16.xpose.msra.mxu0 %v6081_v25  ;;  %v767_v21 = vrot.slane %v766_v27, 1  ;;  %v812_v36 = vadd.f32 %v811_v63, %v810_v33  ;;  %v690_v43 = vadd.f32 %v689_v13, %v4431_v39  ;;  %v783_v45 = vrot.slane %v782_v37, 1  ;;  %6083 = vst [vmem:[#allocation32_spill] sm:$0xff] %v4454_v34  ;;  %v4460_v13 = vld [vmem:[%s4088_s15 + $0x170] sm:$0x3] }
  0x65   : > { %3263 = vmatprep.subr.bf16.mxu0 %v6082_v35  ;;  %v798_v46 = vadd.f32 %v797_v19, %v796_v49  ;;  %v838_v44 = vmul.f32 0.1, %v736_v40  ;;  %v909_v26 = vsel %vm881_vm1, %v836_v4, %v834_v18  ;;  %v840_v47 = vmul.f32 0.1, %v752_v12  ;;  %6084 = vst [vmem:[#allocation33_spill] sm:$0xff] %v4460_v13 }
  0x66   : > { %v768_v28 = vadd.f32 %v767_v21, %v766_v27  ;;  %v813_v24 = vrot.slane %v812_v36, 2  ;;  %v691_v23 = vrot.slane %v690_v43, 4  ;;  %v784_v63 = vadd.f32 %v783_v45, %v782_v37  ;;  %v4463_v37 = vld [vmem:[%s4088_s15 + $0x160] sm:$0xff]  ;;  %v4473_v45 = vld [vmem:[%s4088_s15 + $0x1b0] sm:$0x3] }
  0x67   : > { %v799_v33 = vrot.slane %v798_v46, 1  ;;  %v910_v42 = vsel %vm883_vm2, %v838_v44, %v909_v26  ;;  %v705_v18 = vsel %vm560_vm0, %v4442_v6, 0.0  ;;  %6085 = vst [vmem:[#allocation34_spill] sm:$0xff] %v4463_v37  ;;  %v721_v35 = vsel %vm560_vm0, %v4450_v48, 0.0  ;;  %6086 = vst [vmem:[#allocation35_spill] sm:$0xff] %v4473_v45 }
  0x68   : > { %v814_v49 = vadd.f32 %v813_v24, %v812_v36  ;;  %v842_v41 = vmul.f32 0.1, %v768_v28  ;;  %v911_v27 = vsel %vm885_vm3, %v840_v47, %v910_v42  ;;  %v692_v25 = vadd.f32 %v691_v23, %v690_v43  ;;  %v4470_v36 = vld [vmem:[%s4088_s15 + $0x190] sm:$0x3]  ;;  %v4489_v42 = vld [vmem:[%s4088_s15 + $0x1a0] sm:$0xff] }
  0x69   : > { %v800_v40 = vadd.f32 %v799_v33, %v798_v46  ;;  %v844_v19 = vmul.f32 0.1, %v784_v63  ;;  %v706_v4 = vadd.f32 %v705_v18, %v4447_v38  ;;  %v722_v46 = vadd.f32 %v721_v35, %v4454_v34  ;;  %v4486_v33 = vld [vmem:[%s4088_s15 + $0x180] sm:$0xff]  ;;  %6089 = vst [vmem:[#allocation36_spill] sm:$0xff] %v4489_v42 }
  0x6a   : > { %v815_v12 = vrot.slane %v814_v49, 1  ;;  %v912_v21 = vsel %vm887_vm4, %v842_v41, %v911_v27  ;;  %v693_v43 = vrot.slane %v692_v25, 2  ;;  %v6087_v44 = vpack.c.bf16 %v4102_v52, %v4097_v51  ;;  %v4492_v51 = vld [vmem:[%s4088_s15 + $0x1d0] sm:$0x3] }
  0x6b   : > { %v846_v26 = vmul.f32 0.1, %v800_v40  ;;  %v913_v28 = vsel %vm889_vm5, %v844_v19, %v912_v21  ;;  %v707_v24 = vrot.slane %v706_v4, 4  ;;  %v737_v47 = vsel %vm560_vm0, %v4460_v13, 0.0  ;;  %6090 = vst [vmem:[#allocation37_spill] sm:$0xff] %v4492_v51 }
  0x6c   : > { %3265 = vmatpush1.bf16.xpose.msra.mxu0 %v6087_v44  ;;  %v6088_v23 = vpack.c.bf16 %v4120_v58, %v4107_v53  ;;  %v816_v63 = vadd.f32 %v815_v12, %v814_v49  ;;  %v694_v52 = vadd.f32 %v693_v43, %v692_v25  ;;  %v723_v18 = vrot.slane %v722_v46, 4  ;;  %v4501_v49 = vld [vmem:[%s4088_s15 + $0x1c0] sm:$0xff]  ;;  %v4504_v21 = vld [vmem:[%s4088_s15 + $0x1f0] sm:$0x3] }
  0x6d   : > { %v738_v41 = vadd.f32 %v737_v47, %v4463_v37  ;;  %v914_v27 = vsel %vm891_vm6, %v846_v26, %v913_v28  ;;  %v708_v40 = vadd.f32 %v707_v24, %v706_v4  ;;  %v753_v19 = vsel %vm560_vm0, %v4470_v36, 0.0  ;;  %6091 = vst [vmem:[#allocation38_spill] sm:$0xff] %v4501_v49  ;;  %6092 = vst [vmem:[#allocation39_spill] sm:$0xff] %v4504_v21 }
  0x6e   : > { %3267 = vmatprep.subr.bf16.mxu0 %v6088_v23  ;;  %v769_v53 = vsel %vm560_vm0, %v4473_v45, 0.0  ;;  %v848_v58 = vmul.f32 0.1, %v816_v63  ;;  %v695_v35 = vrot.slane %v694_v52, 1  ;;  %v724_v12 = vadd.f32 %v723_v18, %v722_v46  ;;  %v4516_v46 = vld [vmem:[%s4088_s15 + $0x1e0] sm:$0xff] }
  0x6f   : > { %v739_v25 = vrot.slane %v738_v41, 4  ;;  %v709_v43 = vrot.slane %v708_v40, 2  ;;  %v754_v44 = vadd.f32 %v753_v19, %v4486_v33  ;;  %v770_v4 = vadd.f32 %v769_v53, %v4489_v42  ;;  %6093 = vst [vmem:[#allocation40_spill] sm:$0xff] %v4516_v46 }
  0x70   : > { %v785_v26 = vsel %vm560_vm0, %v4492_v51, 0.0  ;;  %v4511_v28 = vsel %vm893_vm7, %v848_v58, %v914_v27  ;;  %v696_v24 = vadd.f32 %v695_v35, %v694_v52  ;;  %v725_v47 = vrot.slane %v724_v12, 2  ;;  %v415_v52 = vld [vmem:[%s5999_s1 + $0x180] sm:$0xff] }
  0x71   : > { %v740_v23 = vadd.f32 %v739_v25, %v738_v41  ;;  %3004 = vst [vmem:[%s4310_s17 + $0x18] sm:$0xff] %v4511_v28  ;;  %v710_v63 = vadd.f32 %v709_v43, %v708_v40  ;;  %v755_v18 = vrot.slane %v754_v44, 4  ;;  %v771_v30 = vrot.slane %v770_v4, 4  ;;  %v417_v41 = vld [vmem:[%s5999_s1 + $0x190] sm:$0xff] }
  0x72   : > { %v786_v19 = vadd.f32 %v785_v26, %v4501_v49  ;;  %v726_v37 = vadd.f32 %v725_v47, %v724_v12  ;;  %v801_v13 = vsel %vm560_vm0, %v4504_v21, 0.0  ;;  %v6094_v27 = vpack.c.bf16 %v4130_v60, %v4125_v59  ;;  %v420_v47 = vld [vmem:[%s5999_s1 + $0x1a8] sm:$0xff] }
  0x73   : > { %v741_v53 = vrot.slane %v740_v23, 2  ;;  %v711_v40 = vrot.slane %v710_v63, 1  ;;  %v756_v58 = vadd.f32 %v755_v18, %v754_v44  ;;  %v772_v35 = vadd.f32 %v771_v30, %v770_v4 }
  0x74   : > { %3269 = vmatpush1.bf16.xpose.msra.mxu0 %v6094_v27  ;;  %v787_v12 = vrot.slane %v786_v19, 4  ;;  %v6095_v25 = vpack.c.bf16 %v4148_v2, %v4143_v1  ;;  %v727_v43 = vrot.slane %v726_v37, 1  ;;  %v802_v59 = vadd.f32 %v801_v13, %v4516_v46  ;;  %v422_v27 = vld [vmem:[%s5999_s1 + $0x1b8] sm:$0xff] }
  0x75   : > { %v742_v26 = vadd.f32 %v741_v53, %v740_v23  ;;  %v833_v60 = vmul.f32 0.1, %v696_v24  ;;  %v712_v44 = vadd.f32 %v711_v40, %v710_v63  ;;  %v757_v30 = vrot.slane %v756_v58, 2 }
  0x76   : > { %3271 = vmatprep.subr.bf16.mxu0 %v6095_v25  ;;  %v773_v4 = vrot.slane %v772_v35, 2  ;;  %v788_v18 = vadd.f32 %v787_v12, %v786_v19  ;;  %v3272_v21 = vpack.c.bf16 %v417_v41, %v415_v52  ;;  %v728_v1 = vadd.f32 %v727_v43, %v726_v37 }
  0x77   : > { %v743_v2 = vrot.slane %v742_v26, 1  ;;  %v803_v25 = vrot.slane %v802_v59, 4  ;;  %v758_v23 = vadd.f32 %v757_v30, %v756_v58  ;;  %v835_v24 = vmul.f32 0.1, %v712_v44  ;;  %v419_v58 = vld [vmem:[%s5999_s1 + $0x1a0] sm:$0xff]  ;;  %v425_v30 = vld [vmem:[%s5999_s1 + $0x1d0] sm:$0xff] }
  0x78   : > { %v774_v53 = vadd.f32 %v773_v4, %v772_v35  ;;  %v789_v13 = vrot.slane %v788_v18, 2  ;;  %v3274_v46 = vpack.c.bf16 %v422_v27, %v420_v47  ;;  %v837_v42 = vmul.f32 0.1, %v728_v1  ;;  %v421_v35 = vld [vmem:[%s5999_s1 + $0x1b0] sm:$0xff]  ;;  %v430_v1 = vld [vmem:[%s5999_s1 + $0x1f8] sm:$0xff] }
  0x79   : > { %v744_v49 = vadd.f32 %v743_v2, %v742_v26  ;;  %v804_v51 = vadd.f32 %v803_v25, %v802_v59  ;;  %v759_v45 = vrot.slane %v758_v23, 1  ;;  %v902_v63 = vsel %vm881_vm1, %v835_v24, %v833_v60 }
  0x7a   : > { %v775_v32 = vrot.slane %v774_v53, 1  ;;  %v790_v34 = vadd.f32 %v789_v13, %v788_v18  ;;  %v903_v19 = vsel %vm883_vm2, %v837_v42, %v902_v63  ;;  %v424_v42 = vld [vmem:[%s5999_s1 + $0x1c8] sm:$0xff]  ;;  %v3276_v26 = vpack.c.bf16 %v421_v35, %v419_v58 }
  0x7b   : > { %v805_v40 = vrot.slane %v804_v51, 2  ;;  %v839_v55 = vmul.f32 0.1, %v744_v49  ;;  %v760_v37 = vadd.f32 %v759_v45, %v758_v23  ;;  %v428_v18 = vld [vmem:[%s5999_s1 + $0x1e8] sm:$0xff]  ;;  %v427_v23 = vld [vmem:[%s5999_s1 + $0x1e0] sm:$0xff] }
  0x7c   : > { %3273 = vmatpush1.bf16.xpose.msra.mxu0 %v3272_v21  ;;  %v776_v52 = vadd.f32 %v775_v32, %v774_v53  ;;  %v791_v41 = vrot.slane %v790_v34, 1  ;;  %v426_v32 = vld [vmem:[%s5999_s1 + $0x1d8] sm:$0xff]  ;;  %v3282_v25 = vpack.c.bf16 %v430_v1, %v428_v18  ;;  %v429_v53 = vld [vmem:[%s5999_s1 + $0x1f0] sm:$0xff]  ;;  %v3802_v24 = vmov 1966171168  }
  0x7d   : > { %3275 = vmatprep.subr.bf16.mxu0 %v3274_v46  ;;  %v806_v12 = vadd.f32 %v805_v40, %v804_v51  ;;  %v904_v43 = vsel %vm885_vm3, %v839_v55, %v903_v19  ;;  %v841_v49 = vmul.f32 0.1, %v760_v37  ;;  %v3278_v51 = vpack.c.bf16 %v426_v32, %v424_v42 }
  0x7e   : > { %v792_v45 = vadd.f32 %v791_v41, %v790_v34  ;;  %v843_v21 = vmul.f32 0.1, %v776_v52  ;;  %v423_v34 = vld [vmem:[%s5999_s1 + $0x1c0] sm:$0xff]  ;;  %v3284_v13 = vpack.c.bf16 %v429_v53, %v427_v23  ;;  %v1004_v63 = vunpack.c.l.s4 %v3802_v24 }
  0x7f   : > { %v807_v46 = vrot.slane %v806_v12, 1  ;;  %v905_v60 = vsel %vm887_vm4, %v841_v49, %v904_v43  ;;  %v3280_v2 = vpack.c.bf16 %v425_v30, %v423_v34  ;;  %v1006_v40 = vlaneseq }
  0x80   : > { %v845_v59 = vmul.f32 0.1, %v792_v45  ;;  %v906_v55 = vsel %vm889_vm5, %v843_v21, %v905_v60  ;;  %v1005_v19 = vunpack.c.0.s8 %v1004_v63  ;;  %v6096_v63 = vld [vmem:[#allocation9_spill] sm:$0xff] }
  0x81   : > { %v808_v47 = vadd.f32 %v807_v46, %v806_v12  ;;  %v4581_v37 = vshrl.u32 %v1006_v40, 7 }
  0x82   : > { %v907_v27 = vsel %vm891_vm6, %v845_v59, %v906_v55 }
  0x83   : > { %v847_v44 = vmul.f32 0.1, %v808_v47  ;;  %v4584_v41 = vsub.s32 %v1005_v19, %v4581_v37  ;;  %v4592_v42 = vsub.s32 1, %v4581_v37 }
  0x84   : > { %3277 = vmatpush1.bf16.xpose.msra.mxu0 %v3276_v26 }
  0x85   : > { %3279 = vmatprep.subr.bf16.mxu0 %v3278_v51  ;;  %v908_v4 = vsel %vm893_vm7, %v847_v44, %v907_v27 }
  0x86   : > { %3003 = vst [vmem:[%s4310_s17 + $0x10] sm:$0xff] %v908_v4  ;;  %s3678_s17 = scalar_lea.vmem %s5869_s19, 512 }
  0x87   : > { %p3679_p11 = scmp.ne.s32.totalorder %s5869_s19, %s3678_s17 }
  0x89   : > { %p3680_p12 = pnand %p3679_p11, %p3889_p5 }
  0x8b   : > { %p3681_p13 = pneg %p3680_p12 }
  0x8c   : > { %3281 = vmatpush1.bf16.xpose.msra.mxu0 %v3280_v2 }
  0x8d   : > { %3283 = vmatprep.subr.bf16.mxu0 %v3282_v25 }
  0x94   : > { %3285 = vmatpush1.bf16.xpose.msra.mxu0 %v3284_v13 }
  0x9b   : > { %985 = vmatmul.mubr.f32.vlgmr.msra.gmra.mrb[0].mxu0 %v4407_v54 }
  0x9c   : > { %990 = vmatprep.mubr.f32.mxu0 %v4511_v28  ;;  %v4589_v28 = vsub.s32 0, %v4581_v37 }
  0x9f   : > { %991 = vmatmul.mubr.f32.gmra.mrb[2].mxu0 %v908_v4 }
 0x16e   : > { %v986_v52 = vpop.f32.mrb[0].mxu0 }
 0x16f   : > { %v988_v58 = vpop.f32.mrb[1].mxu0 }
 0x170   : > { %v1001_v35 = vcombine.low %v986_v52, %v988_v58  ;;  %v1002_v12 = vcombine.high %v986_v52, %v988_v58  ;;  %v6097_v58 = vld [vmem:[#allocation10_spill] sm:$0xff] }
 0x172   : > { %v1009_v43 = vrot.slane %v1001_v35, %v4584_v41  ;;  %v1016_v54 = vrot.slane %v1002_v12, %v4584_v41  ;;  %v4594_v32 = vpop.f32.mrb[2].mxu0  ;;  %v6098_v12 = vld [vmem:[#allocation11_spill] sm:$0xff] }
 0x173   : > { %v4596_v45 = vpop.f32.mrb[3].mxu0 }
 0x174   : > { %v1017_v49 = vcombine.high %v1009_v43, %v1009_v43  ;;  %v1025_v21 = vrot.slane %v1009_v43, %v4584_v41  ;;  %v1032_v46 = vrot.slane %v1016_v54, %v4584_v41  ;;  %v1051_v26 = vcombine.low %v4594_v32, %v4596_v45 }
 0x175   : > { %v1052_v59 = vcombine.high %v4594_v32, %v4596_v45  ;;  %v1018_v18 = vcombine.high %v1016_v54, %v1016_v54 }
 0x176   : > { %v1039_v60 = vrot.slane %v1017_v49, %v4584_v41  ;;  %v1104_v51 = vrot.slane %v1025_v21, %v4589_v28  ;;  %v1108_v47 = vrot.slane %v1025_v21, %v4592_v42  ;;  %v1136_v55 = vrot.slane %v1032_v46, %v4589_v28 }
 0x177   : > { %v1140_v27 = vrot.slane %v1032_v46, %v4592_v42  ;;  %v1047_v25 = vcombine.high %v1025_v21, %v1025_v21  ;;  %v1046_v43 = vrot.slane %v1018_v18, %v4584_v41 }
 0x178   : > { %v1261_v44 = vmul.f32 %v1104_v51, %v4236_v16  ;;  %v1262_v34 = vmul.f32 %v1108_v47, %v4151_v3  ;;  %v1112_v30 = vrot.slane %v1039_v60, %v4589_v28  ;;  %v1116_v4 = vrot.slane %v1039_v60, %v4592_v42 }
 0x179   : > { %v1279_v1 = vmul.f32 %v1136_v55, %v4263_v11  ;;  %v1280_v2 = vmul.f32 %v1140_v27, %v4191_v31  ;;  %v1277_v53 = vmul.f32 %v1136_v55, %v4274_v61  ;;  %v1278_v13 = vmul.f32 %v1140_v27, %v4188_v20 }
 0x17a   : > { %v1325_v23 = vadd.f32 %v1262_v34, %v1261_v44  ;;  %v1263_v24 = vmul.f32 %v1104_v51, %v4230_v5  ;;  %v1264_v19 = vmul.f32 %v1108_v47, %v6096_v63  ;;  %v1265_v11 = vmul.f32 %v1112_v30, %v4246_v0  ;;  %v6099_v47 = vld [vmem:[#allocation13_spill] sm:$0xff] }
 0x17b   : > { %v1360_v16 = vsel %vm560_vm0, %v1279_v1, 0.0  ;;  %v1361_v3 = vsel %vm560_vm0, %v1280_v2, 0.0  ;;  %v1266_v31 = vmul.f32 %v1116_v4, %v6097_v58  ;;  %v1267_v35 = vmul.f32 %v1112_v30, %v4239_v62  ;;  %v6100_v30 = vld [vmem:[#allocation12_spill] sm:$0xff] }
 0x17c   : > { %1326 = vadd.xlane.f32.xlu0 %v1325_v23  ;;  %v1362_v52 = vadd.f32 %v1361_v3, %v1360_v16  ;;  %v1268_v61 = vmul.f32 %v1116_v4, %v6098_v12  ;;  %v1120_v20 = vrot.slane %v1047_v25, %v4589_v28  ;;  %v1124_v5 = vrot.slane %v1047_v25, %v4592_v42  ;;  %v6101_v16 = vld [vmem:[#allocation15_spill] sm:$0xff] }
 0x17d   : > { %v1357_v54 = vadd.f32 %v1278_v13, %v1277_v53  ;;  %v1328_v49 = vsel %vm560_vm0, %v1263_v24, 0.0  ;;  %v1329_v21 = vsel %vm560_vm0, %v1264_v19, 0.0  ;;  %v1333_v0 = vadd.f32 %v1266_v31, %v1265_v11  ;;  %v6103_v12 = vld [vmem:[#allocation19_spill] sm:$0xff] }
 0x17e   : > { %1363 = vadd.xlane.f32.xlu1 %v1362_v52  ;;  %v1271_v51 = vmul.f32 %v1120_v20, %v4249_v14  ;;  %v1272_v62 = vmul.f32 %v1124_v5, %v6099_v47  ;;  %v1330_v55 = vadd.f32 %v1329_v21, %v1328_v49  ;;  %v1336_v27 = vsel %vm560_vm0, %v1267_v35, 0.0  ;;  %v6104_v49 = vld [vmem:[#allocation16_spill] sm:$0xff] }
 0x17f   : > { %v1337_v44 = vsel %vm560_vm0, %v1268_v61, 0.0  ;;  %v1269_v34 = vmul.f32 %v1120_v20, %v4253_v10  ;;  %v1270_v4 = vmul.f32 %v1124_v5, %v6100_v30  ;;  %v1144_v18 = vrot.slane %v1046_v43, %v4589_v28  ;;  %v3609_v20 = vld [vmem:[%s4088_s15 + $0xd8] sm:$0x3] }
 0x180   : > { %1358 = vadd.xlane.f32.xlu0 %v1357_v54  ;;  %v1148_v1 = vrot.slane %v1046_v43, %v4592_v42  ;;  %v1059_v2 = vrot.slane %v1051_v26, %v4584_v41  ;;  %v1048_v25 = vcombine.high %v1032_v46, %v1032_v46  ;;  %v1338_v14 = vadd.f32 %v1337_v44, %v1336_v27  ;;  %v6102_v26 = vld [vmem:[#allocation14_spill] sm:$0xff] }
 0x181   : > { %v1344_v23 = vsel %vm560_vm0, %v1271_v51, 0.0  ;;  %v1345_v53 = vsel %vm560_vm0, %v1272_v62, 0.0  ;;  %v1049_v13 = vcombine.high %v1039_v60, %v1039_v60  ;;  %v1283_v24 = vmul.f32 %v1144_v18, %v4284_v22 }
 0x182   : > { %1334 = vadd.xlane.f32.xlu1 %v1333_v0  ;;  %v1284_v10 = vmul.f32 %v1148_v1, %v6101_v16  ;;  %v1152_v3 = vrot.slane %v1048_v25, %v4589_v28  ;;  %v1156_v63 = vrot.slane %v1048_v25, %v4592_v42  ;;  %v1341_v19 = vadd.f32 %v1270_v4, %v1269_v34  ;;  %v3610_v34 = vld [vmem:[%s4088_s15 + $0x78] sm:$0x3] }
 0x183   : > { %v1281_v46 = vmul.f32 %v1144_v18, %v4291_v57  ;;  %v1282_v52 = vmul.f32 %v1148_v1, %v6102_v26  ;;  %v4648_v11 = vrot.slane %v1059_v2, %v4584_v41  ;;  %v1346_v60 = vadd.f32 %v1345_v53, %v1344_v23  ;;  %v6106_v1 = vld [vmem:[#allocation18_spill] sm:$0xff] }
 0x184   : > { %1331 = vadd.xlane.f32.xlu0 %v1330_v55  ;;  %v1128_v22 = vrot.slane %v1049_v13, %v4589_v28  ;;  %v1132_v58 = vrot.slane %v1049_v13, %v4592_v42  ;;  %v1368_v31 = vsel %vm560_vm0, %v1283_v24, 0.0  ;;  %v1369_v35 = vsel %vm560_vm0, %v1284_v10, 0.0  ;;  %v6105_v55 = vld [vmem:[#allocation17_spill] sm:$0xff] }
 0x185   : > { %v1287_v61 = vmul.f32 %v1152_v3, %v6103_v12  ;;  %v1288_v57 = vmul.f32 %v3609_v20, %v1156_v63  ;;  %v1365_v5 = vadd.f32 %v1282_v52, %v1281_v46  ;;  %v1285_v54 = vmul.f32 %v1152_v3, %v4314_v8  ;;  %v6107_v52 = vld [vmem:[#allocation20_spill] sm:$0xff] }
 0x186   : > { %1339 = vadd.xlane.f32.xlu1 %v1338_v14  ;;  %v1286_v21 = vmul.f32 %v1156_v63, %v6104_v49  ;;  %v1168_v0 = vrot.slane %v4648_v11, %v4589_v28  ;;  %v1172_v51 = vrot.slane %v4648_v11, %v4592_v42  ;;  %v1066_v47 = vrot.slane %v1052_v59, %v4584_v41  ;;  %v3611_v14 = vld [vmem:[%s4088_s15 + $0x68] sm:$0xff] }
 0x187   : > { %v1370_v62 = vadd.f32 %v1369_v35, %v1368_v31  ;;  %v1275_v27 = vmul.f32 %v1128_v22, %v6105_v55  ;;  %v1376_v8 = vsel %vm560_vm0, %v1287_v61, 0.0  ;;  %v1377_v44 = vsel %vm560_vm0, %v1288_v57, 0.0  ;;  %v6108_v35 = vld [vmem:[#allocation21_spill] sm:$0xff]  ;;  %v3613_v61 = vld [vmem:[%s4088_s15 + $0xe8] sm:$0xff] }
 0x188   : > { %1342 = vadd.xlane.f32.xlu0 %v1341_v19  ;;  %v1276_v30 = vmul.f32 %v3610_v34, %v1132_v58  ;;  %v1050_v4 = vcombine.high %v1046_v43, %v1046_v43  ;;  %v1373_v18 = vadd.f32 %v1286_v21, %v1285_v54  ;;  %v1273_v25 = vmul.f32 %v1128_v22, %v6106_v1  ;;  %v3612_v22 = vld [vmem:[%s4088_s15 + $0xf8] sm:$0x3] }
 0x189   : > { %v1274_v23 = vmul.f32 %v3611_v14, %v1132_v58  ;;  %v1067_v53 = vcombine.high %v1059_v2, %v1059_v2  ;;  %v1295_v32 = vmul.f32 %v1168_v0, %v4427_v50  ;;  %v1296_v45 = vmul.f32 %v1172_v51, %v4333_v56 }
 0x18a   : > { %1347 = vadd.xlane.f32.xlu1 %v1346_v60  ;;  %v1082_v59 = vrot.slane %v1066_v47, %v4584_v41  ;;  %v1378_v13 = vadd.f32 %v1377_v44, %v1376_v8  ;;  %v1293_v24 = vmul.f32 %v1168_v0, %v4431_v39  ;;  %v1294_v16 = vmul.f32 %v1172_v51, %v4336_v7 }
 0x18b   : > { %v1352_v43 = vsel %vm560_vm0, %v1275_v27, 0.0  ;;  %v1353_v10 = vsel %vm560_vm0, %v1276_v30, 0.0  ;;  %v1160_v3 = vrot.slane %v1050_v4, %v4589_v28  ;;  %v1164_v2 = vrot.slane %v1050_v4, %v4592_v42 }
 0x18c   : > { %1366 = vadd.xlane.f32.xlu0 %v1365_v5  ;;  %v1349_v56 = vadd.f32 %v1274_v23, %v1273_v25  ;;  %v4682_v50 = vrot.slane %v1067_v53, %v4584_v41  ;;  %v1392_v63 = vsel %vm560_vm0, %v1295_v32, 0.0  ;;  %v1393_v39 = vsel %vm560_vm0, %v1296_v45, 0.0  ;;  %v6109_v53 = vld [vmem:[#allocation22_spill] sm:$0xff] }
 0x18d   : > { %v1354_v7 = vadd.f32 %v1353_v10, %v1352_v43  ;;  %v1389_v19 = vadd.f32 %v1294_v16, %v1293_v24  ;;  %v1200_v46 = vrot.slane %v1082_v59, %v4589_v28  ;;  %v1204_v26 = vrot.slane %v1082_v59, %v4592_v42  ;;  %v6112_v43 = vld [vmem:[#allocation35_spill] sm:$0xff] }
 0x18e   : > { %1371 = vadd.xlane.f32.xlu1 %v1370_v62  ;;  %v1291_v60 = vmul.f32 %v1160_v3, %v6107_v52  ;;  %v1292_v58 = vmul.f32 %v3612_v22, %v1164_v2  ;;  %v1394_v31 = vadd.f32 %v1393_v39, %v1392_v63  ;;  %v1289_v12 = vmul.f32 %v1160_v3, %v6108_v35  ;;  %v6117_v35 = vld [vmem:[#allocation28_spill] sm:$0xff] }
 0x18f   : > { %v1290_v20 = vmul.f32 %v3613_v61, %v1164_v2  ;;  %v1068_v57 = vcombine.high %v1066_v47, %v1066_v47  ;;  %v1311_v5 = vmul.f32 %v1200_v46, %v4470_v36  ;;  %v1312_v54 = vmul.f32 %v1204_v26, %v4375_v9 }
 0x190   : > { %1374 = vadd.xlane.f32.xlu0 %v1373_v18  ;;  %v1176_v49 = vrot.slane %v4682_v50, %v4589_v28  ;;  %v1384_v21 = vsel %vm560_vm0, %v1291_v60, 0.0  ;;  %v1385_v0 = vsel %vm560_vm0, %v1292_v58, 0.0  ;;  %v1180_v51 = vrot.slane %v4682_v50, %v4592_v42  ;;  %v6116_v58 = vld [vmem:[#allocation37_spill] sm:$0xff] }
 0x191   : > { %v1097_v62 = vcombine.high %v4648_v11, %v4648_v11  ;;  %v1381_v47 = vadd.f32 %v1290_v20, %v1289_v12  ;;  %v1309_v55 = vmul.f32 %v1200_v46, %v4486_v33  ;;  %v1310_v36 = vmul.f32 %v1204_v26, %v4382_v29  ;;  %v6115_v26 = vld [vmem:[#allocation27_spill] sm:$0xff] }
 0x192   : > { %1379 = vadd.xlane.f32.xlu1 %v1378_v13  ;;  %v1096_v9 = vrot.slane %v1068_v57, %v4584_v41  ;;  %v1386_v27 = vadd.f32 %v1385_v0, %v1384_v21  ;;  %v1424_v8 = vsel %vm560_vm0, %v1311_v5, 0.0  ;;  %v1425_v44 = vsel %vm560_vm0, %v1312_v54, 0.0  ;;  %v6118_v54 = vld [vmem:[#allocation38_spill] sm:$0xff]  ;;  %v6119_v21 = vld [vmem:[#allocation29_spill] sm:$0xff] }
 0x193   : > { %v1299_v34 = vmul.f32 %v1176_v49, %v4442_v6  ;;  %v1300_v30 = vmul.f32 %v1180_v51, %v4341_v15  ;;  %v1184_v11 = vrot.slane %v1097_v62, %v4589_v28  ;;  %v1188_v4 = vrot.slane %v1097_v62, %v4592_v42 }
 0x194   : > { %1350 = vadd.xlane.f32.xlu0 %v1349_v56  ;;  %v1421_v33 = vadd.f32 %v1310_v36, %v1309_v55  ;;  %v1297_v29 = vmul.f32 %v1176_v49, %v4447_v38  ;;  %v1298_v41 = vmul.f32 %v1180_v51, %v4345_v17  ;;  %v1426_v18 = vadd.f32 %v1425_v44, %v1424_v8  ;;  %v6110_v38 = vld [vmem:[#allocation32_spill] sm:$0xff]  ;;  %v6111_v17 = vld [vmem:[#allocation23_spill] sm:$0xff]  ;;  %v6113_v56 = vld [vmem:[#allocation26_spill] sm:$0xff] }
 0x195   : > { %v1208_v1 = vrot.slane %v1096_v9, %v4589_v28  ;;  %v1212_v25 = vrot.slane %v1096_v9, %v4592_v42  ;;  %v1098_v14 = vcombine.high %v1082_v59, %v1082_v59  ;;  %v1400_v6 = vsel %vm560_vm0, %v1299_v34, 0.0  ;;  %v6120_v55 = vld [vmem:[#allocation33_spill] sm:$0xff] }
 0x196   : > { %1355 = vadd.xlane.f32.xlu1 %v1354_v7  ;;  %v1401_v15 = vsel %vm560_vm0, %v1300_v30, 0.0  ;;  %v1303_v23 = vmul.f32 %v1184_v11, %v4450_v48  ;;  %v1304_v32 = vmul.f32 %v1188_v4, %v6109_v53  ;;  %v1397_v45 = vadd.f32 %v1298_v41, %v1297_v29  ;;  %v6122_v30 = vld [vmem:[#allocation34_spill] sm:$0xff] }
 0x197   : > { %v1301_v13 = vmul.f32 %v1184_v11, %v6110_v38  ;;  %v1302_v24 = vmul.f32 %v1188_v4, %v6111_v17  ;;  %v1402_v16 = vadd.f32 %v1401_v15, %v1400_v6  ;;  %v1315_v10 = vmul.f32 %v1208_v1, %v6112_v43  ;;  %v6123_v4 = vld [vmem:[#allocation25_spill] sm:$0xff] }
 0x198   : > { %1390 = vadd.xlane.f32.xlu0 %v1389_v19  ;;  %v1216_v59 = vrot.slane %v1098_v14, %v4589_v28  ;;  %v1220_v3 = vrot.slane %v1098_v14, %v4592_v42  ;;  %v1408_v2 = vsel %vm560_vm0, %v1303_v23, 0.0  ;;  %v1409_v48 = vsel %vm560_vm0, %v1304_v32, 0.0  ;;  %v6114_v19 = vld [vmem:[#allocation36_spill] sm:$0xff]  ;;  %v6125_v14 = vld [vmem:[#allocation30_spill] sm:$0xff]  ;;  %v6127_v32 = vld [vmem:[#allocation31_spill] sm:$0xff] }
 0x199   : > { %v1316_v63 = vmul.f32 %v1212_v25, %v6113_v56  ;;  %v1099_v39 = vcombine.high %v4682_v50, %v4682_v50  ;;  %v1405_v7 = vadd.f32 %v1302_v24, %v1301_v13  ;;  %v1313_v46 = vmul.f32 %v1208_v1, %v6114_v19  ;;  %v6124_v1 = vld [vmem:[#allocation39_spill] sm:$0xff]  ;;  %v6126_v23 = vld [vmem:[#allocation40_spill] sm:$0xff] }
 0x19a   : > { %1395 = vadd.xlane.f32.xlu1 %v1394_v31  ;;  %v1314_v52 = vmul.f32 %v1212_v25, %v6115_v26  ;;  %v1410_v60 = vadd.f32 %v1409_v48, %v1408_v2  ;;  %v1432_v22 = vsel %vm560_vm0, %v1315_v10, 0.0  ;;  %v1319_v31 = vmul.f32 %v1216_v59, %v6116_v58 }
 0x19b   : > { %v1320_v12 = vmul.f32 %v1220_v3, %v6117_v35  ;;  %v1433_v61 = vsel %vm560_vm0, %v1316_v63, 0.0  ;;  %v1192_v20 = vrot.slane %v1099_v39, %v4589_v28  ;;  %v1196_v50 = vrot.slane %v1099_v39, %v4592_v42 }
 0x19c   : > { %1382 = vadd.xlane.f32.xlu0 %v1381_v47  ;;  %v1100_v57 = vcombine.high %v1096_v9, %v1096_v9  ;;  %v1429_v5 = vadd.f32 %v1314_v52, %v1313_v46  ;;  %v1317_v49 = vmul.f32 %v1216_v59, %v6118_v54  ;;  %v1318_v0 = vmul.f32 %v1220_v3, %v6119_v21 }
 0x19d   : > { %v1434_v51 = vadd.f32 %v1433_v61, %v1432_v22  ;;  %v1440_v62 = vsel %vm560_vm0, %v1319_v31, 0.0  ;;  %v1441_v47 = vsel %vm560_vm0, %v1320_v12, 0.0  ;;  %v1307_v36 = vmul.f32 %v1192_v20, %v6120_v55 }
 0x19e   : > { %1387 = vadd.xlane.f32.xlu1 %v1386_v27  ;;  %v6121_v27 = vld [vmem:[#allocation24_spill] sm:$0xff]  ;;  %v1224_v44 = vrot.slane %v1100_v57, %v4589_v28  ;;  %v1228_v9 = vrot.slane %v1100_v57, %v4592_v42  ;;  %v1437_v34 = vadd.f32 %v1318_v0, %v1317_v49  ;;  %v1305_v11 = vmul.f32 %v1192_v20, %v6122_v30 }
 0x19f   : > { %v1308_v8 = vmul.f32 %v1196_v50, %v6121_v27  ;;  %v1442_v29 = vadd.f32 %v1441_v47, %v1440_v62  ;;  %v1416_v41 = vsel %vm560_vm0, %v1307_v36, 0.0  ;;  %v1486_v56 = vand.u32 127, %v1006_v40 }
 0x1a0   : > { %1422 = vadd.xlane.f32.xlu0 %v1421_v33  ;;  %v1306_v33 = vmul.f32 %v1196_v50, %v6123_v4  ;;  %v1323_v25 = vmul.f32 %v1224_v44, %v6124_v1  ;;  %v1324_v6 = vmul.f32 %v1228_v9, %v6125_v14  ;;  %v1321_v53 = vmul.f32 %v1224_v44, %v6126_v23 }
 0x1a1   : > { %v4777_v26 = vsub.s32 %v1486_v56, %v4581_v37 }
 0x1a2   : > { %1427 = vadd.xlane.f32.xlu1 %v1426_v18  ;;  %v1417_v18 = vsel %vm560_vm0, %v1308_v8, 0.0  ;;  %v1413_v15 = vadd.f32 %v1306_v33, %v1305_v11  ;;  %v1448_v13 = vsel %vm560_vm0, %v1323_v25, 0.0  ;;  %v1449_v17 = vsel %vm560_vm0, %v1324_v6, 0.0 }
 0x1a3   : > { %v1418_v38 = vadd.f32 %v1417_v18, %v1416_v41 }
 0x1a4   : > { %1398 = vadd.xlane.f32.xlu0 %v1397_v45  ;;  %v1322_v45 = vmul.f32 %v1228_v9, %v6127_v32 }
 0x1a6   : > { %1403 = vadd.xlane.f32.xlu1 %v1402_v16  ;;  %v1445_v24 = vadd.f32 %v1322_v45, %v1321_v53  ;;  %v1450_v16 = vadd.f32 %v1449_v17, %v1448_v13 }
 0x1a8   : > { %1406 = vadd.xlane.f32.xlu0 %v1405_v7  ;;  %v1491_v7 = vadd.s32 4294967288, %v1486_v56 }
 0x1aa   : > { %1411 = vadd.xlane.f32.xlu1 %v1410_v60  ;;  %v4780_v52 = vsub.s32 %v1491_v7, %v4581_v37 }
 0x1ac   : > { %1430 = vadd.xlane.f32.xlu0 %v1429_v5 }
 0x1ae   : > { %1435 = vadd.xlane.f32.xlu1 %v1434_v51 }
 0x1b0   : > { %1438 = vadd.xlane.f32.xlu0 %v1437_v34 }
 0x1b2   : > { %1443 = vadd.xlane.f32.xlu1 %v1442_v29 }
 0x1b4   : > { %1414 = vadd.xlane.f32.xlu0 %v1413_v15 }
 0x1b6   : > { %1419 = vadd.xlane.f32.xlu1 %v1418_v38 }
 0x1b8   : > { %1446 = vadd.xlane.f32.xlu0 %v1445_v24 }
 0x1ba   : > { %1451 = vadd.xlane.f32.xlu1 %v1450_v16 }
 0x209   : > { %v4755_v43 = vpop.xlane.xlu0 %1326 }
 0x20a   : > { %v1490_v12 = vrot.slane %v4755_v43, %v4777_v26 }
 0x20b   : > { %v4757_v10 = vpop.xlane.xlu1 %1363 }
 0x20c   : > { %v1532_v51 = vrot.slane %v4757_v10, %v4780_v52 }
 0x20d   : > { %v4759_v59 = vpop.xlane.xlu0 %1358 }
 0x20e   : > { %v1528_v54 = vrot.slane %v4759_v59, %v4777_v26 }
 0x20f   : > { %v4761_v3 = vpop.xlane.xlu1 %1334 }
 0x210   : > { %v1501_v61 = vrot.slane %v4761_v3, %v4777_v26  ;;  %v1533_v44 = vsel %vm1496_vm8, %v1532_v51, %v1528_v54 }
 0x211   : > { %v4763_v2 = vpop.xlane.xlu0 %1331 }
 0x212   : > { %v1495_v40 = vrot.slane %v4763_v2, %v4780_v52 }
 0x213   : > { %v4765_v48 = vpop.xlane.xlu1 %1339 }
 0x214   : > { %v1505_v22 = vrot.slane %v4765_v48, %v4780_v52  ;;  %v1497_v50 = vsel %vm1496_vm8, %v1495_v40, %v1490_v12 }
 0x215   : > { %v4768_v63 = vpop.xlane.xlu0 %1342 }
 0x216   : > { %v1510_v58 = vrot.slane %v4768_v63, %v4777_v26  ;;  %v1506_v57 = vsel %vm1496_vm8, %v1505_v22, %v1501_v61 }
 0x217   : > { %v4770_v39 = vpop.xlane.xlu1 %1347  ;;  %v1633_v62 = vsel %vm881_vm1, %v1506_v57, %v1497_v50 }
 0x218   : > { %v1514_v31 = vrot.slane %v4770_v39, %v4780_v52 }
 0x219   : > { %v4772_v19 = vpop.xlane.xlu0 %1366 }
 0x21a   : > { %v1515_v49 = vsel %vm1496_vm8, %v1514_v31, %v1510_v58  ;;  %v1537_v36 = vrot.slane %v4772_v19, %v4777_v26 }
 0x21b   : > { %v4774_v46 = vpop.xlane.xlu1 %1371  ;;  %v1634_v55 = vsel %vm883_vm2, %v1515_v49, %v1633_v62 }
 0x21c   : > { %v1541_v27 = vrot.slane %v4774_v46, %v4780_v52 }
 0x21d   : > { %v4782_v60 = vpop.xlane.xlu0 %1374 }
 0x21e   : > { %v1546_v11 = vrot.slane %v4782_v60, %v4777_v26  ;;  %v1542_v29 = vsel %vm1496_vm8, %v1541_v27, %v1537_v36 }
 0x21f   : > { %v4792_v35 = vpop.xlane.xlu1 %1379 }
 0x220   : > { %v1550_v4 = vrot.slane %v4792_v35, %v4780_v52 }
 0x221   : > { %v4798_v20 = vpop.xlane.xlu0 %1350 }
 0x222   : > { %v1519_v5 = vrot.slane %v4798_v20, %v4777_v26  ;;  %v1551_v6 = vsel %vm1496_vm8, %v1550_v4, %v1546_v11 }
 0x223   : > { %v4807_v21 = vpop.xlane.xlu1 %1355 }
 0x224   : > { %v1523_v0 = vrot.slane %v4807_v21, %v4780_v52 }
 0x225   : > { %v4814_v47 = vpop.xlane.xlu0 %1390 }
 0x226   : > { %v1524_v8 = vsel %vm1496_vm8, %v1523_v0, %v1519_v5  ;;  %v1564_v61 = vrot.slane %v4814_v47, %v4777_v26 }
 0x227   : > { %v1635_v9 = vsel %vm885_vm3, %v1524_v8, %v1634_v55  ;;  %v4824_v34 = vpop.xlane.xlu1 %1395 }
 0x228   : > { %v1636_v30 = vsel %vm887_vm4, %v1533_v44, %v1635_v9  ;;  %v1568_v50 = vrot.slane %v4824_v34, %v4780_v52 }
 0x229   : > { %v4831_v33 = vpop.xlane.xlu0 %1382  ;;  %v1637_v1 = vsel %vm889_vm5, %v1542_v29, %v1636_v30 }
 0x22a   : > { %v1555_v41 = vrot.slane %v4831_v33, %v4777_v26  ;;  %v1638_v23 = vsel %vm891_vm6, %v1551_v6, %v1637_v1  ;;  %v1569_v55 = vsel %vm1496_vm8, %v1568_v50, %v1564_v61  ;;  %v3803_v50 = vmov 0  }
 0x22b   : > { %v4836_v18 = vpop.xlane.xlu1 %1387  ;;  %3500 = vset.pattern.permute.xlu1 %v3803_v50  ;;  %3499 = vset.pattern.permute.xlu0 %v3803_v50 }
 0x22c   : > { %v1559_v25 = vrot.slane %v4836_v18, %v4780_v52 }
 0x22d   : > { %v4841_v14 = vpop.xlane.xlu0 %1422 }
 0x22e   : > { %v1560_v15 = vsel %vm1496_vm8, %v1559_v25, %v1555_v41  ;;  %v1600_v49 = vrot.slane %v4841_v14, %v4777_v26 }
 0x22f   : > { %v4846_v53 = vpop.xlane.xlu1 %1427  ;;  %v1639_v32 = vsel %vm893_vm7, %v1560_v15, %v1638_v23 }
 0x230   : > { %v1650_v45 = vsel %vm1649_vm9, %v1639_v32, -inf  ;;  %v1604_v0 = vrot.slane %v4846_v53, %v4780_v52 }
 0x231   : > { %1651 = vmax.xlane.f32.xlu0 %v1650_v45  ;;  %v4850_v38 = vpop.xlane.xlu0 %1398 }
 0x232   : > { %v1573_v40 = vrot.slane %v4850_v38, %v4777_v26  ;;  %v1605_v1 = vsel %vm1496_vm8, %v1604_v0, %v1600_v49  ;;  %v4924_v49 = vsub.s32 4, %v4581_v37 }
 0x233   : > { %v4852_v13 = vpop.xlane.xlu1 %1403 }
 0x234   : > { %v1577_v22 = vrot.slane %v4852_v13, %v4780_v52 }
 0x235   : > { %v4854_v17 = vpop.xlane.xlu0 %1406 }
 0x236   : > { %v1582_v58 = vrot.slane %v4854_v17, %v4777_v26  ;;  %v1578_v5 = vsel %vm1496_vm8, %v1577_v22, %v1573_v40 }
 0x237   : > { %v4856_v24 = vpop.xlane.xlu1 %1411  ;;  %v1640_v44 = vsel %vm881_vm1, %v1578_v5, %v1569_v55 }
 0x238   : > { %v1586_v31 = vrot.slane %v4856_v24, %v4780_v52 }
 0x239   : > { %v4858_v16 = vpop.xlane.xlu0 %1430 }
 0x23a   : > { %v1587_v51 = vsel %vm1496_vm8, %v1586_v31, %v1582_v58  ;;  %v1609_v36 = vrot.slane %v4858_v16, %v4777_v26 }
 0x23b   : > { %v4860_v56 = vpop.xlane.xlu1 %1435  ;;  %v1641_v4 = vsel %vm883_vm2, %v1587_v51, %v1640_v44  ;;  %v4937_v44 = vsub.s32 2, %v4581_v37 }
 0x23c   : > { %v1613_v27 = vrot.slane %v4860_v56, %v4780_v52 }
 0x23d   : > { %v4862_v7 = vpop.xlane.xlu0 %1438 }
 0x23e   : > { %v1618_v9 = vrot.slane %v4862_v7, %v4777_v26  ;;  %v1614_v15 = vsel %vm1496_vm8, %v1613_v27, %v1609_v36  ;;  %v4930_v36 = vsub.s32 5, %v4581_v37 }
 0x23f   : > { %v4872_v12 = vpop.xlane.xlu1 %1443 }
 0x240   : > { %v1622_v30 = vrot.slane %v4872_v12, %v4780_v52 }
 0x241   : > { %v4878_v57 = vpop.xlane.xlu0 %1414 }
 0x242   : > { %v1591_v54 = vrot.slane %v4878_v57, %v4777_v26  ;;  %v1623_v45 = vsel %vm1496_vm8, %v1622_v30, %v1618_v9 }
 0x243   : > { %v4888_v62 = vpop.xlane.xlu1 %1419 }
 0x244   : > { %v1595_v8 = vrot.slane %v4888_v62, %v4780_v52 }
 0x245   : > { %v4902_v11 = vpop.xlane.xlu0 %1446 }
 0x246   : > { %v1596_v29 = vsel %vm1496_vm8, %v1595_v8, %v1591_v54  ;;  %v1627_v41 = vrot.slane %v4902_v11, %v4777_v26 }
 0x247   : > { %v1642_v25 = vsel %vm885_vm3, %v1596_v29, %v1641_v4  ;;  %v4910_v6 = vpop.xlane.xlu1 %1451  ;;  %v4940_v4 = vsub.s32 6, %v4581_v37 }
 0x248   : > { %v1631_v23 = vrot.slane %v4910_v6, %v4780_v52  ;;  %v1643_v32 = vsel %vm887_vm4, %v1605_v1, %v1642_v25  ;;  %v4950_v1 = vsub.s32 7, %v4581_v37 }
 0x249   : > { %v1644_v40 = vsel %vm889_vm5, %v1614_v15, %v1643_v32  ;;  %v4958_v32 = vsub.s32 3, %v4581_v37 }
 0x24a   : > { %v1632_v22 = vsel %vm1496_vm8, %v1631_v23, %v1627_v41  ;;  %v1645_v58 = vsel %vm891_vm6, %v1623_v45, %v1644_v40 }
 0x24b   : > { %v1646_v31 = vsel %vm893_vm7, %v1632_v22, %v1645_v58 }
 0x24c   : > { %v1653_v61 = vsel %vm1649_vm9, %v1646_v31, -inf }
 0x24d   : > { %1654 = vmax.xlane.f32.xlu1 %v1653_v61 }
 0x2be   : > { %v1652_v5 = vpop.xlane.xlu0 %1651 }
 0x2bf   : > { %v1661_v54 = vrot.slane %v1652_v5, %v4589_v28  ;;  %v1665_v0 = vrot.slane %v1652_v5, %v4592_v42  ;;  %v4933_v27 = vrot.slane %v1652_v5, %v4924_v49  ;;  %v4953_v15 = vrot.slane %v1652_v5, %v4940_v4 }
 0x2c0   : > { %v4962_v45 = vrot.slane %v1652_v5, %v4950_v1 }
 0x2c1   : > { %v1738_v51 = vsub.f32 %v4755_v43, %v1661_v54  ;;  %v1739_v55 = vsub.f32 %v4763_v2, %v1661_v54  ;;  %v1740_v8 = vsub.f32 %v4761_v3, %v1665_v0  ;;  %v1741_v43 = vsub.f32 %v4765_v48, %v1665_v0 }
 0x2c2   : > { %v4944_v2 = vrot.slane %v1652_v5, %v4930_v36  ;;  %v1747_v29 = vsub.f32 %v4757_v10, %v4933_v27  ;;  %v1669_v3 = vrot.slane %v1652_v5, %v4937_v44  ;;  %v1751_v40 = vsub.f32 %v4792_v35, %v4953_v15 }
 0x2c3   : > { %v1770_v9 = vmul.f32 1.442695, %v1738_v51  ;;  %v1772_v30 = vmul.f32 1.442695, %v1739_v55  ;;  %v1774_v41 = vmul.f32 1.442695, %v1740_v8 }
 0x2c4   : > { %v1776_v25 = vmul.f32 1.442695, %v1741_v43  ;;  %v1749_v48 = vsub.f32 %v4774_v46, %v4944_v2  ;;  %v1788_v23 = vmul.f32 1.442695, %v1747_v29  ;;  %v1742_v10 = vsub.f32 %v4768_v63, %v1669_v3 }
 0x2c5   : > { %3501 = vpow2.f32 %v1770_v9  ;;  %v1673_v46 = vrot.slane %v1652_v5, %v4958_v32  ;;  %v1743_v31 = vsub.f32 %v4770_v39, %v1669_v3  ;;  %v1753_v63 = vsub.f32 %v4836_v18, %v4962_v45 }
 0x2c6   : > { %3503 = vpow2.f32 %v1772_v30  ;;  %v1792_v22 = vmul.f32 1.442695, %v1749_v48  ;;  %v1778_v61 = vmul.f32 1.442695, %v1742_v10  ;;  %v1796_v35 = vmul.f32 1.442695, %v1751_v40 }
 0x2c7   : > { %3505 = vpow2.f32 %v1774_v41  ;;  %v1744_v50 = vsub.f32 %v4798_v20, %v1673_v46  ;;  %v1780_v54 = vmul.f32 1.442695, %v1743_v31  ;;  %v1800_v39 = vmul.f32 1.442695, %v1753_v63 }
 0x2c8   : > { %3507 = vpow2.f32 %v1776_v25  ;;  %v1745_v51 = vsub.f32 %v4807_v21, %v1673_v46  ;;  %v1746_v21 = vsub.f32 %v4759_v59, %v4933_v27  ;;  %v1748_v59 = vsub.f32 %v4772_v19, %v4944_v2 }
 0x2c9   : > { %3509 = vpow2.f32 %v1788_v23  ;;  %v1782_v55 = vmul.f32 1.442695, %v1744_v50  ;;  %v1750_v19 = vsub.f32 %v4782_v60, %v4953_v15  ;;  %v1752_v60 = vsub.f32 %v4831_v33, %v4962_v45 }
 0x2ca   : > { %3511 = vpow2.f32 %v1792_v22  ;;  %v1784_v30 = vmul.f32 1.442695, %v1745_v51  ;;  %v1790_v2 = vmul.f32 1.442695, %v1748_v59 }
 0x2cb   : > { %3513 = vpow2.f32 %v1778_v61  ;;  %v1794_v15 = vmul.f32 1.442695, %v1750_v19 }
 0x2cc   : > { %3515 = vpow2.f32 %v1796_v35 }
 0x2cd   : > { %3517 = vpow2.f32 %v1780_v54  ;;  %v1798_v54 = vmul.f32 1.442695, %v1752_v60 }
 0x2ce   : > { %3519 = vpow2.f32 %v1800_v39 }
 0x2cf   : > { %v4966_v58 = vpop.eup %3501  ;;  %3521 = vpow2.f32 %v1782_v55 }
 0x2d0   : > { %v4970_v37 = vpop.eup %3503  ;;  %1867 = vperm.xlu0 %3499, %v4966_v58   ;;  %3523 = vpow2.f32 %v1784_v30 }
 0x2d1   : > { %1870 = vperm.xlu1 %3500, %v4970_v37   ;;  %v4977_v0 = vpop.eup %3505 }
 0x2d2   : > { %v4980_v5 = vpop.eup %3507 }
 0x2d3   : > { %v4983_v8 = vpop.eup %3509 }
 0x2d4   : > { %1894 = vperm.xlu0 %3499, %v4983_v8   ;;  %v4998_v29 = vpop.eup %3511 }
 0x2d5   : > { %1873 = vperm.xlu1 %3500, %v4977_v0   ;;  %v5000_v41 = vpop.eup %3513 }
 0x2d6   : > { %v5012_v48 = vpop.eup %3515 }
 0x2d7   : > { %v5014_v23 = vpop.eup %3517 }
 0x2d8   : > { %1900 = vperm.xlu0 %3499, %v4998_v29   ;;  %v5026_v22 = vpop.eup %3519 }
 0x2d9   : > { %1876 = vperm.xlu1 %3500, %v4980_v5   ;;  %v5028_v46 = vpop.eup %3521 }
 0x2da   : > { %v4985_v18 = vpop.xlane.xlu1 %1654  ;;  %v5040_v63 = vpop.eup %3523 }
 0x2db   : > { %v1693_v20 = vrot.slane %v4985_v18, %v4589_v28  ;;  %v4993_v9 = vrot.slane %v4985_v18, %v4592_v42  ;;  %v5005_v3 = vrot.slane %v4985_v18, %v4937_v44  ;;  %v5019_v10 = vrot.slane %v4985_v18, %v4958_v32 }
 0x2dc   : > { %1906 = vperm.xlu0 %3499, %v5012_v48   ;;  %v5033_v31 = vrot.slane %v4985_v18, %v4924_v49  ;;  %v5044_v35 = vrot.slane %v4985_v18, %v4930_v36  ;;  %v1717_v51 = vrot.slane %v4985_v18, %v4940_v4 }
 0x2dd   : > { %v1755_v43 = vsub.f32 %v4824_v34, %v1693_v20  ;;  %v1757_v25 = vsub.f32 %v4852_v13, %v4993_v9  ;;  %1879 = vperm.xlu1 %3500, %v5000_v41   ;;  %v1786_v34 = vmul.f32 1.442695, %v1746_v21  ;;  %v1759_v13 = vsub.f32 %v4856_v24, %v5005_v3 }
 0x2de   : > { %v1761_v24 = vsub.f32 %v4888_v62, %v5019_v10  ;;  %v1763_v50 = vsub.f32 %v4846_v53, %v5033_v31  ;;  %v1754_v39 = vsub.f32 %v4814_v47, %v1693_v20  ;;  %v1765_v53 = vsub.f32 %v4860_v56, %v5044_v35 }
 0x2df   : > { %v1804_v27 = vmul.f32 1.442695, %v1755_v43  ;;  %v1808_v40 = vmul.f32 1.442695, %v1757_v25  ;;  %v1812_v61 = vmul.f32 1.442695, %v1759_v13  ;;  %v1756_v47 = vsub.f32 %v4850_v38, %v4993_v9 }
 0x2e0   : > { %1912 = vperm.xlu0 %3499, %v5026_v22   ;;  %v1816_v62 = vmul.f32 1.442695, %v1761_v24  ;;  %v1820_v55 = vmul.f32 1.442695, %v1763_v50  ;;  %v1802_v20 = vmul.f32 1.442695, %v1754_v39  ;;  %v1721_v43 = vrot.slane %v4985_v18, %v4950_v1 }
 0x2e1   : > { %3525 = vpow2.f32 %v1804_v27  ;;  %1882 = vperm.xlu1 %3500, %v5014_v23   ;;  %v1767_v56 = vsub.f32 %v4872_v12, %v1717_v51  ;;  %v1824_v25 = vmul.f32 1.442695, %v1765_v53  ;;  %v1758_v59 = vsub.f32 %v4854_v17, %v5005_v3 }
 0x2e2   : > { %3527 = vpow2.f32 %v1786_v34  ;;  %v1806_v38 = vmul.f32 1.442695, %v1756_v47  ;;  %v1769_v27 = vsub.f32 %v4910_v6, %v1721_v43  ;;  %v1760_v12 = vsub.f32 %v4878_v57, %v5019_v10 }
 0x2e3   : > { %3529 = vpow2.f32 %v1808_v40  ;;  %v1828_v18 = vmul.f32 1.442695, %v1767_v56  ;;  %v1810_v13 = vmul.f32 1.442695, %v1758_v59  ;;  %v1762_v6 = vsub.f32 %v4841_v14, %v5033_v31 }
 0x2e4   : > { %3531 = vpow2.f32 %v1790_v2  ;;  %v1832_v40 = vmul.f32 1.442695, %v1769_v27  ;;  %v1814_v19 = vmul.f32 1.442695, %v1760_v12  ;;  %v1764_v10 = vsub.f32 %v4858_v16, %v5044_v35 }
 0x2e5   : > { %1885 = vperm.xlu1 %3500, %v5028_v46   ;;  %3533 = vpow2.f32 %v1812_v61  ;;  %v1818_v24 = vmul.f32 1.442695, %v1762_v6  ;;  %v1766_v14 = vsub.f32 %v4862_v7, %v1717_v51  ;;  %v1768_v16 = vsub.f32 %v4902_v11, %v1721_v43 }
 0x2e6   : > { %3535 = vpow2.f32 %v1794_v15  ;;  %v1822_v31 = vmul.f32 1.442695, %v1764_v10 }
 0x2e7   : > { %3537 = vpow2.f32 %v1816_v62  ;;  %v1826_v35 = vmul.f32 1.442695, %v1766_v14  ;;  %v1830_v7 = vmul.f32 1.442695, %v1768_v16 }
 0x2e8   : > { %3539 = vpow2.f32 %v1798_v54 }
 0x2e9   : > { %1888 = vperm.xlu1 %3500, %v5040_v63   ;;  %3541 = vpow2.f32 %v1820_v55 }
 0x2ea   : > { %3543 = vpow2.f32 %v1802_v20 }
 0x2eb   : > { %v5050_v33 = vpop.eup %3525  ;;  %3545 = vpow2.f32 %v1824_v25 }
 0x2ec   : > { %v5052_v45 = vpop.eup %3527  ;;  %1918 = vperm.xlu0 %3499, %v5050_v33   ;;  %3547 = vpow2.f32 %v1806_v38 }
 0x2ed   : > { %1891 = vperm.xlu1 %3500, %v5052_v45   ;;  %v5062_v21 = vpop.eup %3529  ;;  %3549 = vpow2.f32 %v1828_v18 }
 0x2ee   : > { %v5064_v30 = vpop.eup %3531  ;;  %3551 = vpow2.f32 %v1810_v13 }
 0x2ef   : > { %v5073_v9 = vpop.eup %3533  ;;  %3553 = vpow2.f32 %v1832_v40 }
 0x2f0   : > { %1924 = vperm.xlu0 %3499, %v5062_v21   ;;  %v5075_v34 = vpop.eup %3535  ;;  %3555 = vpow2.f32 %v1814_v19 }
 0x2f1   : > { %1897 = vperm.xlu1 %3500, %v5064_v30   ;;  %v5082_v17 = vpop.eup %3537  ;;  %3557 = vpow2.f32 %v1818_v24 }
 0x2f2   : > { %v5084_v3 = vpop.eup %3539  ;;  %3559 = vpow2.f32 %v1822_v31 }
 0x2f3   : > { %v5090_v2 = vpop.eup %3541  ;;  %3561 = vpow2.f32 %v1826_v35 }
 0x2f4   : > { %1930 = vperm.xlu0 %3499, %v5073_v9   ;;  %v5092_v57 = vpop.eup %3543  ;;  %3563 = vpow2.f32 %v1830_v7 }
 0x2f5   : > { %1903 = vperm.xlu1 %3500, %v5075_v34   ;;  %v5098_v61 = vpop.eup %3545 }
 0x2f6   : > { %v5100_v60 = vpop.eup %3547 }
 0x2f7   : > { %v5105_v15 = vpop.eup %3549 }
 0x2f8   : > { %1936 = vperm.xlu0 %3499, %v5082_v17   ;;  %6128 = vst [vmem:[#allocation9_spill] sm:$0xff] %v5105_v15  ;;  %v5107_v50 = vpop.eup %3551 }
 0x2f9   : > { %1909 = vperm.xlu1 %3500, %v5084_v3   ;;  %v5112_v62 = vpop.eup %3553 }
 0x2fa   : > { %6129 = vst [vmem:[#allocation10_spill] sm:$0xff] %v5112_v62  ;;  %v5114_v54 = vpop.eup %3555 }
 0x2fb   : > { %v5118_v39 = vpop.eup %3557 }
 0x2fc   : > { %1942 = vperm.xlu0 %3499, %v5090_v2   ;;  %v5121_v51 = vpop.eup %3559 }
 0x2fd   : > { %1915 = vperm.xlu1 %3500, %v5092_v57   ;;  %6130 = vst [vmem:[#allocation11_spill] sm:$0xff] %v5121_v51  ;;  %v5124_v11 = vpop.eup %3561 }
 0x2fe   : > { %6131 = vst [vmem:[#allocation13_spill] sm:$0xff] %v5124_v11  ;;  %v5127_v53 = vpop.eup %3563 }
 0x2ff   : > { %6132 = vst [vmem:[#allocation12_spill] sm:$0xff] %v5127_v53 }
 0x300   : > { %1948 = vperm.xlu0 %3499, %v5098_v61  }
 0x301   : > { %1921 = vperm.xlu1 %3500, %v5100_v60  }
 0x304   : > { %1954 = vperm.xlu0 %3499, %v5105_v15  }
 0x305   : > { %1927 = vperm.xlu1 %3500, %v5107_v50  }
 0x308   : > { %1960 = vperm.xlu0 %3499, %v5112_v62  }
 0x309   : > { %1933 = vperm.xlu1 %3500, %v5114_v54  }
 0x30d   : > { %1939 = vperm.xlu1 %3500, %v5118_v39  }
 0x311   : > { %1945 = vperm.xlu1 %3500, %v5121_v51  }
 0x315   : > { %1951 = vperm.xlu1 %3500, %v5124_v11  }
 0x319   : > { %1957 = vperm.xlu1 %3500, %v5127_v53  }
 0x34f   : > { %v1868_v47 = vpop.permute.xlu0 %1867 }
 0x350   : > { %v1871_v55 = vpop.permute.xlu1 %1870  ;;  %v1965_v31 = vrot.slane %v1868_v47, %v4777_v26 }
 0x351   : > { %v1969_v14 = vrot.slane %v1871_v55, %v4780_v52 }
 0x353   : > { %v1895_v43 = vpop.permute.xlu0 %1894 }
 0x354   : > { %v1874_v20 = vpop.permute.xlu1 %1873  ;;  %v2005_v51 = vrot.slane %v1895_v43, %v4780_v52 }
 0x355   : > { %v1974_v16 = vrot.slane %v1874_v20, %v4777_v26  ;;  %v1970_v20 = vsel %vm1496_vm8, %v1969_v14, %v1965_v31 }
 0x357   : > { %v1901_v25 = vpop.permute.xlu0 %1900 }
 0x358   : > { %v1877_v56 = vpop.permute.xlu1 %1876 }
 0x359   : > { %v1978_v19 = vrot.slane %v1877_v56, %v4780_v52 }
 0x35b   : > { %v1907_v27 = vpop.permute.xlu0 %1906  ;;  %v1979_v62 = vsel %vm1496_vm8, %v1978_v19, %v1974_v16 }
 0x35c   : > { %v1880_v59 = vpop.permute.xlu1 %1879  ;;  %v2106_v15 = vsel %vm881_vm1, %v1979_v62, %v1970_v20  ;;  %v2023_v19 = vrot.slane %v1907_v27, %v4780_v52 }
 0x35d   : > { %v1983_v7 = vrot.slane %v1880_v59, %v4777_v26 }
 0x35f   : > { %v1913_v12 = vpop.permute.xlu0 %1912 }
 0x360   : > { %v1883_v38 = vpop.permute.xlu1 %1882  ;;  %v2032_v16 = vrot.slane %v1913_v12, %v4780_v52 }
 0x361   : > { %v1987_v10 = vrot.slane %v1883_v38, %v4780_v52 }
 0x363   : > { %v1988_v55 = vsel %vm1496_vm8, %v1987_v10, %v1983_v7 }
 0x364   : > { %v1886_v18 = vpop.permute.xlu1 %1885 }
 0x365   : > { %v1992_v56 = vrot.slane %v1886_v18, %v4777_v26 }
 0x368   : > { %v1889_v13 = vpop.permute.xlu1 %1888 }
 0x369   : > { %v1996_v35 = vrot.slane %v1889_v13, %v4780_v52  ;;  %v2014_v13 = vrot.slane %v1901_v25, %v4780_v52 }
 0x36b   : > { %v5130_v6 = vpop.permute.xlu0 %1918  ;;  %v1997_v59 = vsel %vm1496_vm8, %v1996_v35, %v1992_v56 }
 0x36c   : > { %v1892_v40 = vpop.permute.xlu1 %1891 }
 0x36d   : > { %v2001_v53 = vrot.slane %v1892_v40, %v4777_v26 }
 0x36f   : > { %v1925_v11 = vpop.permute.xlu0 %1924  ;;  %v2006_v18 = vsel %vm1496_vm8, %v2005_v51, %v2001_v53 }
 0x370   : > { %v1898_v24 = vpop.permute.xlu1 %1897 }
 0x371   : > { %v2010_v38 = vrot.slane %v1898_v24, %v4777_v26  ;;  %v2107_v24 = vsel %vm883_vm2, %v1988_v55, %v2106_v15 }
 0x372   : > { %v2108_v10 = vsel %vm885_vm3, %v1997_v59, %v2107_v24 }
 0x373   : > { %v2015_v43 = vsel %vm1496_vm8, %v2014_v13, %v2010_v38  ;;  %v1931_v31 = vpop.permute.xlu0 %1930  ;;  %v2109_v35 = vsel %vm887_vm4, %v2006_v18, %v2108_v10 }
 0x374   : > { %v1904_v47 = vpop.permute.xlu1 %1903  ;;  %v2110_v27 = vsel %vm889_vm5, %v2015_v43, %v2109_v35  ;;  %v2050_v43 = vrot.slane %v1925_v11, %v4780_v52  ;;  %v2041_v35 = vrot.slane %v5130_v6, %v4780_v52 }
 0x375   : > { %v2019_v40 = vrot.slane %v1904_v47, %v4777_v26 }
 0x377   : > { %v2024_v14 = vsel %vm1496_vm8, %v2023_v19, %v2019_v40  ;;  %v1937_v38 = vpop.permute.xlu0 %1936 }
 0x378   : > { %v1910_v25 = vpop.permute.xlu1 %1909  ;;  %v2111_v15 = vsel %vm891_vm6, %v2024_v14, %v2110_v27 }
 0x379   : > { %v2028_v62 = vrot.slane %v1910_v25, %v4777_v26  ;;  %v2059_v25 = vrot.slane %v1931_v31, %v4780_v52 }
 0x37b   : > { %v2033_v51 = vsel %vm1496_vm8, %v2032_v16, %v2028_v62  ;;  %v1943_v47 = vpop.permute.xlu0 %1942  ;;  %v2068_v62 = vrot.slane %v1937_v38, %v4780_v52 }
 0x37c   : > { %v1916_v53 = vpop.permute.xlu1 %1915  ;;  %v2112_v7 = vsel %vm893_vm7, %v2033_v51, %v2111_v15  ;;  %v2077_v15 = vrot.slane %v1943_v47, %v4780_v52 }
 0x37d   : > { %v2122_v56 = vsel %vm1649_vm9, %v2112_v7, 0.0  ;;  %v2037_v10 = vrot.slane %v1916_v53, %v4777_v26 }
 0x37e   : > { %2123 = vadd.xlane.f32.xlu1 %v2122_v56 }
 0x37f   : > { %v1949_v13 = vpop.permute.xlu0 %1948  ;;  %v2042_v7 = vsel %vm1496_vm8, %v2041_v35, %v2037_v10 }
 0x380   : > { %v1922_v55 = vpop.permute.xlu1 %1921  ;;  %v2086_v31 = vrot.slane %v1949_v13, %v4780_v52 }
 0x381   : > { %v2046_v40 = vrot.slane %v1922_v55, %v4777_v26 }
 0x383   : > { %v1955_v18 = vpop.permute.xlu0 %1954  ;;  %v2051_v27 = vsel %vm1496_vm8, %v2050_v43, %v2046_v40 }
 0x384   : > { %v1928_v12 = vpop.permute.xlu1 %1927  ;;  %v2113_v6 = vsel %vm881_vm1, %v2051_v27, %v2042_v7  ;;  %v2095_v38 = vrot.slane %v1955_v18, %v4780_v52  ;;  %v435_v7 = vld [vmem:[%s6000_s2 + $0x20] sm:$0xff] }
 0x385   : > { %v2055_v19 = vrot.slane %v1928_v12, %v4777_v26 }
 0x387   : > { %v2060_v11 = vsel %vm1496_vm8, %v2059_v25, %v2055_v19  ;;  %v1961_v12 = vpop.permute.xlu0 %1960 }
 0x388   : > { %v1934_v20 = vpop.permute.xlu1 %1933  ;;  %v2114_v47 = vsel %vm883_vm2, %v2060_v11, %v2113_v6  ;;  %v436_v11 = vld [vmem:[%s6000_s2 + $0x28] sm:$0xff] }
 0x389   : > { %v2064_v14 = vrot.slane %v1934_v20, %v4777_v26  ;;  %v440_v6 = vld [vmem:[%s6000_s2 + $0x48] sm:$0xff] }
 0x38b   : > { %v2069_v56 = vsel %vm1496_vm8, %v2068_v62, %v2064_v14  ;;  %v432_v62 = vld [vmem:[%s6000_s2 + $0x8] sm:$0xff] }
 0x38c   : > { %v1940_v59 = vpop.permute.xlu1 %1939  ;;  %v2115_v40 = vsel %vm885_vm3, %v2069_v56, %v2114_v47  ;;  %v437_v56 = vld [vmem:[%s6000_s2 + $0x30] sm:$0xff] }
 0x38d   : > { %v2073_v16 = vrot.slane %v1940_v59, %v4777_v26  ;;  %v441_v47 = vld [vmem:[%s6000_s2 + $0x50] sm:$0xff] }
 0x38f   : > { %v2078_v20 = vsel %vm1496_vm8, %v2077_v15, %v2073_v16 }
 0x390   : > { %v1946_v24 = vpop.permute.xlu1 %1945  ;;  %v2116_v43 = vsel %vm887_vm4, %v2078_v20, %v2115_v40  ;;  %v446_v40 = vld [vmem:[%s6000_s2 + $0x78] sm:$0xff] }
 0x391   : > { %v2082_v51 = vrot.slane %v1946_v24, %v4777_v26  ;;  %v2104_v24 = vrot.slane %v1961_v12, %v4780_v52  ;;  %v434_v52 = vld [vmem:[%s6000_s2 + $0x18] sm:$0xff]  ;;  %v439_v12 = vld [vmem:[%s6000_s2 + $0x40] sm:$0xff] }
 0x392   : > { %v3286_v27 = vpack.c.bf16 %v434_v52, %v432_v62  ;;  %v452_v62 = vld [vmem:[%s6000_s2 + $0xa8] sm:$0xff]  ;;  %v454_v52 = vld [vmem:[%s6000_s2 + $0xb8] sm:$0xff] }
 0x393   : > { %v2087_v59 = vsel %vm1496_vm8, %v2086_v31, %v2082_v51  ;;  %v433_v51 = vld [vmem:[%s6000_s2 + $0x10] sm:$0xff] }
 0x394   : > { %v1952_v53 = vpop.permute.xlu1 %1951  ;;  %v2117_v18 = vsel %vm889_vm5, %v2087_v59, %v2116_v43  ;;  %3287 = vmatprep.subr.bf16.mxu1 %v3286_v27  ;;  %v444_v59 = vld [vmem:[%s6000_s2 + $0x68] sm:$0xff]  ;;  %v445_v43 = vld [vmem:[%s6000_s2 + $0x70] sm:$0xff]  ;;  %v3306_v27 = vpack.c.bf16 %v454_v52, %v452_v62 }
 0x395   : > { %v2091_v55 = vrot.slane %v1952_v53, %v4777_v26  ;;  %v438_v53 = vld [vmem:[%s6000_s2 + $0x38] sm:$0xff] }
 0x396   : > { %v3290_v31 = vpack.c.bf16 %v438_v53, %v436_v11  ;;  %v456_v11 = vld [vmem:[%s6000_s2 + $0xc8] sm:$0xff]  ;;  %v458_v53 = vld [vmem:[%s6000_s2 + $0xd8] sm:$0xff] }
 0x397   : > { %v2096_v19 = vsel %vm1496_vm8, %v2095_v38, %v2091_v55  ;;  %v3292_v55 = vpack.c.bf16 %v437_v56, %v435_v7  ;;  %v442_v38 = vld [vmem:[%s6000_s2 + $0x58] sm:$0xff]  ;;  %v455_v56 = vld [vmem:[%s6000_s2 + $0xc0] sm:$0xff] }
 0x398   : > { %v1958_v13 = vpop.permute.xlu1 %1957  ;;  %v2118_v25 = vsel %vm891_vm6, %v2096_v19, %v2117_v18  ;;  %v3294_v20 = vpack.c.bf16 %v442_v38, %v440_v6  ;;  %v3296_v19 = vpack.c.bf16 %v441_v47, %v439_v12  ;;  %v450_v18 = vld [vmem:[%s6000_s2 + $0x98] sm:$0xff]  ;;  %v460_v6 = vld [vmem:[%s6000_s2 + $0xe8] sm:$0xff]  ;;  %v459_v47 = vld [vmem:[%s6000_s2 + $0xe0] sm:$0xff] }
 0x399   : > { %v2100_v10 = vrot.slane %v1958_v13, %v4777_v26  ;;  %v431_v26 = vld [vmem:[%s6000_s2] sm:$0xff]  ;;  %v3298_v13 = vpack.c.bf16 %v446_v40, %v444_v59  ;;  %v462_v38 = vld [vmem:[%s6000_s2 + $0xf8] sm:$0xff]  ;;  %v461_v59 = vld [vmem:[%s6000_s2 + $0xf0] sm:$0xff] }
 0x39a   : > { %v3288_v15 = vpack.c.bf16 %v433_v51, %v431_v26  ;;  %v451_v51 = vld [vmem:[%s6000_s2 + $0xa0] sm:$0xff]  ;;  %v464_v40 = vld [vmem:[%s6000_s2 + $0x108] sm:$0xff] }
 0x39b   : > { %v2105_v14 = vsel %vm1496_vm8, %v2104_v24, %v2100_v10  ;;  %v443_v24 = vld [vmem:[%s6000_s2 + $0x60] sm:$0xff]  ;;  %v448_v10 = vld [vmem:[%s6000_s2 + $0x88] sm:$0xff] }
 0x39c   : > { %v2119_v16 = vsel %vm893_vm7, %v2105_v14, %v2118_v25  ;;  %3289 = vmatpush1.bf16.xpose.msra.mxu1 %v3288_v15  ;;  %v3300_v14 = vpack.c.bf16 %v445_v43, %v443_v24  ;;  %v3302_v25 = vpack.c.bf16 %v450_v18, %v448_v10  ;;  %v453_v15 = vld [vmem:[%s6000_s2 + $0xb0] sm:$0xff]  ;;  %v463_v43 = vld [vmem:[%s6000_s2 + $0x100] sm:$0xff]  ;;  %v468_v18 = vld [vmem:[%s6000_s2 + $0x128] sm:$0xff] }
 0x39d   : > { %v2125_v35 = vsel %vm1649_vm9, %v2119_v16, 0.0  ;;  %3291 = vmatprep.subr.bf16.mxu1 %v3290_v31  ;;  %v447_v16 = vld [vmem:[%s6000_s2 + $0x80] sm:$0xff]  ;;  %v3308_v7 = vpack.c.bf16 %v453_v15, %v451_v51  ;;  %v3310_v31 = vpack.c.bf16 %v458_v53, %v456_v11  ;;  %v465_v10 = vld [vmem:[%s6000_s2 + $0x110] sm:$0xff] }
 0x39e   : > { %2126 = vadd.xlane.f32.xlu0 %v2125_v35  ;;  %v449_v35 = vld [vmem:[%s6000_s2 + $0x90] sm:$0xff] }
 0x39f   : > { %v3304_v26 = vpack.c.bf16 %v449_v35, %v447_v16  ;;  %v3320_v16 = vpack.c.bf16 %v465_v10, %v463_v43  ;;  %v469_v51 = vld [vmem:[%s6000_s2 + $0x130] sm:$0xff] }
 0x3a4   : > { %3293 = vmatpush1.bf16.xpose.msra.mxu1 %v3292_v55  ;;  %v457_v55 = vld [vmem:[%s6000_s2 + $0xd0] sm:$0xff] }
 0x3a5   : > { %3295 = vmatprep.subr.bf16.mxu1 %v3294_v20  ;;  %v3312_v12 = vpack.c.bf16 %v457_v55, %v455_v56  ;;  %v3314_v20 = vpack.c.bf16 %v462_v38, %v460_v6 }
 0x3ac   : > { %3297 = vmatpush1.bf16.xpose.msra.mxu1 %v3296_v19  ;;  %v466_v19 = vld [vmem:[%s6000_s2 + $0x118] sm:$0xff] }
 0x3ad   : > { %3299 = vmatprep.subr.bf16.mxu1 %v3298_v13  ;;  %v3316_v13 = vpack.c.bf16 %v461_v59, %v459_v47  ;;  %v3318_v24 = vpack.c.bf16 %v466_v19, %v464_v40  ;;  %v472_v47 = vld [vmem:[%s6000_s2 + $0x148] sm:$0xff] }
 0x3b4   : > { %3301 = vmatpush1.bf16.xpose.msra.mxu1 %v3300_v14  ;;  %v470_v14 = vld [vmem:[%s6000_s2 + $0x138] sm:$0xff] }
 0x3b5   : > { %3303 = vmatprep.subr.bf16.mxu1 %v3302_v25  ;;  %v3322_v52 = vpack.c.bf16 %v470_v14, %v468_v18 }
 0x3bc   : > { %3305 = vmatpush1.bf16.xpose.msra.mxu1 %v3304_v26 }
 0x3bd   : > { %3307 = vmatprep.subr.bf16.mxu1 %v3306_v27  ;;  %v467_v27 = vld [vmem:[%s6000_s2 + $0x120] sm:$0xff] }
 0x3be   : > { %v3324_v15 = vpack.c.bf16 %v469_v51, %v467_v27  ;;  %v476_v27 = vld [vmem:[%s6000_s2 + $0x168] sm:$0xff] }
 0x3c4   : > { %3309 = vmatpush1.bf16.xpose.msra.mxu1 %v3308_v7 }
 0x3c5   : > { %3311 = vmatprep.subr.bf16.mxu1 %v3310_v31 }
 0x3cc   : > { %3313 = vmatpush1.bf16.xpose.msra.mxu1 %v3312_v12 }
 0x3cd   : > { %3315 = vmatprep.subr.bf16.mxu1 %v3314_v20 }
 0x3d4   : > { %3317 = vmatpush1.bf16.xpose.msra.mxu1 %v3316_v13 }
 0x3d5   : > { %3319 = vmatprep.subr.bf16.mxu1 %v3318_v24 }
 0x3dc   : > { %3321 = vmatpush1.bf16.xpose.msra.mxu1 %v3320_v16 }
 0x3dd   : > { %3323 = vmatprep.subr.bf16.mxu1 %v3322_v52 }
 0x3e4   : > { %3325 = vmatpush1.bf16.xpose.msra.mxu1 %v3324_v15  ;;  %v475_v15 = vld [vmem:[%s6000_s2 + $0x160] sm:$0xff] }
 0x40b   : > { %v2124_v25 = vpop.xlane.xlu1 %2123 }
 0x40c   : > { %v2137_v35 = vrot.slane %v2124_v25, %v4592_v42  ;;  %v2133_v62 = vrot.slane %v2124_v25, %v4589_v28  ;;  %v2141_v26 = vrot.slane %v2124_v25, %v4937_v44  ;;  %v2145_v11 = vrot.slane %v2124_v25, %v4958_v32 }
 0x40d   : > { %v2149_v7 = vrot.slane %v2124_v25, %v4924_v49  ;;  %v2153_v6 = vrot.slane %v2124_v25, %v4930_v36  ;;  %v2161_v13 = vrot.slane %v2124_v25, %v4950_v1 }
 0x40e   : > { %3565 = vrcp.f32 %v2137_v35 }
 0x40f   : > { %3567 = vrcp.f32 %v2133_v62 }
 0x410   : > { %3569 = vrcp.f32 %v2141_v26 }
 0x411   : > { %3571 = vrcp.f32 %v2145_v11 }
 0x412   : > { %3573 = vrcp.f32 %v2149_v7 }
 0x413   : > { %3575 = vrcp.f32 %v2153_v6 }
 0x418   : > { %v3566_v53 = vpop.eup %3565 }
 0x419   : > { %v3568_v31 = vpop.eup %3567  ;;  %v2215_v56 = vmul.f32 %v3566_v53, %v4980_v5  ;;  %v2214_v20 = vmul.f32 %v3566_v53, %v4977_v0  ;;  %v474_v5 = vld [vmem:[%s6000_s2 + $0x158] sm:$0xff]  ;;  %v2157_v0 = vrot.slane %v2124_v25, %v4940_v4 }
 0x41a   : > { %v2212_v55 = vmul.f32 %v3568_v31, %v4970_v37  ;;  %v2211_v38 = vmul.f32 %v3568_v31, %v4966_v58  ;;  %v3570_v12 = vpop.eup %3569  ;;  %v471_v37 = vld [vmem:[%s6000_s2 + $0x140] sm:$0xff]  ;;  %v3326_v59 = vpack.c.bf16 %v474_v5, %v472_v47  ;;  %v473_v58 = vld [vmem:[%s6000_s2 + $0x150] sm:$0xff] }
 0x41b   : > { %2275 = vperm.xlu1 %3500, %v2215_v56   ;;  %v3328_v40 = vpack.c.bf16 %v473_v58, %v471_v37  ;;  %v2218_v19 = vmul.f32 %v3570_v12, %v5014_v23  ;;  %v3572_v24 = vpop.eup %3571  ;;  %v2217_v43 = vmul.f32 %v3570_v12, %v5000_v41  ;;  %3577 = vrcp.f32 %v2157_v0  ;;  %v483_v0 = vld [vmem:[%s6000_s2 + $0x1a0] sm:$0xff] }
 0x41c   : > { %2265 = vperm.xlu0 %3499, %v2212_v55   ;;  %3327 = vmatprep.subr.bf16.mxu1 %v3326_v59  ;;  %v2221_v10 = vmul.f32 %v3572_v24, %v5040_v63  ;;  %3579 = vrcp.f32 %v2161_v13  ;;  %v3574_v18 = vpop.eup %3573  ;;  %v2220_v14 = vmul.f32 %v3572_v24, %v5028_v46  ;;  %v480_v55 = vld [vmem:[%s6000_s2 + $0x188] sm:$0xff] }
 0x41d   : > { %3329 = vmatpush1.bf16.xpose.msra.mxu1 %v3328_v40  ;;  %v2224_v23 = vmul.f32 %v3574_v18, %v4983_v8  ;;  %v3576_v16 = vpop.eup %3575  ;;  %v2223_v25 = vmul.f32 %v3574_v18, %v5052_v45 }
 0x41e   : > { %v2227_v62 = vmul.f32 %v3576_v16, %v4998_v29  ;;  %v2226_v52 = vmul.f32 %v3576_v16, %v5064_v30  ;;  %v478_v29 = vld [vmem:[%s6000_s2 + $0x178] sm:$0xff] }
 0x41f   : > { %2260 = vperm.xlu1 %3500, %v2211_v38   ;;  %v3330_v51 = vpack.c.bf16 %v478_v29, %v476_v27  ;;  %v479_v38 = vld [vmem:[%s6000_s2 + $0x180] sm:$0xff] }
 0x420   : > { %2270 = vperm.xlu0 %3499, %v2214_v20   ;;  %v6136_v29 = vld [vmem:[#allocation13_spill] sm:$0xff] }
 0x421   : > { %3331 = vmatprep.subr.bf16.mxu1 %v3330_v51  ;;  %v6137_v51 = vld [vmem:[#allocation12_spill] sm:$0xff] }
 0x423   : > { %2285 = vperm.xlu1 %3500, %v2218_v19  }
 0x424   : > { %2280 = vperm.xlu0 %3499, %v2217_v43  }
 0x425   : > { %v3578_v46 = vpop.eup %3577 }
 0x426   : > { %v3580_v8 = vpop.eup %3579  ;;  %v2230_v26 = vmul.f32 %v3578_v46, %v5012_v48  ;;  %v2229_v53 = vmul.f32 %v3578_v46, %v5075_v34  ;;  %v494_v46 = vld [vmem:[%s6000_s2 + $0x1f8] sm:$0xff] }
 0x427   : > { %2295 = vperm.xlu1 %3500, %v2221_v10   ;;  %v2233_v30 = vmul.f32 %v3580_v8, %v5026_v22  ;;  %v2232_v31 = vmul.f32 %v3580_v8, %v5084_v3  ;;  %v488_v10 = vld [vmem:[%s6000_s2 + $0x1c8] sm:$0xff]  ;;  %v493_v8 = vld [vmem:[%s6000_s2 + $0x1f0] sm:$0xff] }
 0x428   : > { %2290 = vperm.xlu0 %3499, %v2220_v14  }
 0x42b   : > { %2305 = vperm.xlu1 %3500, %v2224_v23   ;;  %v5347_v35 = vpop.xlane.xlu0 %2126 }
 0x42c   : > { %2300 = vperm.xlu0 %3499, %v2223_v25   ;;  %v2165_v41 = vrot.slane %v5347_v35, %v4589_v28  ;;  %v2169_v63 = vrot.slane %v5347_v35, %v4592_v42  ;;  %v2173_v45 = vrot.slane %v5347_v35, %v4937_v44  ;;  %v477_v44 = vld [vmem:[%s6000_s2 + $0x170] sm:$0xff]  ;;  %v2177_v11 = vrot.slane %v5347_v35, %v4958_v32  ;;  %v482_v32 = vld [vmem:[%s6000_s2 + $0x198] sm:$0xff]  ;;  %v6133_v25 = vld [vmem:[#allocation9_spill] sm:$0xff] }
 0x42d   : > { %v3332_v48 = vpack.c.bf16 %v477_v44, %v475_v15  ;;  %v2181_v7 = vrot.slane %v5347_v35, %v4924_v49  ;;  %v3334_v6 = vpack.c.bf16 %v482_v32, %v480_v55  ;;  %v481_v49 = vld [vmem:[%s6000_s2 + $0x190] sm:$0xff]  ;;  %v2185_v3 = vrot.slane %v5347_v35, %v4930_v36  ;;  %v484_v36 = vld [vmem:[%s6000_s2 + $0x1a8] sm:$0xff]  ;;  %v3617_v55 = vld [vmem:[%s4088_s15 + $0x38] sm:$0x3] }
 0x42e   : > { %3581 = vrcp.f32 %v2165_v41  ;;  %v2189_v5 = vrot.slane %v5347_v35, %v4940_v4  ;;  %v485_v4 = vld [vmem:[%s6000_s2 + $0x1b0] sm:$0xff] }
 0x42f   : > { %2315 = vperm.xlu1 %3500, %v2227_v62   ;;  %3583 = vrcp.f32 %v2169_v63  ;;  %3333 = vmatpush1.bf16.xpose.msra.mxu1 %v3332_v48  ;;  %v6134_v41 = vld [vmem:[#allocation11_spill] sm:$0xff]  ;;  %v492_v62 = vld [vmem:[%s6000_s2 + $0x1e8] sm:$0xff] }
 0x430   : > { %2310 = vperm.xlu0 %3499, %v2226_v52   ;;  %3585 = vrcp.f32 %v2173_v45  ;;  %3335 = vmatprep.subr.bf16.mxu1 %v3334_v6  ;;  %v3618_v6 = vld [vmem:[%s4088_s15] sm:$0xff] }
 0x431   : > { %3587 = vrcp.f32 %v2177_v11  ;;  %v3614_v11 = vld [vmem:[%s4088_s15 + $0x10] sm:$0x3] }
 0x432   : > { %3589 = vrcp.f32 %v2181_v7 }
 0x433   : > { %2325 = vperm.xlu1 %3500, %v2230_v26   ;;  %3591 = vrcp.f32 %v2185_v3  ;;  %v6135_v26 = vld [vmem:[#allocation10_spill] sm:$0xff] }
 0x434   : > { %2335 = vperm.xlu0 %3499, %v2233_v30   ;;  %3593 = vrcp.f32 %v2189_v5 }
 0x437   : > { %2320 = vperm.xlu1 %3500, %v2229_v53  }
 0x438   : > { %v3582_v22 = vpop.eup %3581 }
 0x439   : > { %v2236_v56 = vmul.f32 %v3582_v22, %v5050_v33  ;;  %v3584_v34 = vpop.eup %3583  ;;  %v3336_v33 = vpack.c.bf16 %v481_v49, %v479_v38  ;;  %v2235_v20 = vmul.f32 %v3582_v22, %v5092_v57  ;;  %v3615_v22 = vld [vmem:[%s4088_s15 + $0x18] sm:$0x3]  ;;  %v3619_v49 = vld [vmem:[%s4088_s15 + $0x8] sm:$0xff] }
 0x43a   : > { %v2239_v12 = vmul.f32 %v3584_v34, %v5062_v21  ;;  %v3586_v47 = vpop.eup %3585  ;;  %v2238_v37 = vmul.f32 %v3584_v34, %v5100_v60  ;;  %v486_v21 = vld [vmem:[%s6000_s2 + $0x1b8] sm:$0xff]  ;;  %v2193_v60 = vrot.slane %v5347_v35, %v4950_v1 }
 0x43b   : > { %2330 = vperm.xlu1 %3500, %v2232_v31   ;;  %2345 = vperm.xlu0 %3499, %v2236_v56   ;;  %v2242_v59 = vmul.f32 %v3586_v47, %v5073_v9  ;;  %v3588_v57 = vpop.eup %3587  ;;  %v3338_v58 = vpack.c.bf16 %v486_v21, %v484_v36  ;;  %v3340_v9 = vpack.c.bf16 %v485_v4, %v483_v0  ;;  %v490_v1 = vld [vmem:[%s6000_s2 + $0x1d8] sm:$0xff]  ;;  %v3616_v31 = vld [vmem:[%s4088_s15 + $0x30] sm:$0x3] }
 0x43c   : > { %3337 = vmatpush1.bf16.xpose.msra.mxu1 %v3336_v33  ;;  %v2241_v40 = vmul.f32 %v3586_v47, %v5107_v50  ;;  %v2245_v19 = vmul.f32 %v3588_v57, %v5082_v17  ;;  %v3590_v13 = vpop.eup %3589  ;;  %3595 = vrcp.f32 %v2193_v60  ;;  %v2244_v43 = vmul.f32 %v3588_v57, %v5114_v54  ;;  %v487_v17 = vld [vmem:[%s6000_s2 + $0x1c0] sm:$0xff] }
 0x43d   : > { %3339 = vmatprep.subr.bf16.mxu1 %v3338_v58  ;;  %v2248_v24 = vmul.f32 %v3590_v13, %v5090_v2  ;;  %v3592_v50 = vpop.eup %3591  ;;  %v3342_v18 = vpack.c.bf16 %v490_v1, %v488_v10  ;;  %v489_v2 = vld [vmem:[%s6000_s2 + $0x1d0] sm:$0xff]  ;;  %v2247_v23 = vmul.f32 %v3590_v13, %v5118_v39  ;;  %v491_v39 = vld [vmem:[%s6000_s2 + $0x1e0] sm:$0xff] }
 0x43e   : > { %v3344_v54 = vpack.c.bf16 %v489_v2, %v487_v17  ;;  %v2251_v14 = vmul.f32 %v3592_v50, %v5098_v61  ;;  %v3594_v16 = vpop.eup %3593  ;;  %v2250_v63 = vmul.f32 %v3592_v50, %v6134_v41  ;;  %v3346_v61 = vpack.c.bf16 %v494_v46, %v492_v62  ;;  %v3620_v47 = vld [vmem:[%s4088_s15 + $0x20] sm:$0xff]  ;;  %v3625_v2 = vld [vmem:[%s4088_s15 + $0x48] sm:$0xff] }
 0x43f   : > { %2355 = vperm.xlu1 %3500, %v2239_v12   ;;  %2340 = vperm.xlu0 %3499, %v2235_v20   ;;  %v2254_v35 = vmul.f32 %v3594_v16, %v6133_v25  ;;  %v3348_v45 = vpack.c.bf16 %v493_v8, %v491_v39  ;;  %v2253_v30 = vmul.f32 %v3594_v16, %v6136_v29  ;;  %v3624_v50 = vld [vmem:[%s4088_s15 + $0x40] sm:$0xff]  ;;  %v3626_v39 = vld [vmem:[%s4088_s15 + $0x70] sm:$0x3] }
 0x443   : > { %2350 = vperm.xlu1 %3500, %v2238_v37   ;;  %2365 = vperm.xlu0 %3499, %v2242_v59   ;;  %v3621_v37 = vld [vmem:[%s4088_s15 + $0x28] sm:$0xff] }
 0x444   : > { %3341 = vmatpush1.bf16.xpose.msra.mxu1 %v3340_v9 }
 0x445   : > { %3343 = vmatprep.subr.bf16.mxu1 %v3342_v18 }
 0x446   : > { %v3596_v52 = vpop.eup %3595 }
 0x447   : > { %2360 = vperm.xlu1 %3500, %v2241_v40   ;;  %2375 = vperm.xlu0 %3499, %v2245_v19   ;;  %v2257_v27 = vmul.f32 %v3596_v52, %v6135_v26  ;;  %v2256_v15 = vmul.f32 %v3596_v52, %v6137_v51  ;;  %v3622_v19 = vld [vmem:[%s4088_s15 + $0x50] sm:$0x3] }
 0x44b   : > { %2385 = vperm.xlu1 %3500, %v2248_v24   ;;  %2370 = vperm.xlu0 %3499, %v2244_v43   ;;  %v3623_v24 = vld [vmem:[%s4088_s15 + $0x58] sm:$0x3] }
 0x44c   : > { %3345 = vmatpush1.bf16.xpose.msra.mxu1 %v3344_v54 }
 0x44d   : > { %3347 = vmatprep.subr.bf16.mxu1 %v3346_v61 }
 0x44f   : > { %2395 = vperm.xlu1 %3500, %v2251_v14   ;;  %2380 = vperm.xlu0 %3499, %v2247_v23  }
 0x453   : > { %2405 = vperm.xlu1 %3500, %v2254_v35   ;;  %2390 = vperm.xlu0 %3499, %v2250_v63  }
 0x454   : > { %3349 = vmatpush1.bf16.xpose.msra.mxu1 %v3348_v45  ;;  %v3627_v45 = vld [vmem:[%s4088_s15 + $0x78] sm:$0x3] }
 0x457   : > { %2415 = vperm.xlu1 %3500, %v2257_v27   ;;  %2400 = vperm.xlu0 %3499, %v2253_v30  }
 0x45b   : > { %2410 = vperm.xlu0 %3499, %v2256_v15  }
 0x49a   : > { %v2276_v44 = vpop.permute.xlu1 %2275 }
 0x49b   : > { %v2266_v48 = vpop.permute.xlu0 %2265  ;;  %v2424_v56 = vmul.f32 %v3616_v31, %v2276_v44  ;;  %v2425_v32 = vmul.f32 %v3617_v55, %v2276_v44 }
 0x49c   : > { %v2420_v53 = vmul.f32 %v3614_v11, %v2266_v48  ;;  %v2421_v7 = vmul.f32 %v3615_v22, %v2266_v48 }
 0x49d   : > { %v2498_v36 = vsel %vm560_vm0, %v2424_v56, 0.0  ;;  %v2506_v21 = vsel %vm560_vm0, %v2425_v32, 0.0  ;;  %v3628_v32 = vld [vmem:[%s4088_s15 + $0x60] sm:$0xff] }
 0x49e   : > { %v2261_v34 = vpop.permute.xlu1 %2260  ;;  %v2482_v12 = vsel %vm560_vm0, %v2420_v53, 0.0  ;;  %v2490_v20 = vsel %vm560_vm0, %v2421_v7, 0.0 }
 0x49f   : > { %v2418_v38 = vmul.f32 %v3618_v6, %v2261_v34  ;;  %v2419_v33 = vmul.f32 %v3619_v49, %v2261_v34  ;;  %v2271_v3 = vpop.permute.xlu0 %2270  ;;  %v3629_v6 = vld [vmem:[%s4088_s15 + $0x68] sm:$0xff] }
 0x4a0   : > { %v2422_v5 = vmul.f32 %v3620_v47, %v2271_v3  ;;  %v2423_v59 = vmul.f32 %v3621_v37, %v2271_v3 }
 0x4a1   : > { %v2483_v57 = vadd.f32 %v2482_v12, %v2418_v38  ;;  %v2491_v58 = vadd.f32 %v2490_v20, %v2419_v33 }
 0x4a2   : > { %v2499_v0 = vadd.f32 %v2498_v36, %v2422_v5  ;;  %v2507_v4 = vadd.f32 %v2506_v21, %v2423_v59  ;;  %v2286_v9 = vpop.permute.xlu1 %2285 }
 0x4a3   : > { %v2484_v60 = vrot.slane %v2483_v57, 4  ;;  %v2492_v40 = vrot.slane %v2491_v58, 4  ;;  %v2428_v13 = vmul.f32 %v3622_v19, %v2286_v9  ;;  %v2429_v43 = vmul.f32 %v3623_v24, %v2286_v9  ;;  %v2281_v10 = vpop.permute.xlu0 %2280  ;;  %v3631_v9 = vld [vmem:[%s4088_s15 + $0x98] sm:$0x3] }
 0x4a4   : > { %v2500_v1 = vrot.slane %v2499_v0, 4  ;;  %v2508_v17 = vrot.slane %v2507_v4, 4  ;;  %v2426_v18 = vmul.f32 %v3624_v50, %v2281_v10  ;;  %v2427_v54 = vmul.f32 %v3625_v2, %v2281_v10 }
 0x4a5   : > { %v2485_v14 = vadd.f32 %v2484_v60, %v2483_v57  ;;  %v2493_v23 = vadd.f32 %v2492_v40, %v2491_v58  ;;  %v2514_v16 = vsel %vm560_vm0, %v2428_v13, 0.0  ;;  %v2522_v25 = vsel %vm560_vm0, %v2429_v43, 0.0  ;;  %v3632_v13 = vld [vmem:[%s4088_s15 + $0x80] sm:$0xff] }
 0x4a6   : > { %v2501_v35 = vadd.f32 %v2500_v1, %v2499_v0  ;;  %v2509_v41 = vadd.f32 %v2508_v17, %v2507_v4  ;;  %v2515_v63 = vadd.f32 %v2514_v16, %v2426_v18  ;;  %v2523_v62 = vadd.f32 %v2522_v25, %v2427_v54  ;;  %v2296_v46 = vpop.permute.xlu1 %2295  ;;  %v3630_v0 = vld [vmem:[%s4088_s15 + $0x90] sm:$0x3]  ;;  %v3633_v54 = vld [vmem:[%s4088_s15 + $0x88] sm:$0xff] }
 0x4a7   : > { %v2486_v52 = vrot.slane %v2485_v14, 2  ;;  %v2494_v61 = vrot.slane %v2493_v23, 2  ;;  %v2432_v8 = vmul.f32 %v3626_v39, %v2296_v46  ;;  %v2433_v26 = vmul.f32 %v3627_v45, %v2296_v46  ;;  %v2291_v27 = vpop.permute.xlu0 %2290  ;;  %v3636_v39 = vld [vmem:[%s4088_s15 + $0xa0] sm:$0xff]  ;;  %v3637_v45 = vld [vmem:[%s4088_s15 + $0xa8] sm:$0xff] }
 0x4a8   : > { %v2502_v29 = vrot.slane %v2501_v35, 2  ;;  %v2510_v30 = vrot.slane %v2509_v41, 2  ;;  %v2516_v51 = vrot.slane %v2515_v63, 4  ;;  %v2524_v15 = vrot.slane %v2523_v62, 4 }
 0x4a9   : > { %v2487_v44 = vadd.f32 %v2486_v52, %v2485_v14  ;;  %v2495_v48 = vadd.f32 %v2494_v61, %v2493_v23  ;;  %v2530_v11 = vsel %vm560_vm0, %v2432_v8, 0.0  ;;  %v2538_v53 = vsel %vm560_vm0, %v2433_v26, 0.0 }
 0x4aa   : > { %v2503_v22 = vadd.f32 %v2502_v29, %v2501_v35  ;;  %v2511_v7 = vadd.f32 %v2510_v30, %v2509_v41  ;;  %v2517_v31 = vadd.f32 %v2516_v51, %v2515_v63  ;;  %v2525_v56 = vadd.f32 %v2524_v15, %v2523_v62  ;;  %v2306_v55 = vpop.permute.xlu1 %2305  ;;  %v3634_v41 = vld [vmem:[%s4088_s15 + $0xb0] sm:$0x3]  ;;  %v3635_v62 = vld [vmem:[%s4088_s15 + $0xb8] sm:$0x3] }
 0x4ab   : > { %v2430_v34 = vmul.f32 %v3628_v32, %v2291_v27  ;;  %v2431_v38 = vmul.f32 %v3629_v6, %v2291_v27  ;;  %v2301_v49 = vpop.permute.xlu0 %2300  ;;  %v2488_v33 = vrot.slane %v2487_v44, 1  ;;  %v2496_v3 = vrot.slane %v2495_v48, 1  ;;  %v3639_v32 = vld [vmem:[%s4088_s15 + $0xd8] sm:$0x3] }
 0x4ac   : > { %v2518_v12 = vrot.slane %v2517_v31, 2  ;;  %v2504_v5 = vrot.slane %v2503_v22, 1  ;;  %v2512_v37 = vrot.slane %v2511_v7, 1  ;;  %v2526_v36 = vrot.slane %v2525_v56, 2 }
 0x4ad   : > { %v2531_v20 = vadd.f32 %v2530_v11, %v2430_v34  ;;  %v2539_v47 = vadd.f32 %v2538_v53, %v2431_v38  ;;  %v2436_v4 = vmul.f32 %v3630_v0, %v2306_v55  ;;  %v2437_v60 = vmul.f32 %v3631_v9, %v2306_v55 }
 0x4ae   : > { %v2519_v59 = vadd.f32 %v2518_v12, %v2517_v31  ;;  %v2316_v21 = vpop.permute.xlu1 %2315  ;;  %v2489_v40 = vadd.f32 %v2488_v33, %v2487_v44  ;;  %v5473_v19 = vadd.f32 %v2496_v3, %v2495_v48  ;;  %v2434_v24 = vmul.f32 %v3632_v13, %v2301_v49  ;;  %v3642_v13 = vld [vmem:[%s4088_s15 + $0xc8] sm:$0xff] }
 0x4af   : > { %v2532_v57 = vrot.slane %v2531_v20, 4  ;;  %v2540_v58 = vrot.slane %v2539_v47, 4  ;;  %v2311_v43 = vpop.permute.xlu0 %2310  ;;  %v2546_v17 = vsel %vm560_vm0, %v2436_v4, 0.0  ;;  %v2554_v50 = vsel %vm560_vm0, %v2437_v60, 0.0  ;;  %v3640_v4 = vld [vmem:[%s4088_s15 + $0xf0] sm:$0x3] }
 0x4b0   : > { %v2505_v18 = vadd.f32 %v2504_v5, %v2503_v22  ;;  %v5478_v2 = vadd.f32 %v2512_v37, %v2511_v7  ;;  %v2435_v14 = vmul.f32 %v3633_v54, %v2301_v49  ;;  %v2547_v23 = vadd.f32 %v2546_v17, %v2434_v24  ;;  %v3641_v60 = vld [vmem:[%s4088_s15 + $0xc0] sm:$0xff] }
 0x4b1   : > { %v2533_v10 = vadd.f32 %v2532_v57, %v2531_v20  ;;  %v2541_v1 = vadd.f32 %v2540_v58, %v2539_v47  ;;  %v2520_v25 = vrot.slane %v2519_v59, 1  ;;  %v5481_v35 = vadd.f32 %v2526_v36, %v2525_v56  ;;  %v3638_v56 = vld [vmem:[%s4088_s15 + $0xd0] sm:$0x3] }
 0x4b2   : > { %v2326_v16 = vpop.permute.xlu1 %2325  ;;  %v2440_v63 = vmul.f32 %v3634_v41, %v2316_v21  ;;  %v2441_v46 = vmul.f32 %v3635_v62, %v2316_v21  ;;  %v2548_v52 = vrot.slane %v2547_v23, 4  ;;  %v2555_v61 = vadd.f32 %v2554_v50, %v2435_v14 }
 0x4b3   : > { %v2438_v8 = vmul.f32 %v3636_v39, %v2311_v43  ;;  %v2439_v26 = vmul.f32 %v3637_v45, %v2311_v43  ;;  %v2534_v27 = vrot.slane %v2533_v10, 2  ;;  %v2542_v29 = vrot.slane %v2541_v1, 2  ;;  %v2336_v53 = vpop.permute.xlu0 %2335 }
 0x4b4   : > { %v2562_v30 = vsel %vm560_vm0, %v2440_v63, 0.0  ;;  %v2570_v51 = vsel %vm560_vm0, %v2441_v46, 0.0  ;;  %v2549_v15 = vadd.f32 %v2548_v52, %v2547_v23  ;;  %v2556_v44 = vrot.slane %v2555_v61, 4 }
 0x4b5   : > { %v2563_v48 = vadd.f32 %v2562_v30, %v2438_v8  ;;  %v2571_v11 = vadd.f32 %v2570_v51, %v2439_v26  ;;  %v5490_v7 = vsel %vm881_vm1, %v2505_v18, %v2489_v40  ;;  %v2528_v31 = vrot.slane %v5481_v35, 1  ;;  %v3645_v8 = vld [vmem:[%s4088_s15 + $0xe8] sm:$0xff]  ;;  %v3646_v30 = vld [vmem:[%s4088_s15 + $0x110] sm:$0x3] }
 0x4b6   : > { %v2321_v22 = vpop.permute.xlu1 %2320  ;;  %v2444_v55 = vmul.f32 %v3638_v56, %v2326_v16  ;;  %v2445_v34 = vmul.f32 %v3639_v32, %v2326_v16  ;;  %v2550_v6 = vrot.slane %v2549_v15, 2  ;;  %v2557_v38 = vadd.f32 %v2556_v44, %v2555_v61  ;;  %v3644_v61 = vld [vmem:[%s4088_s15 + $0xe0] sm:$0xff] }
 0x4b7   : > { %v2564_v49 = vrot.slane %v2563_v48, 4  ;;  %v2572_v33 = vrot.slane %v2571_v11, 4  ;;  %v5495_v3 = vadd.f32 %v2520_v25, %v2519_v59  ;;  %v2535_v12 = vadd.f32 %v2534_v27, %v2533_v10 }
 0x4b8   : > { %v2543_v20 = vadd.f32 %v2542_v29, %v2541_v1  ;;  %v2578_v47 = vsel %vm560_vm0, %v2444_v55, 0.0  ;;  %v2551_v5 = vadd.f32 %v2550_v6, %v2549_v15  ;;  %v2558_v37 = vrot.slane %v2557_v38, 2  ;;  %v3643_v1 = vld [vmem:[%s4088_s15 + $0xf8] sm:$0x3] }
 0x4b9   : > { %v2565_v36 = vadd.f32 %v2564_v49, %v2563_v48  ;;  %v2573_v21 = vadd.f32 %v2572_v33, %v2571_v11  ;;  %v2586_v0 = vsel %vm560_vm0, %v2445_v34, 0.0  ;;  %v2448_v9 = vmul.f32 %v3640_v4, %v2336_v53  ;;  %v3647_v55 = vld [vmem:[%s4088_s15 + $0x118] sm:$0x3] }
 0x4ba   : > { %v2331_v57 = vpop.permute.xlu1 %2330  ;;  %v2346_v58 = vpop.permute.xlu0 %2345  ;;  %v2442_v40 = vmul.f32 %v3641_v60, %v2321_v22  ;;  %v2443_v59 = vmul.f32 %v3642_v13, %v2321_v22  ;;  %v2559_v24 = vadd.f32 %v2558_v37, %v2557_v38  ;;  %v2449_v17 = vmul.f32 %v3643_v1, %v2336_v53  ;;  %v3652_v13 = vld [vmem:[%s4088_s15 + $0x120] sm:$0xff] }
 0x4bb   : > { %v2566_v43 = vrot.slane %v2565_v36, 2  ;;  %v2574_v10 = vrot.slane %v2573_v21, 2  ;;  %v2536_v50 = vrot.slane %v2535_v12, 1  ;;  %v2544_v18 = vrot.slane %v2543_v20, 1 }
 0x4bc   : > { %v2579_v54 = vadd.f32 %v2578_v47, %v2442_v40  ;;  %v2587_v14 = vadd.f32 %v2586_v0, %v2443_v59  ;;  %v2552_v23 = vrot.slane %v2551_v5, 1  ;;  %v2560_v16 = vrot.slane %v2559_v24, 1  ;;  %v3648_v47 = vld [vmem:[%s4088_s15 + $0x130] sm:$0x3] }
 0x4bd   : > { %v2567_v25 = vadd.f32 %v2566_v43, %v2565_v36  ;;  %v2594_v41 = vsel %vm560_vm0, %v2448_v9, 0.0  ;;  %v2446_v39 = vmul.f32 %v3644_v61, %v2331_v57  ;;  %v2447_v45 = vmul.f32 %v3645_v8, %v2331_v57  ;;  %v3650_v36 = vld [vmem:[%s4088_s15 + $0x100] sm:$0xff]  ;;  %v3651_v9 = vld [vmem:[%s4088_s15 + $0x108] sm:$0xff] }
 0x4be   : > { %v2356_v63 = vpop.permute.xlu1 %2355  ;;  %v2341_v62 = vpop.permute.xlu0 %2340  ;;  %v2580_v46 = vrot.slane %v2579_v54, 4  ;;  %v2588_v52 = vrot.slane %v2587_v14, 4  ;;  %v5506_v27 = vadd.f32 %v2574_v10, %v2573_v21  ;;  %v2602_v29 = vsel %vm560_vm0, %v2449_v17, 0.0  ;;  %v3653_v17 = vld [vmem:[%s4088_s15 + $0x128] sm:$0xff] }
 0x4bf   : > { %v2568_v26 = vrot.slane %v2567_v25, 1  ;;  %v2452_v51 = vmul.f32 %v3646_v30, %v2346_v58  ;;  %v2595_v48 = vadd.f32 %v2594_v41, %v2446_v39  ;;  %v2603_v11 = vadd.f32 %v2602_v29, %v2447_v45 }
 0x4c0   : > { %v2581_v15 = vadd.f32 %v2580_v46, %v2579_v54  ;;  %v5510_v44 = vadd.f32 %v2588_v52, %v2587_v14  ;;  %v5513_v53 = vadd.f32 %v2528_v31, %v5481_v35  ;;  %v5515_v22 = vadd.f32 %v2536_v50, %v2535_v12  ;;  %v3649_v12 = vld [vmem:[%s4088_s15 + $0x138] sm:$0x3]  ;;  %v3656_v52 = vld [vmem:[%s4088_s15 + $0x140] sm:$0xff] }
 0x4c1   : > { %v5517_v56 = vadd.f32 %v2544_v18, %v2543_v20  ;;  %v2453_v32 = vmul.f32 %v3647_v55, %v2346_v58  ;;  %v5520_v38 = vadd.f32 %v2552_v23, %v2551_v5  ;;  %v5522_v49 = vadd.f32 %v2560_v16, %v2559_v24  ;;  %v3654_v16 = vld [vmem:[%s4088_s15 + $0x150] sm:$0x3] }
 0x4c2   : > { %v2351_v34 = vpop.permute.xlu1 %2350  ;;  %v2366_v6 = vpop.permute.xlu0 %2365  ;;  %v2582_v33 = vrot.slane %v2581_v15, 2  ;;  %v2456_v37 = vmul.f32 %v3648_v47, %v2356_v63  ;;  %v5525_v35 = vadd.f32 %v2568_v26, %v2567_v25  ;;  %v2576_v31 = vrot.slane %v5506_v27, 1 }
 0x4c3   : > { %v2457_v20 = vmul.f32 %v3649_v12, %v2356_v63  ;;  %v2450_v21 = vmul.f32 %v3650_v36, %v2341_v62  ;;  %v2590_v57 = vrot.slane %v5510_v44, 2  ;;  %v2596_v5 = vrot.slane %v2595_v48, 4 }
 0x4c4   : > { %v2604_v58 = vrot.slane %v2603_v11, 4  ;;  %v2610_v0 = vsel %vm560_vm0, %v2452_v51, 0.0  ;;  %v2618_v4 = vsel %vm560_vm0, %v2453_v32, 0.0  ;;  %v2451_v60 = vmul.f32 %v3651_v9, %v2341_v62  ;;  %v3655_v62 = vld [vmem:[%s4088_s15 + $0x158] sm:$0x3]  ;;  %v3657_v51 = vld [vmem:[%s4088_s15 + $0x148] sm:$0xff] }
 0x4c5   : > { %v2611_v40 = vadd.f32 %v2610_v0, %v2450_v21  ;;  %v2454_v59 = vmul.f32 %v3652_v13, %v2351_v34  ;;  %v5535_v43 = vadd.f32 %v2582_v33, %v2581_v15  ;;  %v2626_v10 = vsel %vm560_vm0, %v2456_v37, 0.0 }
 0x4c6   : > { %v2361_v24 = vpop.permute.xlu1 %2360  ;;  %v2634_v1 = vsel %vm560_vm0, %v2457_v20, 0.0  ;;  %v2455_v50 = vmul.f32 %v3653_v17, %v2351_v34  ;;  %v2376_v18 = vpop.permute.xlu0 %2375  ;;  %v2619_v14 = vadd.f32 %v2618_v4, %v2451_v60  ;;  %v2460_v25 = vmul.f32 %v3654_v16, %v2366_v6 }
 0x4c7   : > { %v2612_v54 = vrot.slane %v2611_v40, 4  ;;  %v2627_v23 = vadd.f32 %v2626_v10, %v2454_v59  ;;  %v2597_v41 = vadd.f32 %v2596_v5, %v2595_v48  ;;  %v2461_v46 = vmul.f32 %v3655_v62, %v2366_v6 }
 0x4c8   : > { %v2635_v63 = vadd.f32 %v2634_v1, %v2455_v50  ;;  %v2458_v61 = vmul.f32 %v3656_v52, %v2361_v24  ;;  %v2620_v8 = vrot.slane %v2619_v14, 4  ;;  %v2642_v26 = vsel %vm560_vm0, %v2460_v25, 0.0  ;;  %v3660_v1 = vld [vmem:[%s4088_s15 + $0x190] sm:$0x3] }
 0x4c9   : > { %v2613_v39 = vadd.f32 %v2612_v54, %v2611_v40  ;;  %v2628_v45 = vrot.slane %v2627_v23, 4  ;;  %v2605_v29 = vadd.f32 %v2604_v58, %v2603_v11  ;;  %v2459_v15 = vmul.f32 %v3657_v51, %v2361_v24  ;;  %v3658_v58 = vld [vmem:[%s4088_s15 + $0x170] sm:$0x3]  ;;  %v3659_v40 = vld [vmem:[%s4088_s15 + $0x178] sm:$0x3] }
 0x4ca   : > { %v2636_v30 = vrot.slane %v2635_v63, 4  ;;  %v2643_v55 = vadd.f32 %v2642_v26, %v2458_v61  ;;  %v2621_v34 = vadd.f32 %v2620_v8, %v2619_v14  ;;  %v2650_v48 = vsel %vm560_vm0, %v2461_v46, 0.0  ;;  %v2386_v20 = vpop.permute.xlu1 %2385  ;;  %v2371_v36 = vpop.permute.xlu0 %2370 }
 0x4cb   : > { %v2614_v32 = vrot.slane %v2613_v39, 2  ;;  %v2629_v33 = vadd.f32 %v2628_v45, %v2627_v23  ;;  %v2598_v6 = vrot.slane %v2597_v41, 2  ;;  %v2651_v12 = vadd.f32 %v2650_v48, %v2459_v15  ;;  %v3661_v23 = vld [vmem:[%s4088_s15 + $0x198] sm:$0x3]  ;;  %v3663_v15 = vld [vmem:[%s4088_s15 + $0x168] sm:$0xff] }
 0x4cc   : > { %v2637_v47 = vadd.f32 %v2636_v30, %v2635_v63  ;;  %v2644_v37 = vrot.slane %v2643_v55, 4  ;;  %v2622_v11 = vrot.slane %v2621_v34, 2  ;;  %v2464_v0 = vmul.f32 %v3658_v58, %v2376_v18  ;;  %v3662_v30 = vld [vmem:[%s4088_s15 + $0x160] sm:$0xff] }
 0x4cd   : > { %v2615_v21 = vadd.f32 %v2614_v32, %v2613_v39  ;;  %v2630_v5 = vrot.slane %v2629_v33, 2  ;;  %v2652_v60 = vrot.slane %v2651_v12, 4  ;;  %v2465_v13 = vmul.f32 %v3659_v40, %v2376_v18 }
 0x4ce   : > { %v2638_v4 = vrot.slane %v2637_v47, 2  ;;  %v2645_v9 = vadd.f32 %v2644_v37, %v2643_v55  ;;  %v2623_v24 = vadd.f32 %v2622_v11, %v2621_v34  ;;  %v2468_v17 = vmul.f32 %v3660_v1, %v2386_v20  ;;  %v2381_v8 = vpop.permute.xlu0 %2380 }
 0x4cf   : > { %v2616_v59 = vrot.slane %v2615_v21, 1  ;;  %v2631_v10 = vadd.f32 %v2630_v5, %v2629_v33  ;;  %v2653_v14 = vadd.f32 %v2652_v60, %v2651_v12  ;;  %v2469_v16 = vmul.f32 %v3661_v23, %v2386_v20 }
 0x4d0   : > { %v2639_v50 = vadd.f32 %v2638_v4, %v2637_v47  ;;  %v2646_v54 = vrot.slane %v2645_v9, 2  ;;  %v2584_v25 = vrot.slane %v5535_v43, 1  ;;  %v2591_v63 = vadd.f32 %v2590_v57, %v5510_v44  ;;  %v2396_v57 = vpop.permute.xlu1 %2395 }
 0x4d1   : > { %v2606_v62 = vrot.slane %v2605_v29, 2  ;;  %v2624_v18 = vrot.slane %v2623_v24, 1  ;;  %v2599_v46 = vadd.f32 %v2598_v6, %v2597_v41  ;;  %v2632_v52 = vrot.slane %v2631_v10, 1 }
 0x4d2   : > { %v2640_v61 = vrot.slane %v2639_v50, 1  ;;  %v2647_v39 = vadd.f32 %v2646_v54, %v2645_v9  ;;  %v2658_v45 = vsel %vm560_vm0, %v2464_v0, 0.0  ;;  %v2666_v26 = vsel %vm560_vm0, %v2465_v13, 0.0  ;;  %v2391_v40 = vpop.permute.xlu0 %2390 }
 0x4d3   : > { %v2462_v51 = vmul.f32 %v3662_v30, %v2371_v36  ;;  %v2463_v55 = vmul.f32 %v3663_v15, %v2371_v36  ;;  %v2617_v32 = vadd.f32 %v2616_v59, %v2615_v21  ;;  %v2654_v34 = vrot.slane %v2653_v14, 2 }
 0x4d4   : > { %v2674_v33 = vsel %vm560_vm0, %v2468_v17, 0.0  ;;  %v2682_v44 = vsel %vm560_vm0, %v2469_v16, 0.0  ;;  %v5560_v41 = vadd.f32 %v2624_v18, %v2623_v24  ;;  %v2592_v47 = vrot.slane %v2591_v63, 1  ;;  %v3664_v17 = vld [vmem:[%s4088_s15 + $0x1b0] sm:$0x3] }
 0x4d5   : > { %v2659_v48 = vadd.f32 %v2658_v45, %v2462_v51  ;;  %v2667_v6 = vadd.f32 %v2666_v26, %v2463_v55  ;;  %v2633_v37 = vadd.f32 %v2632_v52, %v2631_v10  ;;  %v5562_v12 = vadd.f32 %v2640_v61, %v2639_v50  ;;  %v2406_v10 = vpop.permute.xlu1 %2405  ;;  %v3668_v26 = vld [vmem:[%s4088_s15 + $0x1d0] sm:$0x3]  ;;  %v3669_v55 = vld [vmem:[%s4088_s15 + $0x1d8] sm:$0x3] }
 0x4d6   : > { %v2648_v20 = vrot.slane %v2647_v39, 1  ;;  %v2607_v11 = vadd.f32 %v2606_v62, %v2605_v29  ;;  %v2577_v36 = vadd.f32 %v2576_v31, %v5506_v27  ;;  %v2788_v21 = vsel %vm881_vm1, %v5478_v2, %v5473_v19  ;;  %v3666_v62 = vld [vmem:[%s4088_s15 + $0x180] sm:$0xff] }
 0x4d7   : > { %v2660_v5 = vrot.slane %v2659_v48, 4  ;;  %v2668_v58 = vrot.slane %v2667_v6, 4  ;;  %v5570_v0 = vadd.f32 %v2654_v34, %v2653_v14  ;;  %v2593_v4 = vadd.f32 %v2592_v47, %v2591_v63 }
 0x4d8   : > { %v2608_v9 = vrot.slane %v2607_v11, 1  ;;  %v2789_v60 = vsel %vm883_vm2, %v5513_v53, %v2788_v21  ;;  %v2600_v24 = vrot.slane %v2599_v46, 1  ;;  %v5577_v27 = vsel %vm881_vm1, %v2633_v37, %v2617_v32  ;;  %v3673_v21 = vld [vmem:[%s4088_s15 + $0x1f8] sm:$0x3] }
 0x4d9   : > { %v2661_v29 = vadd.f32 %v2660_v5, %v2659_v48  ;;  %v2669_v13 = vadd.f32 %v2668_v58, %v2667_v6  ;;  %v2790_v59 = vsel %vm885_vm3, %v5517_v56, %v2789_v60  ;;  %v2585_v2 = vadd.f32 %v2584_v25, %v5535_v43  ;;  %v2416_v34 = vpop.permute.xlu1 %2415  ;;  %v3670_v6 = vld [vmem:[%s4088_s15 + $0x1a0] sm:$0xff]  ;;  %v3672_v58 = vld [vmem:[%s4088_s15 + $0x1f0] sm:$0x3] }
 0x4da   : > { %v2609_v31 = vadd.f32 %v2608_v9, %v2607_v11  ;;  %v2791_v19 = vsel %vm887_vm4, %v5522_v49, %v2790_v59  ;;  %v2782_v56 = vsel %vm883_vm2, %v5495_v3, %v5490_v7  ;;  %v2472_v50 = vmul.f32 %v3664_v17, %v2396_v57  ;;  %v3665_v7 = vld [vmem:[%s4088_s15 + $0x1b8] sm:$0x3]  ;;  %v3674_v9 = vld [vmem:[%s4088_s15 + $0x1c0] sm:$0xff] }
 0x4db   : > { %v2662_v1 = vrot.slane %v2661_v29, 2  ;;  %v2792_v53 = vsel %vm889_vm5, %v2577_v36, %v2791_v19  ;;  %v5587_v54 = vadd.f32 %v2648_v20, %v2647_v39  ;;  %v2601_v49 = vadd.f32 %v2600_v24, %v2599_v46  ;;  %v3667_v46 = vld [vmem:[%s4088_s15 + $0x188] sm:$0xff] }
 0x4dc   : > { %v2793_v14 = vsel %vm891_vm6, %v2593_v4, %v2792_v53  ;;  %v2783_v43 = vsel %vm885_vm3, %v5515_v22, %v2782_v56  ;;  %v2670_v23 = vrot.slane %v2669_v13, 2  ;;  %v2473_v3 = vmul.f32 %v3665_v7, %v2396_v57  ;;  %v3671_v20 = vld [vmem:[%s4088_s15 + $0x1a8] sm:$0xff] }
 0x4dd   : > { %v2794_v16 = vsel %vm893_vm7, %v2609_v31, %v2793_v14  ;;  %v2784_v25 = vsel %vm887_vm4, %v5520_v38, %v2783_v43  ;;  %v2656_v63 = vrot.slane %v5570_v0, 1  ;;  %v2466_v18 = vmul.f32 %v3666_v62, %v2381_v8  ;;  %v2401_v38 = vpop.permute.xlu0 %2400  ;;  %v3675_v24 = vld [vmem:[%s4088_s15 + $0x1c8] sm:$0xff]  ;;  %v3676_v43 = vld [vmem:[%s4088_s15 + $0x1e0] sm:$0xff] }
 0x4de   : > { %2877 = vmatprep.mubr.f32.mxu1 %v2794_v16  ;;  %3006 = vst [vmem:[%s5598_s29 + $0x8] sm:$0xff] %v2794_v16  ;;  %v2785_v22 = vsel %vm889_vm5, %v5525_v35, %v2784_v25  ;;  %v2467_v52 = vmul.f32 %v3667_v46, %v2381_v8  ;;  %v5605_v61 = vadd.f32 %v2662_v1, %v2661_v29  ;;  %v2690_v45 = vsel %vm560_vm0, %v2472_v50, 0.0  ;;  %v3677_v16 = vld [vmem:[%s4088_s15 + $0x1e8] sm:$0xff]  ;;  %s3014_s15 = sand.u32 1, %s3870_s28  }
 0x4df   : > { %v2786_v39 = vsel %vm891_vm6, %v2585_v2, %v2785_v22  ;;  %v2476_v30 = vmul.f32 %v3668_v26, %v2406_v10  ;;  %v2675_v15 = vadd.f32 %v2674_v33, %v2466_v18  ;;  %v2477_v32 = vmul.f32 %v3669_v55, %v2406_v10  ;;  %s5883_s14 = scalar_lea.sflag [#allocation5], %s3014_s15 }
 0x4e0   : > { %v2787_v51 = vsel %vm893_vm7, %v2601_v49, %v2786_v39  ;;  %v2683_v35 = vadd.f32 %v2682_v44, %v2467_v52  ;;  %v5612_v8 = vadd.f32 %v2670_v23, %v2669_v13  ;;  %v2698_v57 = vsel %vm560_vm0, %v2473_v3, 0.0 }
 0x4e1   : > { %2878 = vmatmul.mubr.f32.vlgmr.msra.gmra.mrb[0].mxu1 %v2787_v51  ;;  %3005 = vst [vmem:[%s5598_s29] sm:$0xff] %v2787_v51  ;;  %v2706_v48 = vsel %vm560_vm0, %v2476_v30, 0.0  ;;  %v2470_v47 = vmul.f32 %v3670_v6, %v2391_v40  ;;  %v2676_v37 = vrot.slane %v2675_v15, 4  ;;  %v2714_v44 = vsel %vm560_vm0, %v2477_v32, 0.0  ;;  %v2411_v19 = vpop.permute.xlu0 %2410 }
 0x4e2   : > { %v2684_v33 = vrot.slane %v2683_v35, 4  ;;  %v2471_v11 = vmul.f32 %v3671_v20, %v2391_v40  ;;  %v2480_v36 = vmul.f32 %v3672_v58, %v2416_v34  ;;  %v2481_v4 = vmul.f32 %v3673_v21, %v2416_v34 }
 0x4e3   : > { %v2691_v5 = vadd.f32 %v2690_v45, %v2470_v47  ;;  %v2474_v60 = vmul.f32 %v3674_v9, %v2401_v38  ;;  %v2677_v29 = vadd.f32 %v2676_v37, %v2675_v15  ;;  %v2475_v31 = vmul.f32 %v3675_v24, %v2401_v38 }
 0x4e4   : > { %v2685_v13 = vadd.f32 %v2684_v33, %v2683_v35  ;;  %v2699_v59 = vadd.f32 %v2698_v57, %v2471_v11  ;;  %v2722_v10 = vsel %vm560_vm0, %v2480_v36, 0.0  ;;  %v2730_v40 = vsel %vm560_vm0, %v2481_v4, 0.0 }
 0x4e5   : > { %v2692_v2 = vrot.slane %v2691_v5, 4  ;;  %v2707_v1 = vadd.f32 %v2706_v48, %v2474_v60  ;;  %v2678_v53 = vrot.slane %v2677_v29, 2  ;;  %v2715_v50 = vadd.f32 %v2714_v44, %v2475_v31 }
 0x4e6   : > { %v2686_v56 = vrot.slane %v2685_v13, 2  ;;  %v2700_v17 = vrot.slane %v2699_v59, 4  ;;  %v2478_v23 = vmul.f32 %v3676_v43, %v2411_v19  ;;  %v2479_v25 = vmul.f32 %v3677_v16, %v2411_v19  ;;  %v495_v43 = vld [vmem:[%s6001_s3] sm:$0x3] }
 0x4e7   : > { %v2693_v14 = vadd.f32 %v2692_v2, %v2691_v5  ;;  %v2708_v49 = vrot.slane %v2707_v1, 4  ;;  %v2679_v7 = vadd.f32 %v2678_v53, %v2677_v29  ;;  %v2716_v62 = vrot.slane %v2715_v50, 4 }
 0x4e8   : > { %v2687_v3 = vadd.f32 %v2686_v56, %v2685_v13  ;;  %v2701_v22 = vadd.f32 %v2700_v17, %v2699_v59  ;;  %v2723_v52 = vadd.f32 %v2722_v10, %v2478_v23  ;;  %v2731_v38 = vadd.f32 %v2730_v40, %v2479_v25 }
 0x4e9   : > { %v2694_v18 = vrot.slane %v2693_v14, 2  ;;  %v2709_v46 = vadd.f32 %v2708_v49, %v2707_v1  ;;  %v2664_v39 = vrot.slane %v5605_v61, 1  ;;  %v2672_v45 = vrot.slane %v5612_v8, 1 }
 0x4ea   : > { %v2702_v26 = vrot.slane %v2701_v22, 2  ;;  %v2717_v30 = vadd.f32 %v2716_v62, %v2715_v50  ;;  %v2724_v35 = vrot.slane %v2723_v52, 4  ;;  %v2732_v55 = vrot.slane %v2731_v38, 4 }
 0x4eb   : > { %v2695_v51 = vadd.f32 %v2694_v18, %v2693_v14  ;;  %v2710_v15 = vrot.slane %v2709_v46, 2  ;;  %v2680_v32 = vrot.slane %v2679_v7, 1  ;;  %v2688_v34 = vrot.slane %v2687_v3, 1 }
 0x4ec   : > { %v2703_v57 = vadd.f32 %v2702_v26, %v2701_v22  ;;  %v2718_v48 = vrot.slane %v2717_v30, 2  ;;  %v2725_v37 = vadd.f32 %v2724_v35, %v2723_v52  ;;  %v2733_v33 = vadd.f32 %v2732_v55, %v2731_v38 }
 0x4ed   : > { %v2696_v6 = vrot.slane %v2695_v51, 1  ;;  %v2711_v47 = vadd.f32 %v2710_v15, %v2709_v46  ;;  %v2657_v44 = vadd.f32 %v2656_v63, %v5570_v0  ;;  %v2665_v20 = vadd.f32 %v2664_v39, %v5605_v61  ;;  %v499_v39 = vld [vmem:[%s6002_s4 + $0x18] sm:$0xff] }
 0x4ee   : > { %v2704_v11 = vrot.slane %v2703_v57, 1  ;;  %v2719_v5 = vadd.f32 %v2718_v48, %v2717_v30  ;;  %v2673_v58 = vadd.f32 %v2672_v45, %v5612_v8  ;;  %v2726_v21 = vrot.slane %v2725_v37, 2  ;;  %v496_v45 = vld [vmem:[%s6002_s4] sm:$0xff]  ;;  %v498_v30 = vld [vmem:[%s6002_s4 + $0x10] sm:$0xff]  ;;  %v503_v15 = vld [vmem:[%s6002_s4 + $0x38] sm:$0xff] }
 0x4ef   : > { %v2712_v36 = vrot.slane %v2711_v47, 1  ;;  %v2734_v4 = vrot.slane %v2733_v33, 2  ;;  %v2802_v9 = vsel %vm881_vm1, %v5562_v12, %v5560_v41  ;;  %v2681_v60 = vadd.f32 %v2680_v32, %v2679_v7  ;;  %v500_v32 = vld [vmem:[%s6002_s4 + $0x20] sm:$0xff]  ;;  %v507_v48 = vld [vmem:[%s6002_s4 + $0x58] sm:$0xff] }
 0x4f0   : > { %v2689_v29 = vadd.f32 %v2688_v34, %v2687_v3  ;;  %v2720_v13 = vrot.slane %v2719_v5, 1  ;;  %v2697_v59 = vadd.f32 %v2696_v6, %v2695_v51  ;;  %v2705_v24 = vadd.f32 %v2704_v11, %v2703_v57  ;;  %v501_v51 = vld [vmem:[%s6002_s4 + $0x28] sm:$0xff]  ;;  %v502_v34 = vld [vmem:[%s6002_s4 + $0x30] sm:$0xff] }
 0x4f1   : > { %v2727_v31 = vadd.f32 %v2726_v21, %v2725_v37  ;;  %v2735_v0 = vadd.f32 %v2734_v4, %v2733_v33  ;;  %v2803_v61 = vsel %vm883_vm2, %v2657_v44, %v2802_v9  ;;  %v2713_v19 = vadd.f32 %v2712_v36, %v2711_v47  ;;  %v505_v57 = vld [vmem:[%s6002_s4 + $0x48] sm:$0xff]  ;;  %v504_v37 = vld [vmem:[%s6002_s4 + $0x40] sm:$0xff]  ;;  %v506_v33 = vld [vmem:[%s6002_s4 + $0x50] sm:$0xff] }
 0x4f2   : > { %v2721_v63 = vadd.f32 %v2720_v13, %v2719_v5  ;;  %v2796_v8 = vsel %vm883_vm2, %v5587_v54, %v5577_v27  ;;  %v2804_v41 = vsel %vm885_vm3, %v2673_v58, %v2803_v61  ;;  %v2742_v23 = vrot.slane %v495_v43, %v4589_v28  ;;  %v509_v44 = vld [vmem:[%s6002_s4 + $0x68] sm:$0xff]  ;;  %v508_v58 = vld [vmem:[%s6002_s4 + $0x60] sm:$0xff]  ;;  %v510_v36 = vld [vmem:[%s6002_s4 + $0x70] sm:$0xff] }
 0x4f3   : > { %v2736_v2 = vrot.slane %v2735_v0, 1  ;;  %v2728_v12 = vrot.slane %v2727_v31, 1  ;;  %v2797_v10 = vsel %vm885_vm3, %v2665_v20, %v2796_v8  ;;  %v2805_v40 = vsel %vm887_vm4, %v2689_v29, %v2804_v41  ;;  %v511_v20 = vld [vmem:[%s6002_s4 + $0x78] sm:$0xff]  ;;  %v513_v21 = vld [vmem:[%s6002_s4 + $0x88] sm:$0xff]  ;;  %v512_v29 = vld [vmem:[%s6002_s4 + $0x80] sm:$0xff] }
 0x4f4   : > { %v2798_v1 = vsel %vm887_vm4, %v2681_v60, %v2797_v10  ;;  %v2806_v56 = vsel %vm889_vm5, %v2705_v24, %v2805_v40  ;;  %v2746_v16 = vrot.slane %v495_v43, %v4592_v42  ;;  %v497_v42 = vld [vmem:[%s6002_s4 + $0x8] sm:$0xff]  ;;  %v3352_v35 = vpack.c.bf16 %v498_v30, %v496_v45  ;;  %v515_v4 = vld [vmem:[%s6002_s4 + $0x98] sm:$0xff]  ;;  %v514_v13 = vld [vmem:[%s6002_s4 + $0x90] sm:$0xff] }
 0x4f5   : > { %v2737_v53 = vadd.f32 %v2736_v2, %v2735_v0  ;;  %v2729_v17 = vadd.f32 %v2728_v12, %v2727_v31  ;;  %v2799_v50 = vsel %vm889_vm5, %v2697_v59, %v2798_v1  ;;  %v2807_v27 = vsel %vm891_vm6, %v2721_v63, %v2806_v56  ;;  %v517_v59 = vld [vmem:[%s6002_s4 + $0xa8] sm:$0xff]  ;;  %v519_v24 = vld [vmem:[%s6002_s4 + $0xb8] sm:$0xff]  ;;  %v516_v63 = vld [vmem:[%s6002_s4 + $0xa0] sm:$0xff] }
 0x4f6   : > { %v2800_v54 = vsel %vm891_vm6, %v2713_v19, %v2799_v50  ;;  %v3350_v26 = vpack.c.bf16 %v499_v39, %v497_v42  ;;  %v3354_v55 = vpack.c.bf16 %v503_v15, %v501_v51  ;;  %v3356_v6 = vpack.c.bf16 %v502_v34, %v500_v32  ;;  %v518_v61 = vld [vmem:[%s6002_s4 + $0xb0] sm:$0xff]  ;;  %v521_v19 = vld [vmem:[%s6002_s4 + $0xc8] sm:$0xff]  ;;  %v523_v8 = vld [vmem:[%s6002_s4 + $0xd8] sm:$0xff] }
 0x4f7   : > { %v2808_v14 = vsel %vm893_vm7, %v2737_v53, %v2807_v27  ;;  %v2801_v49 = vsel %vm893_vm7, %v2729_v17, %v2800_v54  ;;  %v3358_v47 = vpack.c.bf16 %v507_v48, %v505_v57  ;;  %v3360_v11 = vpack.c.bf16 %v506_v33, %v504_v37  ;;  %v520_v12 = vld [vmem:[%s6002_s4 + $0xc0] sm:$0xff]  ;;  %v522_v10 = vld [vmem:[%s6002_s4 + $0xd0] sm:$0xff]  ;;  %v525_v40 = vld [vmem:[%s6002_s4 + $0xe8] sm:$0xff] }
 0x4f8   : > { %2883 = vmatprep.mubr.f32.mxu1 %v2808_v14  ;;  %3008 = vst [vmem:[%s5598_s29 + $0x18] sm:$0xff] %v2808_v14  ;;  %3007 = vst [vmem:[%s5598_s29 + $0x10] sm:$0xff] %v2801_v49  ;;  %3351 = vmatprep.subr.bf16.mxu0 %v3350_v26  ;;  %v3362_v5 = vpack.c.bf16 %v511_v20, %v509_v44  ;;  %v3364_v9 = vpack.c.bf16 %v510_v36, %v508_v58  ;;  %v527_v1 = vld [vmem:[%s6002_s4 + $0xf8] sm:$0xff]  ;;  %v524_v17 = vld [vmem:[%s6002_s4 + $0xe0] sm:$0xff]  ;;  %s3804_s29 = smov [#allocation4]  }
 0x4f9   : > { %2884 = vmatmul.mubr.f32.gmra.mrb[2].mxu1 %v2801_v49  ;;  %3414 = vmatprep.subr.bf16.mxu1 %v3350_v26  ;;  %v3366_v60 = vpack.c.bf16 %v515_v4, %v513_v21  ;;  %v3368_v31 = vpack.c.bf16 %v514_v13, %v512_v29  ;;  %v3370_v0 = vpack.c.bf16 %v519_v24, %v517_v59  ;;  %v526_v50 = vld [vmem:[%s6002_s4 + $0xf0] sm:$0xff]  ;;  %v529_v27 = vld [vmem:[%s6002_s4 + $0x108] sm:$0xff]  ;;  %v531_v54 = vld [vmem:[%s6002_s4 + $0x118] sm:$0xff]  ;;  %s3682_s21 = sshll.u32 %s3804_s29, 4  ;;  %s3683_s21 = int_to_ptr.vmem [resolvable:$false] %s3682_s21 }
 0x4fa   : > { %3353 = vmatpush1.bf16.msra.mxu0 %v3352_v35  ;;  %3430 = vmatpush1.bf16.msra.mxu1 %v3352_v35  ;;  %v3372_v2 = vpack.c.bf16 %v518_v61, %v516_v63  ;;  %v3374_v41 = vpack.c.bf16 %v523_v8, %v521_v19  ;;  %v3376_v53 = vpack.c.bf16 %v522_v10, %v520_v12  ;;  %v528_v43 = vld [vmem:[%s6002_s4 + $0x100] sm:$0xff]  ;;  %v539_v42 = vld [vmem:[%s6002_s4 + $0x158] sm:$0xff]  ;;  %v538_v30 = vld [vmem:[%s6002_s4 + $0x150] sm:$0xff]  ;;  %s3684_s16 = scalar_lea.vmem %s3683_s21, 1024  ;;  %p3685_p0 = scmp.lt.s32.totalorder %s5869_s19, %s3683_s21 }
 0x4fb   : > { %3355 = vmatprep.subr.bf16.mxu0 %v3354_v55  ;;  %3415 = vmatprep.subr.bf16.mxu1 %v3354_v55  ;;  %v3378_v56 = vpack.c.bf16 %v527_v1, %v525_v40  ;;  %v3380_v14 = vpack.c.bf16 %v526_v50, %v524_v17  ;;  %v3382_v49 = vpack.c.bf16 %v531_v54, %v529_v27  ;;  %v536_v26 = vld [vmem:[%s6002_s4 + $0x140] sm:$0xff]  ;;  %v541_v51 = vld [vmem:[%s6002_s4 + $0x168] sm:$0xff]  ;;  %v543_v15 = vld [vmem:[%s6002_s4 + $0x178] sm:$0xff]  ;;  %p3686_p1 = scmp.lt.s32.totalorder %s3684_s16, %s3678_s17 }
 0x4fc   : > { %v3392_v35 = vpack.c.bf16 %v538_v30, %v536_v26  ;;  %v3394_v55 = vpack.c.bf16 %v543_v15, %v541_v51  ;;  %v540_v32 = vld [vmem:[%s6002_s4 + $0x160] sm:$0xff]  ;;  %v542_v34 = vld [vmem:[%s6002_s4 + $0x170] sm:$0xff]  ;;  %v545_v57 = vld [vmem:[%s6002_s4 + $0x188] sm:$0xff] }
 0x4fd   : > { %v547_v48 = vld [vmem:[%s6002_s4 + $0x198] sm:$0xff]  ;;  %v544_v37 = vld [vmem:[%s6002_s4 + $0x180] sm:$0xff]  ;;  %v546_v33 = vld [vmem:[%s6002_s4 + $0x190] sm:$0xff]  ;;  %p3687_p2 = por %p3686_p1, %p3685_p0 }
 0x4fe   : > { %3357 = vmatpush1.bf16.msra.mxu0 %v3356_v6  ;;  %3431 = vmatpush1.bf16.msra.mxu1 %v3356_v6  ;;  %v3396_v6 = vpack.c.bf16 %v542_v34, %v540_v32  ;;  %v3400_v44 = vpack.c.bf16 %v546_v33, %v544_v37  ;;  %v551_v63 = vld [vmem:[%s6002_s4 + $0x1b8] sm:$0xff]  ;;  %v550_v61 = vld [vmem:[%s6002_s4 + $0x1b0] sm:$0xff]  ;;  %v553_v19 = vld [vmem:[%s6002_s4 + $0x1c8] sm:$0xff] }
 0x4ff   : > { %3359 = vmatprep.subr.bf16.mxu0 %v3358_v47  ;;  %3416 = vmatprep.subr.bf16.mxu1 %v3358_v47  ;;  %v3398_v47 = vpack.c.bf16 %v547_v48, %v545_v57  ;;  %v555_v8 = vld [vmem:[%s6002_s4 + $0x1d8] sm:$0xff]  ;;  %v552_v12 = vld [vmem:[%s6002_s4 + $0x1c0] sm:$0xff]  ;;  %v554_v10 = vld [vmem:[%s6002_s4 + $0x1d0] sm:$0xff]  ;;  %p3688_p3 = pnand %p3687_p2, %p3681_p13 }
 0x500   : > { %v557_v40 = vld [vmem:[%s6002_s4 + $0x1e8] sm:$0xff]  ;;  %v559_v1 = vld [vmem:[%s6002_s4 + $0x1f8] sm:$0xff]  ;;  %v556_v17 = vld [vmem:[%s6002_s4 + $0x1e0] sm:$0xff] }
 0x501   : > { %v558_v50 = vld [vmem:[%s6002_s4 + $0x1f0] sm:$0xff] }
 0x502   : > { %3361 = vmatpush1.bf16.msra.mxu0 %v3360_v11  ;;  %3432 = vmatpush1.bf16.msra.mxu1 %v3360_v11  ;;  %v3412_v27 = vpack.c.bf16 %v558_v50, %v556_v17 }
 0x503   : > { %3363 = vmatprep.subr.bf16.mxu0 %v3362_v5  ;;  %3417 = vmatprep.subr.bf16.mxu1 %v3362_v5 }
 0x506   : > { %3365 = vmatpush1.bf16.msra.mxu0 %v3364_v9  ;;  %3433 = vmatpush1.bf16.msra.mxu1 %v3364_v9 }
 0x507   : > { %3367 = vmatprep.subr.bf16.mxu0 %v3366_v60  ;;  %3418 = vmatprep.subr.bf16.mxu1 %v3366_v60 }
 0x50a   : > { %3369 = vmatpush1.bf16.msra.mxu0 %v3368_v31  ;;  %3434 = vmatpush1.bf16.msra.mxu1 %v3368_v31 }
 0x50b   : > { %3371 = vmatprep.subr.bf16.mxu0 %v3370_v0  ;;  %3419 = vmatprep.subr.bf16.mxu1 %v3370_v0  ;;  %v549_v0 = vld [vmem:[%s6002_s4 + $0x1a8] sm:$0xff] }
 0x50e   : > { %3373 = vmatpush1.bf16.msra.mxu0 %v3372_v2  ;;  %3435 = vmatpush1.bf16.msra.mxu1 %v3372_v2 }
 0x50f   : > { %3375 = vmatprep.subr.bf16.mxu0 %v3374_v41  ;;  %3420 = vmatprep.subr.bf16.mxu1 %v3374_v41  ;;  %v3406_v41 = vpack.c.bf16 %v555_v8, %v553_v19 }
 0x512   : > { %3377 = vmatpush1.bf16.msra.mxu0 %v3376_v53  ;;  %3436 = vmatpush1.bf16.msra.mxu1 %v3376_v53  ;;  %v3408_v53 = vpack.c.bf16 %v554_v10, %v552_v12 }
 0x513   : > { %3379 = vmatprep.subr.bf16.mxu0 %v3378_v56  ;;  %3421 = vmatprep.subr.bf16.mxu1 %v3378_v56  ;;  %v3410_v56 = vpack.c.bf16 %v559_v1, %v557_v40 }
 0x516   : > { %3381 = vmatpush1.bf16.msra.mxu0 %v3380_v14  ;;  %3437 = vmatpush1.bf16.msra.mxu1 %v3380_v14 }
 0x517   : > { %3383 = vmatprep.subr.bf16.mxu0 %v3382_v49  ;;  %3422 = vmatprep.subr.bf16.mxu1 %v3382_v49 }
 0x5b4   : > { %v2879_v25 = vpop.f32.mrb[0].mxu1 }
 0x5b5   : > { %v5659_v7 = vadd.f32 %v2879_v25, %v2742_v23  ;;  %v2881_v3 = vpop.f32.mrb[1].mxu1  ;;  %v535_v25 = vld [vmem:[%s6002_s4 + $0x138] sm:$0xff] }
 0x5b6   : > { %v5661_v22 = vadd.f32 %v2881_v3, %v2746_v16 }
 0x5b8   : > { %v2890_v62 = vmax.f32 %v5659_v7, %v5661_v22 }
 0x5ba   : > { %2891 = vmax.xlane.f32.xlu1 %v2890_v62 }
 0x5cc   : > { %v2885_v18 = vpop.f32.mrb[2].mxu1 }
 0x5cd   : > { %v5665_v46 = vadd.f32 %v2885_v18, %v2742_v23  ;;  %v2887_v52 = vpop.f32.mrb[3].mxu1  ;;  %v530_v23 = vld [vmem:[%s6002_s4 + $0x110] sm:$0xff]  ;;  %v532_v18 = vld [vmem:[%s6002_s4 + $0x120] sm:$0xff] }
 0x5ce   : > { %v5667_v38 = vadd.f32 %v2887_v52, %v2746_v16  ;;  %v533_v16 = vld [vmem:[%s6002_s4 + $0x128] sm:$0xff]  ;;  %v3384_v3 = vpack.c.bf16 %v530_v23, %v528_v43  ;;  %v534_v52 = vld [vmem:[%s6002_s4 + $0x130] sm:$0xff] }
 0x5cf   : > { %v3386_v62 = vpack.c.bf16 %v535_v25, %v533_v16  ;;  %v3388_v39 = vpack.c.bf16 %v534_v52, %v532_v18 }
 0x5d0   : > { %v2893_v28 = vmax.f32 %v5665_v46, %v5667_v38  ;;  %3385 = vmatpush1.bf16.msra.mxu0 %v3384_v3  ;;  %3438 = vmatpush1.bf16.msra.mxu1 %v3384_v3 }
 0x5d1   : > { %3387 = vmatprep.subr.bf16.mxu0 %v3386_v62  ;;  %3423 = vmatprep.subr.bf16.mxu1 %v3386_v62 }
 0x5d2   : > { %2894 = vmax.xlane.f32.xlu0 %v2893_v28  ;;  %v537_v28 = vld [vmem:[%s6002_s4 + $0x148] sm:$0xff] }
 0x5d3   : > { %v3390_v45 = vpack.c.bf16 %v539_v42, %v537_v28 }
 0x5d4   : > { %3389 = vmatpush1.bf16.msra.mxu0 %v3388_v39  ;;  %3439 = vmatpush1.bf16.msra.mxu1 %v3388_v39 }
 0x5d5   : > { %3391 = vmatprep.subr.bf16.mxu0 %v3390_v45  ;;  %3424 = vmatprep.subr.bf16.mxu1 %v3390_v45 }
 0x5d8   : > { %3393 = vmatpush1.bf16.msra.mxu0 %v3392_v35  ;;  %3440 = vmatpush1.bf16.msra.mxu1 %v3392_v35 }
 0x5d9   : > { %3395 = vmatprep.subr.bf16.mxu0 %v3394_v55  ;;  %3425 = vmatprep.subr.bf16.mxu1 %v3394_v55 }
 0x5dc   : > { %3397 = vmatpush1.bf16.msra.mxu0 %v3396_v6  ;;  %3441 = vmatpush1.bf16.msra.mxu1 %v3396_v6 }
 0x5dd   : > { %3399 = vmatprep.subr.bf16.mxu0 %v3398_v47  ;;  %3426 = vmatprep.subr.bf16.mxu1 %v3398_v47 }
 0x5e0   : > { %3401 = vmatpush1.bf16.msra.mxu0 %v3400_v44  ;;  %3442 = vmatpush1.bf16.msra.mxu1 %v3400_v44 }
 0x647   : > { %v2892_v20 = vpop.xlane.xlu1 %2891 }
 0x648   : > { %v2896_v11 = vsub.f32 %v5659_v7, %v2892_v20  ;;  %v2897_v5 = vsub.f32 %v5661_v22, %v2892_v20 }
 0x64a   : > { %v2900_v58 = vmul.f32 1.442695, %v2896_v11  ;;  %v2902_v36 = vmul.f32 1.442695, %v2897_v5 }
 0x64c   : > { %3597 = vpow2.f32 %v2900_v58 }
 0x64d   : > { %3599 = vpow2.f32 %v2902_v36 }
 0x656   : > { %v3598_v21 = vpop.eup %3597 }
 0x657   : > { %v3600_v4 = vpop.eup %3599 }
 0x658   : > { %v2908_v9 = vadd.f32 %v3600_v4, %v3598_v21 }
 0x65a   : > { %2909 = vadd.xlane.f32.xlu0 %v2908_v9 }
 0x65f   : > { %v2895_v60 = vpop.xlane.xlu0 %2894 }
 0x660   : > { %v2898_v29 = vsub.f32 %v5665_v46, %v2895_v60  ;;  %v2899_v13 = vsub.f32 %v5667_v38, %v2895_v60  ;;  %v548_v46 = vld [vmem:[%s6002_s4 + $0x1a0] sm:$0xff]  ;;  %v3402_v38 = vpack.c.bf16 %v551_v63, %v549_v0 }
 0x661   : > { %v3404_v2 = vpack.c.bf16 %v550_v61, %v548_v46 }
 0x662   : > { %v2904_v59 = vmul.f32 1.442695, %v2898_v29  ;;  %v2906_v24 = vmul.f32 1.442695, %v2899_v13  ;;  %3403 = vmatprep.subr.bf16.mxu0 %v3402_v38  ;;  %3427 = vmatprep.subr.bf16.mxu1 %v3402_v38 }
 0x663   : > { %3405 = vmatpush1.bf16.msra.mxu0 %v3404_v2  ;;  %3443 = vmatpush1.bf16.msra.mxu1 %v3404_v2 }
 0x664   : > { %3601 = vpow2.f32 %v2904_v59  ;;  %3407 = vmatprep.subr.bf16.mxu0 %v3406_v41  ;;  %3428 = vmatprep.subr.bf16.mxu1 %v3406_v41 }
 0x665   : > { %3603 = vpow2.f32 %v2906_v24 }
 0x667   : > { %3409 = vmatpush1.bf16.msra.mxu0 %v3408_v53  ;;  %3444 = vmatpush1.bf16.msra.mxu1 %v3408_v53 }
 0x668   : > { %3411 = vmatprep.subr.bf16.mxu0 %v3410_v56  ;;  %3429 = vmatprep.subr.bf16.mxu1 %v3410_v56 }
 0x66b   : > { %3413 = vmatpush1.bf16.msra.mxu0 %v3412_v27  ;;  %3445 = vmatpush1.bf16.msra.mxu1 %v3412_v27 }
 0x66e   : > { %v3602_v7 = vpop.eup %3601 }
 0x66f   : > { %v3604_v31 = vpop.eup %3603 }
 0x670   : > { %v2911_v22 = vadd.f32 %v3604_v31, %v3602_v7 }
 0x672   : > { %2912 = vadd.xlane.f32.xlu1 %v2911_v22 }
 0x6e7   : > { %v2910_v54 = vpop.xlane.xlu0 %2909 }
 0x6e8   : > { %3605 = vrcp.f32 %v2910_v54 }
 0x6f2   : > { %v3606_v14 = vpop.eup %3605 }
 0x6f3   : > { %v2915_v49 = vmul.f32 %v3606_v14, %v3598_v21  ;;  %v2916_v43 = vmul.f32 %v3606_v14, %v3600_v4 }
 0x6f5   : > { %2984 = vmatprep.mubr.f32.mxu0 %v2916_v43 }
 0x6f6   : > { %2985 = vmatmul.mubr.f32.vlgmr.msra.gmra.mrb[4].mxu0 %v2915_v49 }
 0x6ff   : > { %v2913_v23 = vpop.xlane.xlu1 %2912 }
 0x700   : > { %3607 = vrcp.f32 %v2913_v23 }
 0x70a   : > { %v3608_v16 = vpop.eup %3607 }
 0x70b   : > { %v2918_v25 = vmul.f32 %v3608_v16, %v3602_v7  ;;  %v2919_v3 = vmul.f32 %v3608_v16, %v3604_v31 }
 0x70d   : > { %2990 = vmatprep.mubr.f32.mxu1 %v2919_v3 }
 0x70e   : > { %2991 = vmatmul.mubr.f32.vlgmr.msra.gmra.mrb[4].mxu1 %v2918_v25 }
 0x70f   : > { %3691 = shalt.err (!%p3688_p3)
}
 0x710   : > { %s3692_s28 = scalar_lea.hbm %s5881_s9, 512  ;;  %s3696_s8 = scalar_lea.hbm %s6004_s6, 1536 }
 0x711   : > { %p3693_p4 = scmp.ne.s32.totalorder %s5881_s9, %s3692_s28  ;;  %p3697_p9 = scmp.lt.u32.totalorder %s5881_s9, %s6004_s6 }
 0x712   : > { %p3698_p10 = scmp.lt.u32.totalorder %s3696_s8, %s3692_s28  ;;  %p3700_p12 = scmp.lt.u32.totalorder %s3692_s28, %s5881_s9 }
 0x713   : > { %p3694_p7 = pnand %p3693_p4, %p3889_p5 }
 0x714   : > { %p3699_p11 = por %p3698_p10, %p3697_p9 }
 0x715   : > { %p3695_p8 = pneg %p3694_p7 }
 0x716   : > { %p3701_p13 = por %p3700_p12, %p3699_p11 }
 0x718   : > { %p3702_p0 = pnand %p3701_p13, %p3695_p8 }
 0x71a   : > { %3705 = shalt.err (!%p3702_p0)
}
 0x71b   : > { %s3805_s17 = smov 256   ;;  %s3806_s21 = smov 16  }
 0x71c   : > { %3447 = dma.vmem_to_hbm [thread:$0]  (%p3889_p5), %s5869_s19, 512, %s5881_s9, %s5883_s14, %s3805_s17, %s3805_s17, %s3806_s21  }
 0x71d   : > { %s5914_s18 = scalar_lea.hbm %s6005_s7, %s5875_s23  ;;  %s3706_s15 = scalar_lea.vmem %s5871_s20, 512 }
 0x71e   : > { %p3707_p1 = scmp.ne.s32.totalorder %s5871_s20, %s3706_s15  ;;  %s3807_s8 = smov [#allocation6]  }
 0x71f   : > { %s3710_s13 = sshll.u32 %s3807_s8, 4  ;;  %s3711_s13 = int_to_ptr.vmem [resolvable:$false] %s3710_s13 }
 0x720   : > { %p3708_p2 = pnand %p3707_p1, %p3889_p5  ;;  %s3712_s29 = scalar_lea.vmem %s3711_s13, 1024 }
 0x721   : > { %p3713_p4 = scmp.lt.s32.totalorder %s5871_s20, %s3711_s13  ;;  %p3714_p7 = scmp.lt.s32.totalorder %s3712_s29, %s3706_s15 }
 0x722   : > { %p3709_p3 = pneg %p3708_p2 }
 0x723   : > { %p3715_p8 = por %p3714_p7, %p3713_p4 }
 0x725   : > { %p3716_p9 = pnand %p3715_p8, %p3709_p3 }
 0x727   : > { %3719 = shalt.err (!%p3716_p9)
}
 0x728   : > { %s3720_s19 = scalar_lea.hbm %s5914_s18, 512  ;;  %s3724_s28 = scalar_lea.hbm %s6005_s7, 1536 }
 0x729   : > { %p3721_p10 = scmp.ne.s32.totalorder %s5914_s18, %s3720_s19  ;;  %p3725_p13 = scmp.lt.u32.totalorder %s5914_s18, %s6005_s7 }
 0x72a   : > { %p3726_p0 = scmp.lt.u32.totalorder %s3724_s28, %s3720_s19  ;;  %p3728_p2 = scmp.lt.u32.totalorder %s3720_s19, %s5914_s18 }
 0x72b   : > { %p3722_p11 = pnand %p3721_p10, %p3889_p5 }
 0x72c   : > { %p3727_p1 = por %p3726_p0, %p3725_p13 }
 0x72d   : > { %p3723_p12 = pneg %p3722_p11 }
 0x72e   : > { %p3729_p3 = por %p3728_p2, %p3727_p1 }
 0x730   : > { %p3730_p4 = pnand %p3729_p3, %p3723_p12 }
 0x732   : > { %3733 = shalt.err (!%p3730_p4)
}
 0x733   : > { %3448 = dma.vmem_to_hbm [thread:$0]  (%p3889_p5), %s5871_s20, 512, %s5914_s18, %s5883_s14, %s3805_s17, %s3805_s17, %s3806_s21  }
 0x734   : > { %s278_s15 = scalar_lea.vmem [#allocation2], %s4267_s22  ;;  %s5948_s16 = scalar_lea.hbm %s6003_s5, %s5875_s23 }
 0x735   : > { %s3034_s29 = sshll.u32 %s278_s15, 4  ;;  %s6138_s20 = sand.u32 1, %s3792_s25   ;;  %s5942_s29 = int_to_ptr.vmem [resolvable:$true] %s3034_s29 }
 0x736   : > { %s5952_s22 = scalar_lea.sflag [#allocation3], %s6138_s20  ;;  %s3734_s14 = scalar_lea.vmem %s5942_s29, 512 }
 0x737   : > { %p3735_p7 = scmp.ne.s32.totalorder %s5942_s29, %s3734_s14  ;;  %s3808_s18 = smov [#allocation2]  }
 0x738   : > { %s3738_s28 = sshll.u32 %s3808_s18, 4  ;;  %s3739_s28 = int_to_ptr.vmem [resolvable:$false] %s3738_s28 }
 0x739   : > { %p3736_p8 = pnand %p3735_p7, %p3889_p5  ;;  %s3740_s8 = scalar_lea.vmem %s3739_s28, 1024 }
 0x73a   : > { %p3741_p10 = scmp.lt.s32.totalorder %s5942_s29, %s3739_s28  ;;  %p3742_p11 = scmp.lt.s32.totalorder %s3740_s8, %s3734_s14 }
 0x73b   : > { %p3737_p9 = pneg %p3736_p8 }
 0x73c   : > { %p3743_p12 = por %p3742_p11, %p3741_p10 }
 0x73e   : > { %p3744_p13 = pnand %p3743_p12, %p3737_p9 }
 0x7c9   : > { %v2986_v62 = vpop.f32.mrb[4].mxu0 }
 0x7ca   : > { %2997 = vst [vmem:[%s278_s15] sm:$0xff] %v2986_v62  ;;  %v2988_v18 = vpop.f32.mrb[5].mxu0 }
 0x7cb   : > { %2998 = vst [vmem:[%s278_s15 + $0x8] sm:$0xff] %v2988_v18 }
 0x7e1   : > { %v2992_v52 = vpop.f32.mrb[4].mxu1 }
 0x7e2   : > { %2999 = vst [vmem:[%s278_s15 + $0x10] sm:$0xff] %v2992_v52  ;;  %v2994_v28 = vpop.f32.mrb[5].mxu1 }
 0x7e3   : > { %3000 = vst [vmem:[%s278_s15 + $0x18] sm:$0xff] %v2994_v28 }
 0x7e4   : > { %3747 = shalt.err (!%p3744_p13)
}
 0x7e5   : > { %s3748_s23 = scalar_lea.hbm %s5948_s16, 512  ;;  %s3752_s19 = scalar_lea.hbm %s6003_s5, 1536 }
 0x7e6   : > { %p3749_p0 = scmp.ne.s32.totalorder %s5948_s16, %s3748_s23  ;;  %p3753_p3 = scmp.lt.u32.totalorder %s5948_s16, %s6003_s5 }
 0x7e7   : > { %p3754_p4 = scmp.lt.u32.totalorder %s3752_s19, %s3748_s23  ;;  %p3756_p8 = scmp.lt.u32.totalorder %s3748_s23, %s5948_s16 }
 0x7e8   : > { %p3750_p1 = pnand %p3749_p0, %p3889_p5 }
 0x7e9   : > { %p3755_p7 = por %p3754_p4, %p3753_p3 }
 0x7ea   : > { %p3751_p2 = pneg %p3750_p1 }
 0x7eb   : > { %p3757_p9 = por %p3756_p8, %p3755_p7 }
 0x7ed   : > { %p3758_p10 = pnand %p3757_p9, %p3751_p2 }
 0x7ef   : > { %3761 = shalt.err (!%p3758_p10)
}
 0x7f0   : > { %3446 = dma.vmem_to_hbm [thread:$0]  (%p3889_p5), %s5942_s29, 512, %s5948_s16, %s5952_s22, %s3805_s17, %s3805_s17, %s3806_s21  }
 0x7f1 PF: > { %p3462_p11 = scmp.ge.s32.totalorder %s3800_s27, 2  ;;  %s3083_s14 = sand.u32 1, %s3788_s24  }
 0x7f2   : > { %s3084_s18 = scalar_lea.sflag [#allocation3], %s3083_s14 }
 0x7f3   : > { %p3453_p12 = pnand %p3462_p11, %p3893_p6 }
 0x7f5   : > { %3779 = dma.done.wait (!%p3453_p12), %s3084_s18, 512  }
 0x7f6   : > { %3781 = vsyncadd (!%p3453_p12), %s3084_s18, 4294966784  ;;  %s6139_s11 = sadd.s32 4294967294, %s3800_s27  }
 0x7f7   : > { %s3092_s28 = sand.u32 1, %s6139_s11  }
 0x7f8   : > { %s3093_s8 = scalar_lea.sflag [#allocation5], %s3092_s28 }
 0x7f9   : > { %3783 = dma.done.wait (!%p3453_p12), %s3093_s8, 1024  }
 0x7fa   : > { %3785 = vsyncadd (!%p3453_p12), %s3093_s8, 4294966272  ;;  %p21_p5 = scmp.ge.s32.totalorder %s3874_s30, 5   ;;  %s6140_s24 = smov %s3792_s25 }
 0x7fb   : > { %s6141_s25 = smov %s3796_s26  ;;  %s6142_s26 = smov %s3887_s10 }
 0x7fc   : > { %s6143_s27 = smov %s3874_s30  ;;  %23 = sbr.rel (!%p21_p5) target bundleno = 5 (0x5), region = 107 }
 0x803   :  { %3107 = vsyncpa [#allocation3], 1 }
 0x804   :  { %3109 = vsyncpa [#allocation3 + $0x1], 1 }
 0x805   :  { %3110 = vsyncpa [#allocation5], 1 }
 0x806   :  { %3112 = vsyncpa [#allocation5 + $0x1], 1 }

</bundles_post_ra>
